<compile_context>
chip_gen: v7x
topology: tpu7x:2x2x1
jax: 0.10.0
libtpu: 0.0.40
codegen_flags: <defaults>
</compile_context>

<pallas_src>
import numpy as np
import jax
import jax.numpy as jnp
from jax import lax
from jax.experimental import pallas as pl
from jax.experimental.pallas import tpu as pltpu

IMG = 32                      # CIFAR-10 spatial size (so flatten = 16*5*5 = 400)
P = IMG * IMG                 # 1024 lanes per sample (lane-dense activations)
KS = 5                        # conv kernel size
NT = KS * KS                  # 25 taps per conv
C_IN, C1, C2 = 3, 6, 16
C1P = 8                       # channel rows padded to 8 sublanes
K_STACK = 8 * (NT + NT % 2)   # 208 = 26 tap-slots * 8 rows (even # of taps so
                              # every bf16 scratch store is 16-row aligned)
N_FLAT = C2 * 5 * 5           # 400
F1, F2, F3 = 120, 84, 10


# ---------------------------------------------------------------------------
# The fused kernel: one grid step == one sample; everything stays in VMEM.
# ---------------------------------------------------------------------------
def _lenet_kernel(x_ref, w1k_ref, b1_ref, w2k_ref, b2_ref,
                  sel_ref, wf1k_ref, bf1_ref, wf2t_ref, bf2_ref,
                  wf3t_ref, bf3_ref, out_ref, x1_scr, x2_scr):
    f32, bf16 = jnp.float32, jnp.bfloat16

    def stack_taps(src, scr, stride):
        # scr rows [8t, 8t+8) <- src rolled left by stride*(32*i + j), t=5*i+j.
        # Taps are written in pairs so each bf16 store is a full 16-row tile.
        for g in range(K_STACK // 16):
            halves = []
            for u in (0, 1):
                t = 2 * g + u
                if t < NT:
                    off = stride * ((t // KS) * IMG + (t % KS))
                    halves.append(src if off == 0
                                  else pltpu.roll(src, P - off, axis=1))
                else:
                    halves.append(jnp.zeros_like(src))      # pad tap (zero W)
            scr[16 * g:16 * (g + 1), :] = (
                jnp.concatenate(halves, axis=0).astype(bf16))

    # ---- conv1 (5x5 valid) + bias + ReLU: one stacked-K MXU matmul ---------
    x0 = x_ref[0]                                            # (8, P) f32
    stack_taps(x0, x1_scr, stride=1)
    a1 = jnp.maximum(
        jnp.dot(w1k_ref[...], x1_scr[...], preferred_element_type=f32)
        + b1_ref[...], 0.0)                                  # (8, P), rows 6,7 = 0

    # ---- pool1 (2x2/2), separable; stride-2 folded into conv2 taps ---------
    hm1 = jnp.maximum(a1, pltpu.roll(a1, P - 1, axis=1))
    p1 = jnp.maximum(hm1, pltpu.roll(hm1, P - IMG, axis=1))  # (8, P)

    # ---- conv2 on the stride-2 grid: one stacked-K MXU matmul --------------
    stack_taps(p1, x2_scr, stride=2)
    a2 = jnp.maximum(
        jnp.dot(w2k_ref[...], x2_scr[...], preferred_element_type=f32)
        + b2_ref[...], 0.0)                                  # (16, P)

    # ---- pool2 (2x2/2) on the stride-2 grid, separable ---------------------
    hm2 = jnp.maximum(a2, pltpu.roll(a2, P - 2, axis=1))
    p2 = jnp.maximum(hm2, pltpu.roll(hm2, P - 2 * IMG, axis=1))

    # ---- gather the 5x5 pooled map: m[c, q] = pooled[c, h3, w3], q=5*h3+w3 --
    m = jnp.dot(p2.astype(bf16), sel_ref[...],
                preferred_element_type=f32)                  # (16, 25)

    # ---- fc1: torch (C,H,W) flatten folded into per-channel weight slabs ---
    acc = bf1_ref[...]                                       # (1, 120) f32
    for c in range(C2):
        acc = acc + jnp.dot(m[c:c + 1, :].astype(bf16), wf1k_ref[c],
                            preferred_element_type=f32)
    h1 = jnp.maximum(acc, 0.0)                               # (1, 120)

    # ---- fc2 -> relu -> fc3, row-vector / lane-dense form ------------------
    h2 = jnp.maximum(
        jnp.dot(h1.astype(bf16), wf2t_ref[...], preferred_element_type=f32)
        + bf2_ref[...], 0.0)                                 # (1, 84)
    y = (jnp.dot(h2.astype(bf16), wf3t_ref[...], preferred_element_type=f32)
         + bf3_ref[...])                                     # (1, 10)
    out_ref[0] = y


# ---------------------------------------------------------------------------
# One-time parameter / constant preparation (outside the forward pass)
# ---------------------------------------------------------------------------
def prepare_model(params):
    f32, bf16 = jnp.float32, jnp.bfloat16
    w1 = np.asarray(params["w1"], np.float32)                # (6, 3, 5, 5)
    w2 = np.asarray(params["w2"], np.float32)                # (16, 6, 5, 5)

    # Stacked-K conv weights: column 8*t + c holds w[:, c, i, j] for t = 5i+j.
    w1k = np.zeros((C1P, K_STACK), np.float32)
    w2k = np.zeros((C2, K_STACK), np.float32)
    for t in range(NT):
        i, j = t // KS, t % KS
        w1k[:C1, 8 * t:8 * t + C_IN] = w1[:, :, i, j]
        w2k[:, 8 * t:8 * t + C1] = w2[:, :, i, j]

    b1 = np.zeros((C1P, 1), np.float32)
    b1[:C1, 0] = np.asarray(params["b1"], np.float32)
    b2 = np.asarray(params["b2"], np.float32).reshape(C2, 1)

    # sel: (P, 25) one-hot gather of the 5x5 pooled map (lane 128*h3 + 4*w3).
    q = np.arange(NT)
    sel = np.zeros((P, NT), np.float32)
    sel[128 * (q // 5) + 4 * (q % 5), q] = 1.0

    # fc1 weights as per-channel (25, 120) slabs: wf1k[c, q, f] = wf1[f, 25c+q].
    wf1 = np.asarray(params["wf1"], np.float32)              # (120, 400)
    wf1k = wf1.reshape(F1, C2, NT).transpose(1, 2, 0)        # (16, 25, 120)

    return {
        "w1k": jnp.asarray(w1k, bf16),
        "b1": jnp.asarray(b1, f32),
        "w2k": jnp.asarray(w2k, bf16),
        "b2": jnp.asarray(b2, f32),
        "sel": jnp.asarray(sel, bf16),
        "wf1k": jnp.asarray(wf1k, bf16),
        "bf1": jnp.asarray(params["bf1"], f32).reshape(1, F1),
        "wf2t": jnp.asarray(params["wf2"], f32).T.astype(bf16),   # (120, 84)
        "bf2": jnp.asarray(params["bf2"], f32).reshape(1, F2),
        "wf3t": jnp.asarray(params["wf3"], f32).T.astype(bf16),   # (84, 10)
        "bf3": jnp.asarray(params["bf3"], f32).reshape(1, F3),
    }


# ---------------------------------------------------------------------------
# Forward pass: one fused pallas_call over a parallel batch grid
# ---------------------------------------------------------------------------
@jax.jit
def my_model_forward(x, prep):
    n = x.shape[0]
    x2 = x.reshape(n, C_IN, P).astype(jnp.float32)
    x_pad = jnp.pad(x2, ((0, 0), (0, C1P - C_IN), (0, 0)))   # (n, 8, P)

    const2 = lambda i: (0, 0)
    const3 = lambda i: (0, 0, 0)
    out = pl.pallas_call(
        _lenet_kernel,
        out_shape=jax.ShapeDtypeStruct((n, 1, F3), jnp.float32),
        grid_spec=pltpu.PrefetchScalarGridSpec(
            num_scalar_prefetch=0,
            grid=(n,),
            in_specs=[
                pl.BlockSpec((1, C1P, P), lambda i: (i, 0, 0)),  # x (padded)
                pl.BlockSpec((C1P, K_STACK), const2),            # conv1 stacked W
                pl.BlockSpec((C1P, 1), const2),                  # b1
                pl.BlockSpec((C2, K_STACK), const2),             # conv2 stacked W
                pl.BlockSpec((C2, 1), const2),                   # b2
                pl.BlockSpec((P, NT), const2),                   # pool2 gather
                pl.BlockSpec((C2, NT, F1), const3),              # fc1 W slabs
                pl.BlockSpec((1, F1), const2),                   # bf1
                pl.BlockSpec((F1, F2), const2),                  # fc2 W^T
                pl.BlockSpec((1, F2), const2),                   # bf2
                pl.BlockSpec((F2, F3), const2),                  # fc3 W^T
                pl.BlockSpec((1, F3), const2),                   # bf3
            ],
            out_specs=pl.BlockSpec((1, 1, F3), lambda i: (i, 0, 0)),
            scratch_shapes=[
                pltpu.VMEM((K_STACK, P), jnp.bfloat16),   # stacked conv1 taps
                pltpu.VMEM((K_STACK, P), jnp.bfloat16),   # stacked conv2 taps
            ],
        ),
        compiler_params=pltpu.CompilerParams(
            dimension_semantics=("parallel",)),
    )(x_pad, prep["w1k"], prep["b1"], prep["w2k"], prep["b2"],
      prep["sel"], prep["wf1k"], prep["bf1"],
      prep["wf2t"], prep["bf2"], prep["wf3t"], prep["bf3"])
    return out[:, 0, :]                                      # (N, 10)


# ---------------------------------------------------------------------------
# Parameters (PyTorch layouts) and pure-JAX references for self-checking
# ---------------------------------------------------------------------------
def init_params(key):
    ks = jax.random.split(key, 10)

    def winit(k, shape, fan_in):
        return (jax.random.normal(k, shape, jnp.float32)
                / np.sqrt(fan_in)).astype(jnp.float32)

    return {
        "w1": winit(ks[0], (C1, C_IN, KS, KS), C_IN * KS * KS),
        "b1": winit(ks[1], (C1,), C_IN * KS * KS),
        "w2": winit(ks[2], (C2, C1, KS, KS), C1 * KS * KS),
        "b2": winit(ks[3], (C2,), C1 * KS * KS),
        "wf1": winit(ks[4], (F1, N_FLAT), N_FLAT),
        "bf1": winit(ks[5], (F1,), N_FLAT),
        "wf2": winit(ks[6], (F2, F1), F1),
        "bf2": winit(ks[7], (F2,), F1),
        "wf3": winit(ks[8], (F3, F2), F2),
        "bf3": winit(ks[9], (F3,), F2),
    }


def reference_forward(x, params):
    """Full-f32 (HIGHEST precision) reference — the module's true semantics."""
    hp = lax.Precision.HIGHEST
    y = lax.conv_general_dilated(
        x, params["w1"], window_strides=(1, 1), padding="VALID",
        dimension_numbers=("NCHW", "OIHW", "NCHW"), precision=hp)
    y = jnp.maximum(y + params["b1"][None, :, None, None], 0.0)
    y = lax.reduce_window(y, -jnp.inf, lax.max, (1, 1, 2, 2), (1, 1, 2, 2), "VALID")
    y = lax.conv_general_dilated(
        y, params["w2"], window_strides=(1, 1), padding="VALID",
        dimension_numbers=("NCHW", "OIHW", "NCHW"), precision=hp)
    y = jnp.maximum(y + params["b2"][None, :, None, None], 0.0)
    y = lax.reduce_window(y, -jnp.inf, lax.max, (1, 1, 2, 2), (1, 1, 2, 2), "VALID")
    y = y.reshape(y.shape[0], -1)
    y = jnp.maximum(jnp.dot(y, params["wf1"].T, precision=hp) + params["bf1"], 0.0)
    y = jnp.maximum(jnp.dot(y, params["wf2"].T, precision=hp) + params["bf2"], 0.0)
    return jnp.dot(y, params["wf3"].T, precision=hp) + params["bf3"]


def reference_forward_quantized(x, params):
    """Mirrors the kernel's quantization: bf16 GEMM operands, f32 accumulation,
    f32 bias/ReLU/max-pool.  Tight agreement here gates layout/indexing."""
    bf16, f32 = jnp.bfloat16, jnp.float32

    def conv_q(a, w):
        return lax.conv_general_dilated(
            a.astype(bf16), w.astype(bf16), window_strides=(1, 1),
            padding="VALID", dimension_numbers=("NCHW", "OIHW", "NCHW"),
            preferred_element_type=f32)

    def fc_q(a, w, b):
        return jnp.dot(a.astype(bf16), w.T.astype(bf16),
                       preferred_element_type=f32) + b

    y = jnp.maximum(conv_q(x, params["w1"])
                    + params["b1"][None, :, None, None], 0.0)
    y = lax.reduce_window(y, -jnp.inf, lax.max, (1, 1, 2, 2), (1, 1, 2, 2), "VALID")
    y = jnp.maximum(conv_q(y, params["w2"])
                    + params["b2"][None, :, None, None], 0.0)
    y = lax.reduce_window(y, -jnp.inf, lax.max, (1, 1, 2, 2), (1, 1, 2, 2), "VALID")
    y = y.reshape(y.shape[0], -1)
    y = jnp.maximum(fc_q(y, params["wf1"], params["bf1"]), 0.0)
    y = jnp.maximum(fc_q(y, params["wf2"], params["bf2"]), 0.0)
    return fc_q(y, params["wf3"], params["bf3"])


if __name__ == "__main__":
    key = jax.random.PRNGKey(0)
    k_x, k_p = jax.random.split(key)

    # CIFAR-10-shaped input: 32x32 so that flattened_size = 16*5*5 = 400.
    x = jax.random.normal(k_x, (2, C_IN, IMG, IMG), jnp.float32)
    params = init_params(k_p)
    prep = prepare_model(params)              # one-time weight/constant prep

    out = jax.block_until_ready(my_model_forward(x, prep))
    assert out.shape == (2, F3), out.shape
    assert out.dtype == jnp.float32

    # (1) Tight check vs a quantization-matched reference: catches any layout /
    #     indexing / tap-offset bug (those produce O(1) errors, not ~1e-3).
    ref_q = jax.block_until_ready(reference_forward_quantized(x, params))
    err_q = float(jnp.max(jnp.abs(out - ref_q)))
    assert err_q < 1e-2, f"mismatch vs quantization-matched reference: {err_q}"

    # (2) Sanity check vs the full-f32 module semantics: bounds the bf16
    #     GEMM-operand quantization budget.
    ref = jax.block_until_ready(reference_forward(x, params))
    err = float(jnp.max(jnp.abs(out - ref)))
    assert err < 5e-2, f"mismatch vs f32 reference: {err}"

    print("KERNEL_OK")
</pallas_src>

<mosaic_0001>
module attributes {stable_mosaic.version = 11 : i64} {
  func.func @_lenet_kernel(%arg0: i32, %arg1: memref<1x8x1024xf32, #tpu.memory_space<vmem>>, %arg2: memref<8x208xbf16, #tpu.memory_space<vmem>>, %arg3: memref<8x1xf32, #tpu.memory_space<vmem>>, %arg4: memref<16x208xbf16, #tpu.memory_space<vmem>>, %arg5: memref<16x1xf32, #tpu.memory_space<vmem>>, %arg6: memref<1024x25xbf16, #tpu.memory_space<vmem>>, %arg7: memref<16x25x120xbf16, #tpu.memory_space<vmem>>, %arg8: memref<1x120xf32, #tpu.memory_space<vmem>>, %arg9: memref<120x84xbf16, #tpu.memory_space<vmem>>, %arg10: memref<1x84xf32, #tpu.memory_space<vmem>>, %arg11: memref<84x10xbf16, #tpu.memory_space<vmem>>, %arg12: memref<1x10xf32, #tpu.memory_space<vmem>>, %arg13: memref<1x1x10xf32, #tpu.memory_space<vmem>>, %arg14: memref<208x1024xbf16, #tpu.memory_space<vmem>>, %arg15: memref<208x1024xbf16, #tpu.memory_space<vmem>>) attributes {dimension_semantics = [#tpu.dimension_semantics<parallel>], iteration_bounds = array<i64: 2>, scalar_prefetch = 0 : i64, scratch_operands = 2 : i64, tpu.core_type = #tpu.core_type<tc>, window_params = [{transform_indices = @transform_0, window_bounds = array<i64: 1, 8, 1024>}, {pipeline_mode = #tpu.pipeline_mode<synchronous>, transform_indices = @transform_1, window_bounds = array<i64: 8, 208>}, {pipeline_mode = #tpu.pipeline_mode<synchronous>, transform_indices = @transform_2, window_bounds = array<i64: 8, 1>}, {pipeline_mode = #tpu.pipeline_mode<synchronous>, transform_indices = @transform_3, window_bounds = array<i64: 16, 208>}, {pipeline_mode = #tpu.pipeline_mode<synchronous>, transform_indices = @transform_4, window_bounds = array<i64: 16, 1>}, {pipeline_mode = #tpu.pipeline_mode<synchronous>, transform_indices = @transform_5, window_bounds = array<i64: 1024, 25>}, {pipeline_mode = #tpu.pipeline_mode<synchronous>, transform_indices = @transform_6, window_bounds = array<i64: 16, 25, 120>}, {pipeline_mode = #tpu.pipeline_mode<synchronous>, transform_indices = @transform_7, window_bounds = array<i64: 1, 120>}, {pipeline_mode = #tpu.pipeline_mode<synchronous>, transform_indices = @transform_8, window_bounds = array<i64: 120, 84>}, {pipeline_mode = #tpu.pipeline_mode<synchronous>, transform_indices = @transform_9, window_bounds = array<i64: 1, 84>}, {pipeline_mode = #tpu.pipeline_mode<synchronous>, transform_indices = @transform_10, window_bounds = array<i64: 84, 10>}, {pipeline_mode = #tpu.pipeline_mode<synchronous>, transform_indices = @transform_11, window_bounds = array<i64: 1, 10>}, {transform_indices = @transform_12, window_bounds = array<i64: 1, 1, 10>}]} {
    %c0 = arith.constant 0 : index
    %c0_0 = arith.constant 0 : index
    %c0_1 = arith.constant 0 : index
    %0 = vector.load %arg1[%c0, %c0_0, %c0_1] : memref<1x8x1024xf32, #tpu.memory_space<vmem>>, vector<1x8x1024xf32>
    %1 = vector.shape_cast %0 : vector<1x8x1024xf32> to vector<8x1024xf32>
    %c1023_i32 = arith.constant 1023 : i32
    %2 = tpu.dynamic_rotate %1 by %c1023_i32 dim 1 : vector<8x1024xf32>, i32 -> vector<8x1024xf32>
    %3 = tpu.concatenate %1, %2 in 0 : vector<8x1024xf32>, vector<8x1024xf32> -> vector<16x1024xf32>
    %4 = arith.truncf %3 : vector<16x1024xf32> to vector<16x1024xbf16>
    %c0_2 = arith.constant 0 : index
    %c0_3 = arith.constant 0 : index
    %5 = vector.load %arg14[%c0_2, %c0_3] : memref<208x1024xbf16, #tpu.memory_space<vmem>>, vector<16x1024xbf16>
    tpu.vector_store %arg14[%c0_2, %c0_3], %4 {strides = array<i32>} : memref<208x1024xbf16, #tpu.memory_space<vmem>>, vector<16x1024xbf16>,
    %c1022_i32 = arith.constant 1022 : i32
    %6 = tpu.dynamic_rotate %1 by %c1022_i32 dim 1 : vector<8x1024xf32>, i32 -> vector<8x1024xf32>
    %c1021_i32 = arith.constant 1021 : i32
    %7 = tpu.dynamic_rotate %1 by %c1021_i32 dim 1 : vector<8x1024xf32>, i32 -> vector<8x1024xf32>
    %8 = tpu.concatenate %6, %7 in 0 : vector<8x1024xf32>, vector<8x1024xf32> -> vector<16x1024xf32>
    %9 = arith.truncf %8 : vector<16x1024xf32> to vector<16x1024xbf16>
    %c16 = arith.constant 16 : index
    %c0_4 = arith.constant 0 : index
    %10 = vector.load %arg14[%c16, %c0_4] : memref<208x1024xbf16, #tpu.memory_space<vmem>>, vector<16x1024xbf16>
    tpu.vector_store %arg14[%c16, %c0_4], %9 {strides = array<i32>} : memref<208x1024xbf16, #tpu.memory_space<vmem>>, vector<16x1024xbf16>,
    %c1020_i32 = arith.constant 1020 : i32
    %11 = tpu.dynamic_rotate %1 by %c1020_i32 dim 1 : vector<8x1024xf32>, i32 -> vector<8x1024xf32>
    %c992_i32 = arith.constant 992 : i32
    %12 = tpu.dynamic_rotate %1 by %c992_i32 dim 1 : vector<8x1024xf32>, i32 -> vector<8x1024xf32>
    %13 = tpu.concatenate %11, %12 in 0 : vector<8x1024xf32>, vector<8x1024xf32> -> vector<16x1024xf32>
    %14 = arith.truncf %13 : vector<16x1024xf32> to vector<16x1024xbf16>
    %c32 = arith.constant 32 : index
    %c0_5 = arith.constant 0 : index
    %15 = vector.load %arg14[%c32, %c0_5] : memref<208x1024xbf16, #tpu.memory_space<vmem>>, vector<16x1024xbf16>
    tpu.vector_store %arg14[%c32, %c0_5], %14 {strides = array<i32>} : memref<208x1024xbf16, #tpu.memory_space<vmem>>, vector<16x1024xbf16>,
    %c991_i32 = arith.constant 991 : i32
    %16 = tpu.dynamic_rotate %1 by %c991_i32 dim 1 : vector<8x1024xf32>, i32 -> vector<8x1024xf32>
    %c990_i32 = arith.constant 990 : i32
    %17 = tpu.dynamic_rotate %1 by %c990_i32 dim 1 : vector<8x1024xf32>, i32 -> vector<8x1024xf32>
    %18 = tpu.concatenate %16, %17 in 0 : vector<8x1024xf32>, vector<8x1024xf32> -> vector<16x1024xf32>
    %19 = arith.truncf %18 : vector<16x1024xf32> to vector<16x1024xbf16>
    %c48 = arith.constant 48 : index
    %c0_6 = arith.constant 0 : index
    %20 = vector.load %arg14[%c48, %c0_6] : memref<208x1024xbf16, #tpu.memory_space<vmem>>, vector<16x1024xbf16>
    tpu.vector_store %arg14[%c48, %c0_6], %19 {strides = array<i32>} : memref<208x1024xbf16, #tpu.memory_space<vmem>>, vector<16x1024xbf16>,
    %c989_i32 = arith.constant 989 : i32
    %21 = tpu.dynamic_rotate %1 by %c989_i32 dim 1 : vector<8x1024xf32>, i32 -> vector<8x1024xf32>
    %c988_i32 = arith.constant 988 : i32
    %22 = tpu.dynamic_rotate %1 by %c988_i32 dim 1 : vector<8x1024xf32>, i32 -> vector<8x1024xf32>
    %23 = tpu.concatenate %21, %22 in 0 : vector<8x1024xf32>, vector<8x1024xf32> -> vector<16x1024xf32>
    %24 = arith.truncf %23 : vector<16x1024xf32> to vector<16x1024xbf16>
    %c64 = arith.constant 64 : index
    %c0_7 = arith.constant 0 : index
    %25 = vector.load %arg14[%c64, %c0_7] : memref<208x1024xbf16, #tpu.memory_space<vmem>>, vector<16x1024xbf16>
    tpu.vector_store %arg14[%c64, %c0_7], %24 {strides = array<i32>} : memref<208x1024xbf16, #tpu.memory_space<vmem>>, vector<16x1024xbf16>,
    %c960_i32 = arith.constant 960 : i32
    %26 = tpu.dynamic_rotate %1 by %c960_i32 dim 1 : vector<8x1024xf32>, i32 -> vector<8x1024xf32>
    %c959_i32 = arith.constant 959 : i32
    %27 = tpu.dynamic_rotate %1 by %c959_i32 dim 1 : vector<8x1024xf32>, i32 -> vector<8x1024xf32>
    %28 = tpu.concatenate %26, %27 in 0 : vector<8x1024xf32>, vector<8x1024xf32> -> vector<16x1024xf32>
    %29 = arith.truncf %28 : vector<16x1024xf32> to vector<16x1024xbf16>
    %c80 = arith.constant 80 : index
    %c0_8 = arith.constant 0 : index
    %30 = vector.load %arg14[%c80, %c0_8] : memref<208x1024xbf16, #tpu.memory_space<vmem>>, vector<16x1024xbf16>
    tpu.vector_store %arg14[%c80, %c0_8], %29 {strides = array<i32>} : memref<208x1024xbf16, #tpu.memory_space<vmem>>, vector<16x1024xbf16>,
    %c958_i32 = arith.constant 958 : i32
    %31 = tpu.dynamic_rotate %1 by %c958_i32 dim 1 : vector<8x1024xf32>, i32 -> vector<8x1024xf32>
    %c957_i32 = arith.constant 957 : i32
    %32 = tpu.dynamic_rotate %1 by %c957_i32 dim 1 : vector<8x1024xf32>, i32 -> vector<8x1024xf32>
    %33 = tpu.concatenate %31, %32 in 0 : vector<8x1024xf32>, vector<8x1024xf32> -> vector<16x1024xf32>
    %34 = arith.truncf %33 : vector<16x1024xf32> to vector<16x1024xbf16>
    %c96 = arith.constant 96 : index
    %c0_9 = arith.constant 0 : index
    %35 = vector.load %arg14[%c96, %c0_9] : memref<208x1024xbf16, #tpu.memory_space<vmem>>, vector<16x1024xbf16>
    tpu.vector_store %arg14[%c96, %c0_9], %34 {strides = array<i32>} : memref<208x1024xbf16, #tpu.memory_space<vmem>>, vector<16x1024xbf16>,
    %c956_i32 = arith.constant 956 : i32
    %36 = tpu.dynamic_rotate %1 by %c956_i32 dim 1 : vector<8x1024xf32>, i32 -> vector<8x1024xf32>
    %c928_i32 = arith.constant 928 : i32
    %37 = tpu.dynamic_rotate %1 by %c928_i32 dim 1 : vector<8x1024xf32>, i32 -> vector<8x1024xf32>
    %38 = tpu.concatenate %36, %37 in 0 : vector<8x1024xf32>, vector<8x1024xf32> -> vector<16x1024xf32>
    %39 = arith.truncf %38 : vector<16x1024xf32> to vector<16x1024xbf16>
    %c112 = arith.constant 112 : index
    %c0_10 = arith.constant 0 : index
    %40 = vector.load %arg14[%c112, %c0_10] : memref<208x1024xbf16, #tpu.memory_space<vmem>>, vector<16x1024xbf16>
    tpu.vector_store %arg14[%c112, %c0_10], %39 {strides = array<i32>} : memref<208x1024xbf16, #tpu.memory_space<vmem>>, vector<16x1024xbf16>,
    %c927_i32 = arith.constant 927 : i32
    %41 = tpu.dynamic_rotate %1 by %c927_i32 dim 1 : vector<8x1024xf32>, i32 -> vector<8x1024xf32>
    %c926_i32 = arith.constant 926 : i32
    %42 = tpu.dynamic_rotate %1 by %c926_i32 dim 1 : vector<8x1024xf32>, i32 -> vector<8x1024xf32>
    %43 = tpu.concatenate %41, %42 in 0 : vector<8x1024xf32>, vector<8x1024xf32> -> vector<16x1024xf32>
    %44 = arith.truncf %43 : vector<16x1024xf32> to vector<16x1024xbf16>
    %c128 = arith.constant 128 : index
    %c0_11 = arith.constant 0 : index
    %45 = vector.load %arg14[%c128, %c0_11] : memref<208x1024xbf16, #tpu.memory_space<vmem>>, vector<16x1024xbf16>
    tpu.vector_store %arg14[%c128, %c0_11], %44 {strides = array<i32>} : memref<208x1024xbf16, #tpu.memory_space<vmem>>, vector<16x1024xbf16>,
    %c925_i32 = arith.constant 925 : i32
    %46 = tpu.dynamic_rotate %1 by %c925_i32 dim 1 : vector<8x1024xf32>, i32 -> vector<8x1024xf32>
    %c924_i32 = arith.constant 924 : i32
    %47 = tpu.dynamic_rotate %1 by %c924_i32 dim 1 : vector<8x1024xf32>, i32 -> vector<8x1024xf32>
    %48 = tpu.concatenate %46, %47 in 0 : vector<8x1024xf32>, vector<8x1024xf32> -> vector<16x1024xf32>
    %49 = arith.truncf %48 : vector<16x1024xf32> to vector<16x1024xbf16>
    %c144 = arith.constant 144 : index
    %c0_12 = arith.constant 0 : index
    %50 = vector.load %arg14[%c144, %c0_12] : memref<208x1024xbf16, #tpu.memory_space<vmem>>, vector<16x1024xbf16>
    tpu.vector_store %arg14[%c144, %c0_12], %49 {strides = array<i32>} : memref<208x1024xbf16, #tpu.memory_space<vmem>>, vector<16x1024xbf16>,
    %c896_i32 = arith.constant 896 : i32
    %51 = tpu.dynamic_rotate %1 by %c896_i32 dim 1 : vector<8x1024xf32>, i32 -> vector<8x1024xf32>
    %c895_i32 = arith.constant 895 : i32
    %52 = tpu.dynamic_rotate %1 by %c895_i32 dim 1 : vector<8x1024xf32>, i32 -> vector<8x1024xf32>
    %53 = tpu.concatenate %51, %52 in 0 : vector<8x1024xf32>, vector<8x1024xf32> -> vector<16x1024xf32>
    %54 = arith.truncf %53 : vector<16x1024xf32> to vector<16x1024xbf16>
    %c160 = arith.constant 160 : index
    %c0_13 = arith.constant 0 : index
    %55 = vector.load %arg14[%c160, %c0_13] : memref<208x1024xbf16, #tpu.memory_space<vmem>>, vector<16x1024xbf16>
    tpu.vector_store %arg14[%c160, %c0_13], %54 {strides = array<i32>} : memref<208x1024xbf16, #tpu.memory_space<vmem>>, vector<16x1024xbf16>,
    %c894_i32 = arith.constant 894 : i32
    %56 = tpu.dynamic_rotate %1 by %c894_i32 dim 1 : vector<8x1024xf32>, i32 -> vector<8x1024xf32>
    %c893_i32 = arith.constant 893 : i32
    %57 = tpu.dynamic_rotate %1 by %c893_i32 dim 1 : vector<8x1024xf32>, i32 -> vector<8x1024xf32>
    %58 = tpu.concatenate %56, %57 in 0 : vector<8x1024xf32>, vector<8x1024xf32> -> vector<16x1024xf32>
    %59 = arith.truncf %58 : vector<16x1024xf32> to vector<16x1024xbf16>
    %c176 = arith.constant 176 : index
    %c0_14 = arith.constant 0 : index
    %60 = vector.load %arg14[%c176, %c0_14] : memref<208x1024xbf16, #tpu.memory_space<vmem>>, vector<16x1024xbf16>
    tpu.vector_store %arg14[%c176, %c0_14], %59 {strides = array<i32>} : memref<208x1024xbf16, #tpu.memory_space<vmem>>, vector<16x1024xbf16>,
    %c892_i32 = arith.constant 892 : i32
    %61 = tpu.dynamic_rotate %1 by %c892_i32 dim 1 : vector<8x1024xf32>, i32 -> vector<8x1024xf32>
    %cst = arith.constant 0.000000e+00 : f32
    %62 = vector.broadcast %cst : f32 to vector<8x1024xf32>
    %63 = tpu.concatenate %61, %62 in 0 : vector<8x1024xf32>, vector<8x1024xf32> -> vector<16x1024xf32>
    %64 = arith.truncf %63 : vector<16x1024xf32> to vector<16x1024xbf16>
    %c192 = arith.constant 192 : index
    %c0_15 = arith.constant 0 : index
    %65 = vector.load %arg14[%c192, %c0_15] : memref<208x1024xbf16, #tpu.memory_space<vmem>>, vector<16x1024xbf16>
    tpu.vector_store %arg14[%c192, %c0_15], %64 {strides = array<i32>} : memref<208x1024xbf16, #tpu.memory_space<vmem>>, vector<16x1024xbf16>,
    %c0_16 = arith.constant 0 : index
    %c0_17 = arith.constant 0 : index
    %66 = vector.load %arg2[%c0_16, %c0_17] : memref<8x208xbf16, #tpu.memory_space<vmem>>, vector<8x208xbf16>
    %c0_18 = arith.constant 0 : index
    %c0_19 = arith.constant 0 : index
    %67 = vector.load %arg14[%c0_18, %c0_19] : memref<208x1024xbf16, #tpu.memory_space<vmem>>, vector<208x1024xbf16>
    %cst_20 = arith.constant dense<0.000000e+00> : vector<8x1024xf32>
    %68 = tpu.matmul %66, %67, %cst_20 {dimension_numbers = #tpu.dot_dimension_numbers<[1], [0], [0], [1], [0, 0, 1, 1], [], []>} : vector<8x208xbf16>, vector<208x1024xbf16>, vector<8x1024xf32> -> vector<8x1024xf32>
    %c0_21 = arith.constant 0 : index
    %c0_22 = arith.constant 0 : index
    %69 = vector.load %arg3[%c0_21, %c0_22] : memref<8x1xf32, #tpu.memory_space<vmem>>, vector<8x1xf32>
    %70 = vector.broadcast %69 : vector<8x1xf32> to vector<8x1024xf32>
    %71 = arith.addf %68, %70 : vector<8x1024xf32>
    %cst_23 = arith.constant 0.000000e+00 : f32
    %72 = vector.broadcast %cst_23 : f32 to vector<8x1024xf32>
    %73 = arith.maximumf %71, %72 : vector<8x1024xf32>
    %c1023_i32_24 = arith.constant 1023 : i32
    %74 = tpu.dynamic_rotate %73 by %c1023_i32_24 dim 1 : vector<8x1024xf32>, i32 -> vector<8x1024xf32>
    %75 = arith.maximumf %73, %74 : vector<8x1024xf32>
    %c992_i32_25 = arith.constant 992 : i32
    %76 = tpu.dynamic_rotate %75 by %c992_i32_25 dim 1 : vector<8x1024xf32>, i32 -> vector<8x1024xf32>
    %77 = arith.maximumf %75, %76 : vector<8x1024xf32>
    %c1022_i32_26 = arith.constant 1022 : i32
    %78 = tpu.dynamic_rotate %77 by %c1022_i32_26 dim 1 : vector<8x1024xf32>, i32 -> vector<8x1024xf32>
    %79 = tpu.concatenate %77, %78 in 0 : vector<8x1024xf32>, vector<8x1024xf32> -> vector<16x1024xf32>
    %80 = arith.truncf %79 : vector<16x1024xf32> to vector<16x1024xbf16>
    %c0_27 = arith.constant 0 : index
    %c0_28 = arith.constant 0 : index
    %81 = vector.load %arg15[%c0_27, %c0_28] : memref<208x1024xbf16, #tpu.memory_space<vmem>>, vector<16x1024xbf16>
    tpu.vector_store %arg15[%c0_27, %c0_28], %80 {strides = array<i32>} : memref<208x1024xbf16, #tpu.memory_space<vmem>>, vector<16x1024xbf16>,
    %c1020_i32_29 = arith.constant 1020 : i32
    %82 = tpu.dynamic_rotate %77 by %c1020_i32_29 dim 1 : vector<8x1024xf32>, i32 -> vector<8x1024xf32>
    %c1018_i32 = arith.constant 1018 : i32
    %83 = tpu.dynamic_rotate %77 by %c1018_i32 dim 1 : vector<8x1024xf32>, i32 -> vector<8x1024xf32>
    %84 = tpu.concatenate %82, %83 in 0 : vector<8x1024xf32>, vector<8x1024xf32> -> vector<16x1024xf32>
    %85 = arith.truncf %84 : vector<16x1024xf32> to vector<16x1024xbf16>
    %c16_30 = arith.constant 16 : index
    %c0_31 = arith.constant 0 : index
    %86 = vector.load %arg15[%c16_30, %c0_31] : memref<208x1024xbf16, #tpu.memory_space<vmem>>, vector<16x1024xbf16>
    tpu.vector_store %arg15[%c16_30, %c0_31], %85 {strides = array<i32>} : memref<208x1024xbf16, #tpu.memory_space<vmem>>, vector<16x1024xbf16>,
    %c1016_i32 = arith.constant 1016 : i32
    %87 = tpu.dynamic_rotate %77 by %c1016_i32 dim 1 : vector<8x1024xf32>, i32 -> vector<8x1024xf32>
    %c960_i32_32 = arith.constant 960 : i32
    %88 = tpu.dynamic_rotate %77 by %c960_i32_32 dim 1 : vector<8x1024xf32>, i32 -> vector<8x1024xf32>
    %89 = tpu.concatenate %87, %88 in 0 : vector<8x1024xf32>, vector<8x1024xf32> -> vector<16x1024xf32>
    %90 = arith.truncf %89 : vector<16x1024xf32> to vector<16x1024xbf16>
    %c32_33 = arith.constant 32 : index
    %c0_34 = arith.constant 0 : index
    %91 = vector.load %arg15[%c32_33, %c0_34] : memref<208x1024xbf16, #tpu.memory_space<vmem>>, vector<16x1024xbf16>
    tpu.vector_store %arg15[%c32_33, %c0_34], %90 {strides = array<i32>} : memref<208x1024xbf16, #tpu.memory_space<vmem>>, vector<16x1024xbf16>,
    %c958_i32_35 = arith.constant 958 : i32
    %92 = tpu.dynamic_rotate %77 by %c958_i32_35 dim 1 : vector<8x1024xf32>, i32 -> vector<8x1024xf32>
    %c956_i32_36 = arith.constant 956 : i32
    %93 = tpu.dynamic_rotate %77 by %c956_i32_36 dim 1 : vector<8x1024xf32>, i32 -> vector<8x1024xf32>
    %94 = tpu.concatenate %92, %93 in 0 : vector<8x1024xf32>, vector<8x1024xf32> -> vector<16x1024xf32>
    %95 = arith.truncf %94 : vector<16x1024xf32> to vector<16x1024xbf16>
    %c48_37 = arith.constant 48 : index
    %c0_38 = arith.constant 0 : index
    %96 = vector.load %arg15[%c48_37, %c0_38] : memref<208x1024xbf16, #tpu.memory_space<vmem>>, vector<16x1024xbf16>
    tpu.vector_store %arg15[%c48_37, %c0_38], %95 {strides = array<i32>} : memref<208x1024xbf16, #tpu.memory_space<vmem>>, vector<16x1024xbf16>,
    %c954_i32 = arith.constant 954 : i32
    %97 = tpu.dynamic_rotate %77 by %c954_i32 dim 1 : vector<8x1024xf32>, i32 -> vector<8x1024xf32>
    %c952_i32 = arith.constant 952 : i32
    %98 = tpu.dynamic_rotate %77 by %c952_i32 dim 1 : vector<8x1024xf32>, i32 -> vector<8x1024xf32>
    %99 = tpu.concatenate %97, %98 in 0 : vector<8x1024xf32>, vector<8x1024xf32> -> vector<16x1024xf32>
    %100 = arith.truncf %99 : vector<16x1024xf32> to vector<16x1024xbf16>
    %c64_39 = arith.constant 64 : index
    %c0_40 = arith.constant 0 : index
    %101 = vector.load %arg15[%c64_39, %c0_40] : memref<208x1024xbf16, #tpu.memory_space<vmem>>, vector<16x1024xbf16>
    tpu.vector_store %arg15[%c64_39, %c0_40], %100 {strides = array<i32>} : memref<208x1024xbf16, #tpu.memory_space<vmem>>, vector<16x1024xbf16>,
    %c896_i32_41 = arith.constant 896 : i32
    %102 = tpu.dynamic_rotate %77 by %c896_i32_41 dim 1 : vector<8x1024xf32>, i32 -> vector<8x1024xf32>
    %c894_i32_42 = arith.constant 894 : i32
    %103 = tpu.dynamic_rotate %77 by %c894_i32_42 dim 1 : vector<8x1024xf32>, i32 -> vector<8x1024xf32>
    %104 = tpu.concatenate %102, %103 in 0 : vector<8x1024xf32>, vector<8x1024xf32> -> vector<16x1024xf32>
    %105 = arith.truncf %104 : vector<16x1024xf32> to vector<16x1024xbf16>
    %c80_43 = arith.constant 80 : index
    %c0_44 = arith.constant 0 : index
    %106 = vector.load %arg15[%c80_43, %c0_44] : memref<208x1024xbf16, #tpu.memory_space<vmem>>, vector<16x1024xbf16>
    tpu.vector_store %arg15[%c80_43, %c0_44], %105 {strides = array<i32>} : memref<208x1024xbf16, #tpu.memory_space<vmem>>, vector<16x1024xbf16>,
    %c892_i32_45 = arith.constant 892 : i32
    %107 = tpu.dynamic_rotate %77 by %c892_i32_45 dim 1 : vector<8x1024xf32>, i32 -> vector<8x1024xf32>
    %c890_i32 = arith.constant 890 : i32
    %108 = tpu.dynamic_rotate %77 by %c890_i32 dim 1 : vector<8x1024xf32>, i32 -> vector<8x1024xf32>
    %109 = tpu.concatenate %107, %108 in 0 : vector<8x1024xf32>, vector<8x1024xf32> -> vector<16x1024xf32>
    %110 = arith.truncf %109 : vector<16x1024xf32> to vector<16x1024xbf16>
    %c96_46 = arith.constant 96 : index
    %c0_47 = arith.constant 0 : index
    %111 = vector.load %arg15[%c96_46, %c0_47] : memref<208x1024xbf16, #tpu.memory_space<vmem>>, vector<16x1024xbf16>
    tpu.vector_store %arg15[%c96_46, %c0_47], %110 {strides = array<i32>} : memref<208x1024xbf16, #tpu.memory_space<vmem>>, vector<16x1024xbf16>,
    %c888_i32 = arith.constant 888 : i32
    %112 = tpu.dynamic_rotate %77 by %c888_i32 dim 1 : vector<8x1024xf32>, i32 -> vector<8x1024xf32>
    %c832_i32 = arith.constant 832 : i32
    %113 = tpu.dynamic_rotate %77 by %c832_i32 dim 1 : vector<8x1024xf32>, i32 -> vector<8x1024xf32>
    %114 = tpu.concatenate %112, %113 in 0 : vector<8x1024xf32>, vector<8x1024xf32> -> vector<16x1024xf32>
    %115 = arith.truncf %114 : vector<16x1024xf32> to vector<16x1024xbf16>
    %c112_48 = arith.constant 112 : index
    %c0_49 = arith.constant 0 : index
    %116 = vector.load %arg15[%c112_48, %c0_49] : memref<208x1024xbf16, #tpu.memory_space<vmem>>, vector<16x1024xbf16>
    tpu.vector_store %arg15[%c112_48, %c0_49], %115 {strides = array<i32>} : memref<208x1024xbf16, #tpu.memory_space<vmem>>, vector<16x1024xbf16>,
    %c830_i32 = arith.constant 830 : i32
    %117 = tpu.dynamic_rotate %77 by %c830_i32 dim 1 : vector<8x1024xf32>, i32 -> vector<8x1024xf32>
    %c828_i32 = arith.constant 828 : i32
    %118 = tpu.dynamic_rotate %77 by %c828_i32 dim 1 : vector<8x1024xf32>, i32 -> vector<8x1024xf32>
    %119 = tpu.concatenate %117, %118 in 0 : vector<8x1024xf32>, vector<8x1024xf32> -> vector<16x1024xf32>
    %120 = arith.truncf %119 : vector<16x1024xf32> to vector<16x1024xbf16>
    %c128_50 = arith.constant 128 : index
    %c0_51 = arith.constant 0 : index
    %121 = vector.load %arg15[%c128_50, %c0_51] : memref<208x1024xbf16, #tpu.memory_space<vmem>>, vector<16x1024xbf16>
    tpu.vector_store %arg15[%c128_50, %c0_51], %120 {strides = array<i32>} : memref<208x1024xbf16, #tpu.memory_space<vmem>>, vector<16x1024xbf16>,
    %c826_i32 = arith.constant 826 : i32
    %122 = tpu.dynamic_rotate %77 by %c826_i32 dim 1 : vector<8x1024xf32>, i32 -> vector<8x1024xf32>
    %c824_i32 = arith.constant 824 : i32
    %123 = tpu.dynamic_rotate %77 by %c824_i32 dim 1 : vector<8x1024xf32>, i32 -> vector<8x1024xf32>
    %124 = tpu.concatenate %122, %123 in 0 : vector<8x1024xf32>, vector<8x1024xf32> -> vector<16x1024xf32>
    %125 = arith.truncf %124 : vector<16x1024xf32> to vector<16x1024xbf16>
    %c144_52 = arith.constant 144 : index
    %c0_53 = arith.constant 0 : index
    %126 = vector.load %arg15[%c144_52, %c0_53] : memref<208x1024xbf16, #tpu.memory_space<vmem>>, vector<16x1024xbf16>
    tpu.vector_store %arg15[%c144_52, %c0_53], %125 {strides = array<i32>} : memref<208x1024xbf16, #tpu.memory_space<vmem>>, vector<16x1024xbf16>,
    %c768_i32 = arith.constant 768 : i32
    %127 = tpu.dynamic_rotate %77 by %c768_i32 dim 1 : vector<8x1024xf32>, i32 -> vector<8x1024xf32>
    %c766_i32 = arith.constant 766 : i32
    %128 = tpu.dynamic_rotate %77 by %c766_i32 dim 1 : vector<8x1024xf32>, i32 -> vector<8x1024xf32>
    %129 = tpu.concatenate %127, %128 in 0 : vector<8x1024xf32>, vector<8x1024xf32> -> vector<16x1024xf32>
    %130 = arith.truncf %129 : vector<16x1024xf32> to vector<16x1024xbf16>
    %c160_54 = arith.constant 160 : index
    %c0_55 = arith.constant 0 : index
    %131 = vector.load %arg15[%c160_54, %c0_55] : memref<208x1024xbf16, #tpu.memory_space<vmem>>, vector<16x1024xbf16>
    tpu.vector_store %arg15[%c160_54, %c0_55], %130 {strides = array<i32>} : memref<208x1024xbf16, #tpu.memory_space<vmem>>, vector<16x1024xbf16>,
    %c764_i32 = arith.constant 764 : i32
    %132 = tpu.dynamic_rotate %77 by %c764_i32 dim 1 : vector<8x1024xf32>, i32 -> vector<8x1024xf32>
    %c762_i32 = arith.constant 762 : i32
    %133 = tpu.dynamic_rotate %77 by %c762_i32 dim 1 : vector<8x1024xf32>, i32 -> vector<8x1024xf32>
    %134 = tpu.concatenate %132, %133 in 0 : vector<8x1024xf32>, vector<8x1024xf32> -> vector<16x1024xf32>
    %135 = arith.truncf %134 : vector<16x1024xf32> to vector<16x1024xbf16>
    %c176_56 = arith.constant 176 : index
    %c0_57 = arith.constant 0 : index
    %136 = vector.load %arg15[%c176_56, %c0_57] : memref<208x1024xbf16, #tpu.memory_space<vmem>>, vector<16x1024xbf16>
    tpu.vector_store %arg15[%c176_56, %c0_57], %135 {strides = array<i32>} : memref<208x1024xbf16, #tpu.memory_space<vmem>>, vector<16x1024xbf16>,
    %c760_i32 = arith.constant 760 : i32
    %137 = tpu.dynamic_rotate %77 by %c760_i32 dim 1 : vector<8x1024xf32>, i32 -> vector<8x1024xf32>
    %cst_58 = arith.constant 0.000000e+00 : f32
    %138 = vector.broadcast %cst_58 : f32 to vector<8x1024xf32>
    %139 = tpu.concatenate %137, %138 in 0 : vector<8x1024xf32>, vector<8x1024xf32> -> vector<16x1024xf32>
    %140 = arith.truncf %139 : vector<16x1024xf32> to vector<16x1024xbf16>
    %c192_59 = arith.constant 192 : index
    %c0_60 = arith.constant 0 : index
    %141 = vector.load %arg15[%c192_59, %c0_60] : memref<208x1024xbf16, #tpu.memory_space<vmem>>, vector<16x1024xbf16>
    tpu.vector_store %arg15[%c192_59, %c0_60], %140 {strides = array<i32>} : memref<208x1024xbf16, #tpu.memory_space<vmem>>, vector<16x1024xbf16>,
    %c0_61 = arith.constant 0 : index
    %c0_62 = arith.constant 0 : index
    %142 = vector.load %arg4[%c0_61, %c0_62] : memref<16x208xbf16, #tpu.memory_space<vmem>>, vector<16x208xbf16>
    %c0_63 = arith.constant 0 : index
    %c0_64 = arith.constant 0 : index
    %143 = vector.load %arg15[%c0_63, %c0_64] : memref<208x1024xbf16, #tpu.memory_space<vmem>>, vector<208x1024xbf16>
    %cst_65 = arith.constant dense<0.000000e+00> : vector<16x1024xf32>
    %144 = tpu.matmul %142, %143, %cst_65 {dimension_numbers = #tpu.dot_dimension_numbers<[1], [0], [0], [1], [0, 0, 1, 1], [], []>} : vector<16x208xbf16>, vector<208x1024xbf16>, vector<16x1024xf32> -> vector<16x1024xf32>
    %c0_66 = arith.constant 0 : index
    %c0_67 = arith.constant 0 : index
    %145 = vector.load %arg5[%c0_66, %c0_67] : memref<16x1xf32, #tpu.memory_space<vmem>>, vector<16x1xf32>
    %146 = vector.broadcast %145 : vector<16x1xf32> to vector<16x1024xf32>
    %147 = arith.addf %144, %146 : vector<16x1024xf32>
    %cst_68 = arith.constant 0.000000e+00 : f32
    %148 = vector.broadcast %cst_68 : f32 to vector<16x1024xf32>
    %149 = arith.maximumf %147, %148 : vector<16x1024xf32>
    %c1022_i32_69 = arith.constant 1022 : i32
    %150 = tpu.dynamic_rotate %149 by %c1022_i32_69 dim 1 : vector<16x1024xf32>, i32 -> vector<16x1024xf32>
    %151 = arith.maximumf %149, %150 : vector<16x1024xf32>
    %c960_i32_70 = arith.constant 960 : i32
    %152 = tpu.dynamic_rotate %151 by %c960_i32_70 dim 1 : vector<16x1024xf32>, i32 -> vector<16x1024xf32>
    %153 = arith.maximumf %151, %152 : vector<16x1024xf32>
    %154 = arith.truncf %153 : vector<16x1024xf32> to vector<16x1024xbf16>
    %c0_71 = arith.constant 0 : index
    %c0_72 = arith.constant 0 : index
    %155 = vector.load %arg6[%c0_71, %c0_72] : memref<1024x25xbf16, #tpu.memory_space<vmem>>, vector<1024x25xbf16>
    %cst_73 = arith.constant dense<0.000000e+00> : vector<16x25xf32>
    %156 = tpu.matmul %154, %155, %cst_73 {dimension_numbers = #tpu.dot_dimension_numbers<[1], [0], [0], [1], [0, 0, 1, 1], [], []>} : vector<16x1024xbf16>, vector<1024x25xbf16>, vector<16x25xf32> -> vector<16x25xf32>
    %c0_74 = arith.constant 0 : index
    %c0_75 = arith.constant 0 : index
    %157 = vector.load %arg8[%c0_74, %c0_75] : memref<1x120xf32, #tpu.memory_space<vmem>>, vector<1x120xf32>
    %158 = vector.extract_strided_slice %156 {offsets = [0, 0], sizes = [1, 25], strides = [1, 1]} : vector<16x25xf32> to vector<1x25xf32>
    %159 = arith.truncf %158 : vector<1x25xf32> to vector<1x25xbf16>
    %c0_76 = arith.constant 0 : index
    %c0_77 = arith.constant 0 : index
    %c0_78 = arith.constant 0 : index
    %160 = vector.load %arg7[%c0_76, %c0_77, %c0_78] : memref<16x25x120xbf16, #tpu.memory_space<vmem>>, vector<1x25x120xbf16>
    %161 = vector.shape_cast %160 : vector<1x25x120xbf16> to vector<25x120xbf16>
    %cst_79 = arith.constant dense<0.000000e+00> : vector<1x120xf32>
    %162 = tpu.matmul %159, %161, %cst_79 {dimension_numbers = #tpu.dot_dimension_numbers<[1], [0], [0], [1], [0, 0, 1, 1], [], []>} : vector<1x25xbf16>, vector<25x120xbf16>, vector<1x120xf32> -> vector<1x120xf32>
    %163 = arith.addf %157, %162 : vector<1x120xf32>
    %164 = vector.extract_strided_slice %156 {offsets = [1, 0], sizes = [1, 25], strides = [1, 1]} : vector<16x25xf32> to vector<1x25xf32>
    %165 = arith.truncf %164 : vector<1x25xf32> to vector<1x25xbf16>
    %c1 = arith.constant 1 : index
    %c0_80 = arith.constant 0 : index
    %c0_81 = arith.constant 0 : index
    %166 = vector.load %arg7[%c1, %c0_80, %c0_81] : memref<16x25x120xbf16, #tpu.memory_space<vmem>>, vector<1x25x120xbf16>
    %167 = vector.shape_cast %166 : vector<1x25x120xbf16> to vector<25x120xbf16>
    %cst_82 = arith.constant dense<0.000000e+00> : vector<1x120xf32>
    %168 = tpu.matmul %165, %167, %cst_82 {dimension_numbers = #tpu.dot_dimension_numbers<[1], [0], [0], [1], [0, 0, 1, 1], [], []>} : vector<1x25xbf16>, vector<25x120xbf16>, vector<1x120xf32> -> vector<1x120xf32>
    %169 = arith.addf %163, %168 : vector<1x120xf32>
    %170 = vector.extract_strided_slice %156 {offsets = [2, 0], sizes = [1, 25], strides = [1, 1]} : vector<16x25xf32> to vector<1x25xf32>
    %171 = arith.truncf %170 : vector<1x25xf32> to vector<1x25xbf16>
    %c2 = arith.constant 2 : index
    %c0_83 = arith.constant 0 : index
    %c0_84 = arith.constant 0 : index
    %172 = vector.load %arg7[%c2, %c0_83, %c0_84] : memref<16x25x120xbf16, #tpu.memory_space<vmem>>, vector<1x25x120xbf16>
    %173 = vector.shape_cast %172 : vector<1x25x120xbf16> to vector<25x120xbf16>
    %cst_85 = arith.constant dense<0.000000e+00> : vector<1x120xf32>
    %174 = tpu.matmul %171, %173, %cst_85 {dimension_numbers = #tpu.dot_dimension_numbers<[1], [0], [0], [1], [0, 0, 1, 1], [], []>} : vector<1x25xbf16>, vector<25x120xbf16>, vector<1x120xf32> -> vector<1x120xf32>
    %175 = arith.addf %169, %174 : vector<1x120xf32>
    %176 = vector.extract_strided_slice %156 {offsets = [3, 0], sizes = [1, 25], strides = [1, 1]} : vector<16x25xf32> to vector<1x25xf32>
    %177 = arith.truncf %176 : vector<1x25xf32> to vector<1x25xbf16>
    %c3 = arith.constant 3 : index
    %c0_86 = arith.constant 0 : index
    %c0_87 = arith.constant 0 : index
    %178 = vector.load %arg7[%c3, %c0_86, %c0_87] : memref<16x25x120xbf16, #tpu.memory_space<vmem>>, vector<1x25x120xbf16>
    %179 = vector.shape_cast %178 : vector<1x25x120xbf16> to vector<25x120xbf16>
    %cst_88 = arith.constant dense<0.000000e+00> : vector<1x120xf32>
    %180 = tpu.matmul %177, %179, %cst_88 {dimension_numbers = #tpu.dot_dimension_numbers<[1], [0], [0], [1], [0, 0, 1, 1], [], []>} : vector<1x25xbf16>, vector<25x120xbf16>, vector<1x120xf32> -> vector<1x120xf32>
    %181 = arith.addf %175, %180 : vector<1x120xf32>
    %182 = vector.extract_strided_slice %156 {offsets = [4, 0], sizes = [1, 25], strides = [1, 1]} : vector<16x25xf32> to vector<1x25xf32>
    %183 = arith.truncf %182 : vector<1x25xf32> to vector<1x25xbf16>
    %c4 = arith.constant 4 : index
    %c0_89 = arith.constant 0 : index
    %c0_90 = arith.constant 0 : index
    %184 = vector.load %arg7[%c4, %c0_89, %c0_90] : memref<16x25x120xbf16, #tpu.memory_space<vmem>>, vector<1x25x120xbf16>
    %185 = vector.shape_cast %184 : vector<1x25x120xbf16> to vector<25x120xbf16>
    %cst_91 = arith.constant dense<0.000000e+00> : vector<1x120xf32>
    %186 = tpu.matmul %183, %185, %cst_91 {dimension_numbers = #tpu.dot_dimension_numbers<[1], [0], [0], [1], [0, 0, 1, 1], [], []>} : vector<1x25xbf16>, vector<25x120xbf16>, vector<1x120xf32> -> vector<1x120xf32>
    %187 = arith.addf %181, %186 : vector<1x120xf32>
    %188 = vector.extract_strided_slice %156 {offsets = [5, 0], sizes = [1, 25], strides = [1, 1]} : vector<16x25xf32> to vector<1x25xf32>
    %189 = arith.truncf %188 : vector<1x25xf32> to vector<1x25xbf16>
    %c5 = arith.constant 5 : index
    %c0_92 = arith.constant 0 : index
    %c0_93 = arith.constant 0 : index
    %190 = vector.load %arg7[%c5, %c0_92, %c0_93] : memref<16x25x120xbf16, #tpu.memory_space<vmem>>, vector<1x25x120xbf16>
    %191 = vector.shape_cast %190 : vector<1x25x120xbf16> to vector<25x120xbf16>
    %cst_94 = arith.constant dense<0.000000e+00> : vector<1x120xf32>
    %192 = tpu.matmul %189, %191, %cst_94 {dimension_numbers = #tpu.dot_dimension_numbers<[1], [0], [0], [1], [0, 0, 1, 1], [], []>} : vector<1x25xbf16>, vector<25x120xbf16>, vector<1x120xf32> -> vector<1x120xf32>
    %193 = arith.addf %187, %192 : vector<1x120xf32>
    %194 = vector.extract_strided_slice %156 {offsets = [6, 0], sizes = [1, 25], strides = [1, 1]} : vector<16x25xf32> to vector<1x25xf32>
    %195 = arith.truncf %194 : vector<1x25xf32> to vector<1x25xbf16>
    %c6 = arith.constant 6 : index
    %c0_95 = arith.constant 0 : index
    %c0_96 = arith.constant 0 : index
    %196 = vector.load %arg7[%c6, %c0_95, %c0_96] : memref<16x25x120xbf16, #tpu.memory_space<vmem>>, vector<1x25x120xbf16>
    %197 = vector.shape_cast %196 : vector<1x25x120xbf16> to vector<25x120xbf16>
    %cst_97 = arith.constant dense<0.000000e+00> : vector<1x120xf32>
    %198 = tpu.matmul %195, %197, %cst_97 {dimension_numbers = #tpu.dot_dimension_numbers<[1], [0], [0], [1], [0, 0, 1, 1], [], []>} : vector<1x25xbf16>, vector<25x120xbf16>, vector<1x120xf32> -> vector<1x120xf32>
    %199 = arith.addf %193, %198 : vector<1x120xf32>
    %200 = vector.extract_strided_slice %156 {offsets = [7, 0], sizes = [1, 25], strides = [1, 1]} : vector<16x25xf32> to vector<1x25xf32>
    %201 = arith.truncf %200 : vector<1x25xf32> to vector<1x25xbf16>
    %c7 = arith.constant 7 : index
    %c0_98 = arith.constant 0 : index
    %c0_99 = arith.constant 0 : index
    %202 = vector.load %arg7[%c7, %c0_98, %c0_99] : memref<16x25x120xbf16, #tpu.memory_space<vmem>>, vector<1x25x120xbf16>
    %203 = vector.shape_cast %202 : vector<1x25x120xbf16> to vector<25x120xbf16>
    %cst_100 = arith.constant dense<0.000000e+00> : vector<1x120xf32>
    %204 = tpu.matmul %201, %203, %cst_100 {dimension_numbers = #tpu.dot_dimension_numbers<[1], [0], [0], [1], [0, 0, 1, 1], [], []>} : vector<1x25xbf16>, vector<25x120xbf16>, vector<1x120xf32> -> vector<1x120xf32>
    %205 = arith.addf %199, %204 : vector<1x120xf32>
    %206 = vector.extract_strided_slice %156 {offsets = [8, 0], sizes = [1, 25], strides = [1, 1]} : vector<16x25xf32> to vector<1x25xf32>
    %207 = arith.truncf %206 : vector<1x25xf32> to vector<1x25xbf16>
    %c8 = arith.constant 8 : index
    %c0_101 = arith.constant 0 : index
    %c0_102 = arith.constant 0 : index
    %208 = vector.load %arg7[%c8, %c0_101, %c0_102] : memref<16x25x120xbf16, #tpu.memory_space<vmem>>, vector<1x25x120xbf16>
    %209 = vector.shape_cast %208 : vector<1x25x120xbf16> to vector<25x120xbf16>
    %cst_103 = arith.constant dense<0.000000e+00> : vector<1x120xf32>
    %210 = tpu.matmul %207, %209, %cst_103 {dimension_numbers = #tpu.dot_dimension_numbers<[1], [0], [0], [1], [0, 0, 1, 1], [], []>} : vector<1x25xbf16>, vector<25x120xbf16>, vector<1x120xf32> -> vector<1x120xf32>
    %211 = arith.addf %205, %210 : vector<1x120xf32>
    %212 = vector.extract_strided_slice %156 {offsets = [9, 0], sizes = [1, 25], strides = [1, 1]} : vector<16x25xf32> to vector<1x25xf32>
    %213 = arith.truncf %212 : vector<1x25xf32> to vector<1x25xbf16>
    %c9 = arith.constant 9 : index
    %c0_104 = arith.constant 0 : index
    %c0_105 = arith.constant 0 : index
    %214 = vector.load %arg7[%c9, %c0_104, %c0_105] : memref<16x25x120xbf16, #tpu.memory_space<vmem>>, vector<1x25x120xbf16>
    %215 = vector.shape_cast %214 : vector<1x25x120xbf16> to vector<25x120xbf16>
    %cst_106 = arith.constant dense<0.000000e+00> : vector<1x120xf32>
    %216 = tpu.matmul %213, %215, %cst_106 {dimension_numbers = #tpu.dot_dimension_numbers<[1], [0], [0], [1], [0, 0, 1, 1], [], []>} : vector<1x25xbf16>, vector<25x120xbf16>, vector<1x120xf32> -> vector<1x120xf32>
    %217 = arith.addf %211, %216 : vector<1x120xf32>
    %218 = vector.extract_strided_slice %156 {offsets = [10, 0], sizes = [1, 25], strides = [1, 1]} : vector<16x25xf32> to vector<1x25xf32>
    %219 = arith.truncf %218 : vector<1x25xf32> to vector<1x25xbf16>
    %c10 = arith.constant 10 : index
    %c0_107 = arith.constant 0 : index
    %c0_108 = arith.constant 0 : index
    %220 = vector.load %arg7[%c10, %c0_107, %c0_108] : memref<16x25x120xbf16, #tpu.memory_space<vmem>>, vector<1x25x120xbf16>
    %221 = vector.shape_cast %220 : vector<1x25x120xbf16> to vector<25x120xbf16>
    %cst_109 = arith.constant dense<0.000000e+00> : vector<1x120xf32>
    %222 = tpu.matmul %219, %221, %cst_109 {dimension_numbers = #tpu.dot_dimension_numbers<[1], [0], [0], [1], [0, 0, 1, 1], [], []>} : vector<1x25xbf16>, vector<25x120xbf16>, vector<1x120xf32> -> vector<1x120xf32>
    %223 = arith.addf %217, %222 : vector<1x120xf32>
    %224 = vector.extract_strided_slice %156 {offsets = [11, 0], sizes = [1, 25], strides = [1, 1]} : vector<16x25xf32> to vector<1x25xf32>
    %225 = arith.truncf %224 : vector<1x25xf32> to vector<1x25xbf16>
    %c11 = arith.constant 11 : index
    %c0_110 = arith.constant 0 : index
    %c0_111 = arith.constant 0 : index
    %226 = vector.load %arg7[%c11, %c0_110, %c0_111] : memref<16x25x120xbf16, #tpu.memory_space<vmem>>, vector<1x25x120xbf16>
    %227 = vector.shape_cast %226 : vector<1x25x120xbf16> to vector<25x120xbf16>
    %cst_112 = arith.constant dense<0.000000e+00> : vector<1x120xf32>
    %228 = tpu.matmul %225, %227, %cst_112 {dimension_numbers = #tpu.dot_dimension_numbers<[1], [0], [0], [1], [0, 0, 1, 1], [], []>} : vector<1x25xbf16>, vector<25x120xbf16>, vector<1x120xf32> -> vector<1x120xf32>
    %229 = arith.addf %223, %228 : vector<1x120xf32>
    %230 = vector.extract_strided_slice %156 {offsets = [12, 0], sizes = [1, 25], strides = [1, 1]} : vector<16x25xf32> to vector<1x25xf32>
    %231 = arith.truncf %230 : vector<1x25xf32> to vector<1x25xbf16>
    %c12 = arith.constant 12 : index
    %c0_113 = arith.constant 0 : index
    %c0_114 = arith.constant 0 : index
    %232 = vector.load %arg7[%c12, %c0_113, %c0_114] : memref<16x25x120xbf16, #tpu.memory_space<vmem>>, vector<1x25x120xbf16>
    %233 = vector.shape_cast %232 : vector<1x25x120xbf16> to vector<25x120xbf16>
    %cst_115 = arith.constant dense<0.000000e+00> : vector<1x120xf32>
    %234 = tpu.matmul %231, %233, %cst_115 {dimension_numbers = #tpu.dot_dimension_numbers<[1], [0], [0], [1], [0, 0, 1, 1], [], []>} : vector<1x25xbf16>, vector<25x120xbf16>, vector<1x120xf32> -> vector<1x120xf32>
    %235 = arith.addf %229, %234 : vector<1x120xf32>
    %236 = vector.extract_strided_slice %156 {offsets = [13, 0], sizes = [1, 25], strides = [1, 1]} : vector<16x25xf32> to vector<1x25xf32>
    %237 = arith.truncf %236 : vector<1x25xf32> to vector<1x25xbf16>
    %c13 = arith.constant 13 : index
    %c0_116 = arith.constant 0 : index
    %c0_117 = arith.constant 0 : index
    %238 = vector.load %arg7[%c13, %c0_116, %c0_117] : memref<16x25x120xbf16, #tpu.memory_space<vmem>>, vector<1x25x120xbf16>
    %239 = vector.shape_cast %238 : vector<1x25x120xbf16> to vector<25x120xbf16>
    %cst_118 = arith.constant dense<0.000000e+00> : vector<1x120xf32>
    %240 = tpu.matmul %237, %239, %cst_118 {dimension_numbers = #tpu.dot_dimension_numbers<[1], [0], [0], [1], [0, 0, 1, 1], [], []>} : vector<1x25xbf16>, vector<25x120xbf16>, vector<1x120xf32> -> vector<1x120xf32>
    %241 = arith.addf %235, %240 : vector<1x120xf32>
    %242 = vector.extract_strided_slice %156 {offsets = [14, 0], sizes = [1, 25], strides = [1, 1]} : vector<16x25xf32> to vector<1x25xf32>
    %243 = arith.truncf %242 : vector<1x25xf32> to vector<1x25xbf16>
    %c14 = arith.constant 14 : index
    %c0_119 = arith.constant 0 : index
    %c0_120 = arith.constant 0 : index
    %244 = vector.load %arg7[%c14, %c0_119, %c0_120] : memref<16x25x120xbf16, #tpu.memory_space<vmem>>, vector<1x25x120xbf16>
    %245 = vector.shape_cast %244 : vector<1x25x120xbf16> to vector<25x120xbf16>
    %cst_121 = arith.constant dense<0.000000e+00> : vector<1x120xf32>
    %246 = tpu.matmul %243, %245, %cst_121 {dimension_numbers = #tpu.dot_dimension_numbers<[1], [0], [0], [1], [0, 0, 1, 1], [], []>} : vector<1x25xbf16>, vector<25x120xbf16>, vector<1x120xf32> -> vector<1x120xf32>
    %247 = arith.addf %241, %246 : vector<1x120xf32>
    %248 = vector.extract_strided_slice %156 {offsets = [15, 0], sizes = [1, 25], strides = [1, 1]} : vector<16x25xf32> to vector<1x25xf32>
    %249 = arith.truncf %248 : vector<1x25xf32> to vector<1x25xbf16>
    %c15 = arith.constant 15 : index
    %c0_122 = arith.constant 0 : index
    %c0_123 = arith.constant 0 : index
    %250 = vector.load %arg7[%c15, %c0_122, %c0_123] : memref<16x25x120xbf16, #tpu.memory_space<vmem>>, vector<1x25x120xbf16>
    %251 = vector.shape_cast %250 : vector<1x25x120xbf16> to vector<25x120xbf16>
    %cst_124 = arith.constant dense<0.000000e+00> : vector<1x120xf32>
    %252 = tpu.matmul %249, %251, %cst_124 {dimension_numbers = #tpu.dot_dimension_numbers<[1], [0], [0], [1], [0, 0, 1, 1], [], []>} : vector<1x25xbf16>, vector<25x120xbf16>, vector<1x120xf32> -> vector<1x120xf32>
    %253 = arith.addf %247, %252 : vector<1x120xf32>
    %cst_125 = arith.constant 0.000000e+00 : f32
    %254 = vector.broadcast %cst_125 : f32 to vector<1x120xf32>
    %255 = arith.maximumf %253, %254 : vector<1x120xf32>
    %256 = arith.truncf %255 : vector<1x120xf32> to vector<1x120xbf16>
    %c0_126 = arith.constant 0 : index
    %c0_127 = arith.constant 0 : index
    %257 = vector.load %arg9[%c0_126, %c0_127] : memref<120x84xbf16, #tpu.memory_space<vmem>>, vector<120x84xbf16>
    %cst_128 = arith.constant dense<0.000000e+00> : vector<1x84xf32>
    %258 = tpu.matmul %256, %257, %cst_128 {dimension_numbers = #tpu.dot_dimension_numbers<[1], [0], [0], [1], [0, 0, 1, 1], [], []>} : vector<1x120xbf16>, vector<120x84xbf16>, vector<1x84xf32> -> vector<1x84xf32>
    %c0_129 = arith.constant 0 : index
    %c0_130 = arith.constant 0 : index
    %259 = vector.load %arg10[%c0_129, %c0_130] : memref<1x84xf32, #tpu.memory_space<vmem>>, vector<1x84xf32>
    %260 = arith.addf %258, %259 : vector<1x84xf32>
    %cst_131 = arith.constant 0.000000e+00 : f32
    %261 = vector.broadcast %cst_131 : f32 to vector<1x84xf32>
    %262 = arith.maximumf %260, %261 : vector<1x84xf32>
    %263 = arith.truncf %262 : vector<1x84xf32> to vector<1x84xbf16>
    %c0_132 = arith.constant 0 : index
    %c0_133 = arith.constant 0 : index
    %264 = vector.load %arg11[%c0_132, %c0_133] : memref<84x10xbf16, #tpu.memory_space<vmem>>, vector<84x10xbf16>
    %cst_134 = arith.constant dense<0.000000e+00> : vector<1x10xf32>
    %265 = tpu.matmul %263, %264, %cst_134 {dimension_numbers = #tpu.dot_dimension_numbers<[1], [0], [0], [1], [0, 0, 1, 1], [], []>} : vector<1x84xbf16>, vector<84x10xbf16>, vector<1x10xf32> -> vector<1x10xf32>
    %c0_135 = arith.constant 0 : index
    %c0_136 = arith.constant 0 : index
    %266 = vector.load %arg12[%c0_135, %c0_136] : memref<1x10xf32, #tpu.memory_space<vmem>>, vector<1x10xf32>
    %267 = arith.addf %265, %266 : vector<1x10xf32>
    %c0_137 = arith.constant 0 : index
    %c0_138 = arith.constant 0 : index
    %c0_139 = arith.constant 0 : index
    %268 = vector.load %arg13[%c0_137, %c0_138, %c0_139] : memref<1x1x10xf32, #tpu.memory_space<vmem>>, vector<1x1x10xf32>
    %269 = vector.shape_cast %268 : vector<1x1x10xf32> to vector<1x10xf32>
    %270 = vector.shape_cast %267 : vector<1x10xf32> to vector<1x1x10xf32>
    tpu.vector_store %arg13[%c0_137, %c0_138, %c0_139], %270 {strides = array<i32>} : memref<1x1x10xf32, #tpu.memory_space<vmem>>, vector<1x1x10xf32>,
    return
  }
  func.func @transform_0(%arg0: i32) -> (i32, i32, i32) {
    %c0_i32 = arith.constant 0 : i32
    %c0_i32_0 = arith.constant 0 : i32
    %c0_i32_1 = arith.constant 0 : i32
    return %arg0, %c0_i32, %c0_i32_0 : i32, i32, i32
  }
  func.func @transform_1(%arg0: i32) -> (i32, i32) {
    %c0_i32 = arith.constant 0 : i32
    %c0_i32_0 = arith.constant 0 : i32
    %c0_i32_1 = arith.constant 0 : i32
    return %c0_i32, %c0_i32_0 : i32, i32
  }
  func.func @transform_2(%arg0: i32) -> (i32, i32) {
    %c0_i32 = arith.constant 0 : i32
    %c0_i32_0 = arith.constant 0 : i32
    %c0_i32_1 = arith.constant 0 : i32
    return %c0_i32, %c0_i32_0 : i32, i32
  }
  func.func @transform_3(%arg0: i32) -> (i32, i32) {
    %c0_i32 = arith.constant 0 : i32
    %c0_i32_0 = arith.constant 0 : i32
    %c0_i32_1 = arith.constant 0 : i32
    return %c0_i32, %c0_i32_0 : i32, i32
  }
  func.func @transform_4(%arg0: i32) -> (i32, i32) {
    %c0_i32 = arith.constant 0 : i32
    %c0_i32_0 = arith.constant 0 : i32
    %c0_i32_1 = arith.constant 0 : i32
    return %c0_i32, %c0_i32_0 : i32, i32
  }
  func.func @transform_5(%arg0: i32) -> (i32, i32) {
    %c0_i32 = arith.constant 0 : i32
    %c0_i32_0 = arith.constant 0 : i32
    %c0_i32_1 = arith.constant 0 : i32
    return %c0_i32, %c0_i32_0 : i32, i32
  }
  func.func @transform_6(%arg0: i32) -> (i32, i32, i32) {
    %c0_i32 = arith.constant 0 : i32
    %c0_i32_0 = arith.constant 0 : i32
    %c0_i32_1 = arith.constant 0 : i32
    %c0_i32_2 = arith.constant 0 : i32
    return %c0_i32, %c0_i32_0, %c0_i32_1 : i32, i32, i32
  }
  func.func @transform_7(%arg0: i32) -> (i32, i32) {
    %c0_i32 = arith.constant 0 : i32
    %c0_i32_0 = arith.constant 0 : i32
    %c0_i32_1 = arith.constant 0 : i32
    return %c0_i32, %c0_i32_0 : i32, i32
  }
  func.func @transform_8(%arg0: i32) -> (i32, i32) {
    %c0_i32 = arith.constant 0 : i32
    %c0_i32_0 = arith.constant 0 : i32
    %c0_i32_1 = arith.constant 0 : i32
    return %c0_i32, %c0_i32_0 : i32, i32
  }
  func.func @transform_9(%arg0: i32) -> (i32, i32) {
    %c0_i32 = arith.constant 0 : i32
    %c0_i32_0 = arith.constant 0 : i32
    %c0_i32_1 = arith.constant 0 : i32
    return %c0_i32, %c0_i32_0 : i32, i32
  }
  func.func @transform_10(%arg0: i32) -> (i32, i32) {
    %c0_i32 = arith.constant 0 : i32
    %c0_i32_0 = arith.constant 0 : i32
    %c0_i32_1 = arith.constant 0 : i32
    return %c0_i32, %c0_i32_0 : i32, i32
  }
  func.func @transform_11(%arg0: i32) -> (i32, i32) {
    %c0_i32 = arith.constant 0 : i32
    %c0_i32_0 = arith.constant 0 : i32
    %c0_i32_1 = arith.constant 0 : i32
    return %c0_i32, %c0_i32_0 : i32, i32
  }
  func.func @transform_12(%arg0: i32) -> (i32, i32, i32) {
    %c0_i32 = arith.constant 0 : i32
    %c0_i32_0 = arith.constant 0 : i32
    %c0_i32_1 = arith.constant 0 : i32
    return %arg0, %c0_i32, %c0_i32_0 : i32, i32, i32
  }
}

</mosaic_0001>

<bundles_post_ra>
// kernel: my_model_forward.1
= control target key start
LH: loop header
LB: loop body
LE: loop exit
PB: predicated region body
PF: predicated region fallthrough
CT: control target
= control target key end

     0   :  { %s8442_s0 = inlined_call_operand.vmem [shape: f32[2,8,1024], index: 0, kind: input, shape index: {}]   ;;  %s8443_s1 = inlined_call_operand.vmem [shape: bf16[8,208], index: 1, kind: input, shape index: {}]   ;;  %s8444_s2 = inlined_call_operand.vmem [shape: f32[8,1], index: 2, kind: input, shape index: {}]   ;;  %s8445_s3 = inlined_call_operand.vmem [shape: bf16[16,208], index: 3, kind: input, shape index: {}]   ;;  %s8446_s4 = inlined_call_operand.vmem [shape: f32[16,1], index: 4, kind: input, shape index: {}]   ;;  %s8447_s5 = inlined_call_operand.vmem [shape: bf16[1024,25], index: 5, kind: input, shape index: {}]   ;;  %s8448_s6 = inlined_call_operand.vmem [shape: bf16[16,25,120], index: 6, kind: input, shape index: {}]   ;;  %s8449_s7 = inlined_call_operand.vmem [shape: f32[1,120], index: 7, kind: input, shape index: {}]   ;;  %s8450_s8 = inlined_call_operand.vmem [shape: bf16[120,84], index: 8, kind: input, shape index: {}]   ;;  %s8451_s9 = inlined_call_operand.vmem [shape: f32[1,84], index: 9, kind: input, shape index: {}]   ;;  %s8452_s10 = inlined_call_operand.vmem [shape: bf16[84,10], index: 10, kind: input, shape index: {}]   ;;  %s8453_s11 = inlined_call_operand.vmem [shape: f32[1,10], index: 11, kind: input, shape index: {}]   ;;  %s8454_s12 = inlined_call_operand.hbm [shape: f32[2,1,10], index: 12, kind: output, shape index: {}]  }
   0x1   :  { %8564 = sst [smem:[#allocation23_spill]] %s8442_s0 }
   0x2   :  { %8565 = sst [smem:[#allocation24_spill]] %s8443_s1 }
   0x3   :  { %8566 = sst [smem:[#allocation25_spill]] %s8454_s12 }
   0x4   :  { %17 = vsyncpa [#allocation5], 0 }
   0x5   :  { %19 = vsyncpa [#allocation5 + $0x1], 0  ;;  %s5700_s21 = smov 0   ;;  %s5702_s22 = smov 0  }
   0x6   :  { %s5704_s23 = smov 0   ;;  %s5706_s24 = smov 0  }
   0x7 LB: > { %8567 = sst [smem:[#allocation7_spill]] %s5593_s21  ;;  %s5721_s25 = sadd.s32 4294967295, %s5605_s24   ;;  %s5605_s24 = sphi %s5706_s24, %s8719_s24   ;;  %s5601_s23 = sphi %s5704_s23, %s8721_s23   ;;  %s5597_s22 = sphi %s5702_s22, %s8723_s22   ;;  %s5593_s21 = sphi %s5700_s21, %s8722_s21  }
   0x8   : > { %8568 = sst [smem:[#allocation8_spill]] %s5601_s23  ;;  %s4256_s26 = sadd.s32 4294967294, %s5605_s24  }
   0x9   : > { %8569 = sst [smem:[#allocation9_spill]] %s5605_s24  ;;  %s5725_s27 = sadd.s32 1, %s5605_s24  }
   0xa   : > { %8570 = sst [smem:[#allocation10_spill]] %s5725_s27  ;;  %s289_s28 = sadd.s32 1, %s5601_s23 }
   0xb   : > { %s286_s29 = ssub.s32 %s5605_s24, %s5725_s27  ;;  %p299_p0 = scmp.ne.s32.totalorder %s5601_s23, %s5597_s22 }
   0xc   : > { %p287_p1 = scmp.eq.s32.totalorder %s286_s29, 0  ;;  %p300_p2 = scmp.eq.s32.totalorder %s5721_s25, 1 }
   0xd   : > { %p305_p3 = scmp.ne.s32.totalorder %s5597_s22, %s5593_s21  ;;  %p306_p4 = scmp.eq.s32.totalorder %s4256_s26, 1 }
   0xe   : > { %s5736_s30 = scalar_select %p287_p1, %s5601_s23, %s289_s28  }
   0xf   : > { %p5738_p5 = por %p300_p2, %p299_p0  ;;  %p5742_p6 = por %p306_p4, %p305_p3 }
  0x10   : > { %8571 = sst [smem:[#allocation11_spill]] %s5736_s30  ;;  %p4259_p7 = scmp.ge.s32.totalorder %s5605_s24, 1 }
  0x11   : > { %s8572_s13 = scalar_select %p5738_p5, 1, 0 }
  0x12   : > { %s8574_s14 = scalar_select %p5742_p6, 1, 0 }
  0x13   : > { %8573 = sst [smem:[#allocation12_spill]] %s8572_s13  ;;  %p365_p8 = scmp.lt.s32.totalorder %s5605_s24, 3 }
  0x14   : > { %8575 = sst [smem:[#allocation13_spill]] %s8574_s14 }
  0x15   : > { %p366_p9 = pnand %p4259_p7, %p365_p8 }
  0x17   : > { %369 = sbr.rel (%p366_p9) target bundleno = 2599 (0xa27), region = 68 }
  0x1e   : > { %p406_p10 = scmp.lt.s32.totalorder %s5721_s25, 1  ;;  %s8576_s0 = sld [smem:[#allocation23_spill]]  ;;  %vm1206_vm0 = vcmask 654336   ;;  %v436_v14 = vlaneseq }
  0x1f   : > { %s8465_s20 = smov 126   ;;  %s8463_s26 = smov 127  }
  0x20   : > { %s407_s15 = scalar_select %p406_p10, %s5721_s25, 1  ;;  %v5904_v15 = vand.u32 127, %v436_v14 }
  0x21   : > { %s8469_s28 = smov 125   ;;  %s8455_s29 = smov 96  }
  0x22   : > { %s4465_s16 = sshll.u32 %s407_s15, 6  ;;  %s8472_s15 = smov 124   ;;  %vm438_vm1 = vcmp.lt.s32.totalorder %v5904_v15, 127  ;;  %vm479_vm2 = vcmp.lt.s32.totalorder %v5904_v15, 126  ;;  %vm504_vm3 = vcmp.lt.s32.totalorder %v5904_v15, 125  ;;  %vm8532_vm4 = vcmp.lt.s32.totalorder %v5904_v15, 124 }
  0x23   : > { %s8459_s17 = smov 95   ;;  %s8461_s18 = smov 92   ;;  %vm8533_vm5 = vcmp.lt.s32.totalorder %v5904_v15, 96  ;;  %vm8542_vm6 = vcmp.lt.s32.totalorder %v5904_v15, 95  ;;  %vm8543_vm7 = vcmp.lt.s32.totalorder %v5904_v15, 94  ;;  %vm677_vm8 = vcmp.lt.s32.totalorder %v5904_v15, 93 }
  0x24   : > { %s5753_s19 = scalar_lea.vmem %s8576_s0, %s4465_s16  ;;  %s8457_s16 = smov 94   ;;  %vm702_vm9 = vcmp.lt.s32.totalorder %v5904_v15, 92  ;;  %vm743_vm10 = vcmp.lt.s32.totalorder %v5904_v15, 64  ;;  %vm768_vm11 = vcmp.lt.s32.totalorder %v5904_v15, 63  ;;  %vm809_vm12 = vcmp.lt.s32.totalorder %v5904_v15, 62 }
  0x25   : > { %v5756_v0 = vld [vmem:[%s5753_s19 + $0x8] sm:$0xff]  ;;  %v5759_v1 = vld [vmem:[%s5753_s19 + $0x10] sm:$0xff]  ;;  %v5762_v2 = vld [vmem:[%s5753_s19] sm:$0xff]  ;;  %s8581_s0 = smov 64   ;;  %s8584_s1 = sld [smem:[#allocation24_spill]]  ;;  %vm834_vm13 = vcmp.lt.s32.totalorder %v5904_v15, 61 }
  0x26   : > { %v5766_v3 = vpack.i.bf16 %v5759_v1, %v5756_v0  ;;  %v5769_v4 = vld [vmem:[%s5753_s19 + $0x18] sm:$0xff]  ;;  %v5804_v6 = vld [vmem:[%s5753_s19 + $0x20] sm:$0xff]  ;;  %v5811_v7 = vld [vmem:[%s5753_s19 + $0x28] sm:$0xff]  ;;  %s8585_s23 = smov 60   ;;  %s8587_s30 = smov 127   ;;  %vm875_vm14 = vcmp.lt.s32.totalorder %v5904_v15, 60 }
  0x27   : > { %v5777_v5 = vpack.i.bf16 %v5769_v4, %v5762_v2  ;;  %v4999_v8 = vpack.i.bf16 %v5811_v7, %v5804_v6  ;;  %v5873_v9 = vld [vmem:[%s5753_s19 + $0x30] sm:$0xff]  ;;  %v5876_v10 = vld [vmem:[%s5753_s19 + $0x38] sm:$0xff]  ;;  %s8590_s27 = smov 31   ;;  %s8591_s14 = smov 125   ;;  %vm900_vm15 = vcmp.lt.s32.totalorder %v5904_v15, 32 }
  0x28   : > { %4920 = vrot.lane.b32.xlu1 %v5766_v3, %s8465_s20  ;;  %4910 = vrot.lane.b32.xlu0 %v5766_v3, %s8463_s26  ;;  %v5154_v13 = vpack.i.bf16 %v5876_v10, %v5873_v9  ;;  %s8592_s21 = smov 126   ;;  %s8593_s24 = smov 28   ;;  %v6015_v54 = vpack.i.bf16 %v5873_v9, %v5811_v7 }
  0x29   : > { %s8594_s12 = smov 29   ;;  %s8598_s13 = smov 93  }
  0x2b   : > { %v5881_v11 = vld [vmem:[%s8584_s1] sm:$0xff]  ;;  %s8589_s1 = smov 30  }
  0x2c   : > { %4925 = vrot.lane.b32.xlu1 %v5766_v3, %s8469_s28  ;;  %4915 = vrot.lane.b32.xlu0 %v5777_v5, %s8463_s26  ;;  %v5885_v12 = vcombine.high %v5881_v11, %v5881_v11 }
  0x2e   : > { %4264 = vmatprep.mubr.msk.bf16.mxu0 %vm1206_vm0, %v5885_v12  ;;  %4265 = vmatprep.mubr.msk.bf16.mxu1 %vm1206_vm0, %v5885_v12 }
  0x30   : > { %4935 = vrot.lane.b32.xlu1 %v5777_v5, %s8469_s28  ;;  %4930 = vrot.lane.b32.xlu0 %v5777_v5, %s8465_s20 }
  0x34   : > { %4945 = vrot.lane.b32.xlu1 %v5766_v3, %s8455_s29  ;;  %4940 = vrot.lane.b32.xlu0 %v5766_v3, %s8472_s15 }
  0x38   : > { %4955 = vrot.lane.b32.xlu1 %v5777_v5, %s8455_s29  ;;  %4950 = vrot.lane.b32.xlu0 %v5777_v5, %s8472_s15  ;;  %s8484_s29 = smov 93  }
  0x3c   : > { %4965 = vrot.lane.b32.xlu1 %v5766_v3, %s8457_s16  ;;  %4960 = vrot.lane.b32.xlu0 %v5766_v3, %s8459_s17 }
  0x40   : > { %4975 = vrot.lane.b32.xlu1 %v5777_v5, %s8457_s16  ;;  %4970 = vrot.lane.b32.xlu0 %v5777_v5, %s8459_s17  ;;  %s8480_s16 = smov 64   ;;  %s8467_s17 = smov 63  }
  0x44   : > { %4985 = vrot.lane.b32.xlu1 %v5766_v3, %s8461_s18  ;;  %4980 = vrot.lane.b32.xlu0 %v5766_v3, %s8484_s29 }
  0x48   : > { %4995 = vrot.lane.b32.xlu1 %v5777_v5, %s8461_s18  ;;  %4990 = vrot.lane.b32.xlu0 %v5777_v5, %s8484_s29  ;;  %s8470_s18 = smov 62  }
  0x4c   : > { %5005 = vrot.lane.b32.xlu1 %v5766_v3, %s8480_s16  ;;  %5000 = vrot.lane.b32.xlu0 %v4999_v8, %s8463_s26  ;;  %s8474_s26 = smov 61  }
  0x50   : > { %5015 = vrot.lane.b32.xlu1 %v5777_v5, %s8480_s16  ;;  %5010 = vrot.lane.b32.xlu0 %v5766_v3, %s8467_s17  ;;  %s8580_s16 = smov 92  }
  0x54   : > { %5025 = vrot.lane.b32.xlu1 %v4999_v8, %s8465_s20  ;;  %5020 = vrot.lane.b32.xlu0 %v5777_v5, %s8467_s17  ;;  %s8476_s20 = smov 60   ;;  %s8577_s17 = smov 96  }
  0x58   : > { %5035 = vrot.lane.b32.xlu1 %v5766_v3, %s8470_s18  ;;  %5030 = vrot.lane.b32.xlu0 %v4999_v8, %s8469_s28  ;;  %s8478_s28 = smov 32  }
  0x5c   : > { %5045 = vrot.lane.b32.xlu1 %v5777_v5, %s8470_s18  ;;  %5040 = vrot.lane.b32.xlu0 %v5766_v3, %s8474_s26  ;;  %s8578_s18 = smov 95  }
  0x60   : > { %5055 = vrot.lane.b32.xlu1 %v4999_v8, %s8472_s15  ;;  %5050 = vrot.lane.b32.xlu0 %v5777_v5, %s8474_s26  ;;  %s8482_s15 = smov 31   ;;  %s8579_s26 = smov 94  }
  0x64   : > { %5065 = vrot.lane.b32.xlu1 %v5766_v3, %s8476_s20  ;;  %5060 = vrot.lane.b32.xlu0 %v4999_v8, %s8577_s17 }
  0x68   : > { %5075 = vrot.lane.b32.xlu1 %v5777_v5, %s8476_s20  ;;  %5070 = vrot.lane.b32.xlu0 %v5766_v3, %s8478_s28  ;;  %s8486_s20 = smov 30  }
  0x6c   : > { %5085 = vrot.lane.b32.xlu1 %v4999_v8, %s8578_s18  ;;  %5080 = vrot.lane.b32.xlu0 %v5777_v5, %s8478_s28  ;;  %s8488_s28 = smov 29  }
  0x70   : > { %5095 = vrot.lane.b32.xlu1 %v5766_v3, %s8482_s15  ;;  %5090 = vrot.lane.b32.xlu0 %v4999_v8, %s8579_s26 }
  0x74   : > { %5105 = vrot.lane.b32.xlu1 %v5777_v5, %s8482_s15  ;;  %5100 = vrot.lane.b32.xlu0 %v5766_v3, %s8486_s20  ;;  %s8491_s15 = smov 28  }
  0x78   : > { %5115 = vrot.lane.b32.xlu1 %v4999_v8, %s8484_s29  ;;  %5110 = vrot.lane.b32.xlu0 %v5777_v5, %s8486_s20  ;;  %s8582_s29 = smov 62   ;;  %s8583_s20 = smov 63  }
  0x7c   : > { %5125 = vrot.lane.b32.xlu1 %v5766_v3, %s8488_s28  ;;  %5120 = vrot.lane.b32.xlu0 %v4999_v8, %s8580_s16 }
  0x80   : > { %5135 = vrot.lane.b32.xlu1 %v5777_v5, %s8488_s28  ;;  %5130 = vrot.lane.b32.xlu0 %v5766_v3, %s8491_s15  ;;  %s8588_s28 = smov 32  }
  0x84   : > { %5145 = vrot.lane.b32.xlu1 %v4999_v8, %s8581_s0  ;;  %5140 = vrot.lane.b32.xlu0 %v5777_v5, %s8491_s15  ;;  %s8586_s15 = smov 61  }
  0x88   : > { %801 = vrot.lane.b32.xlu1 %v5804_v6, %s8582_s29  ;;  %5150 = vrot.lane.b32.xlu0 %v4999_v8, %s8583_s20 }
  0x8c   : > { %867 = vrot.lane.b32.xlu1 %v5804_v6, %s8585_s23  ;;  %826 = vrot.lane.b32.xlu0 %v5804_v6, %s8586_s15 }
  0x90   : > { %5155 = vrot.lane.b32.xlu1 %v5154_v13, %s8587_s30  ;;  %892 = vrot.lane.b32.xlu0 %v5804_v6, %s8588_s28 }
  0x94   : > { %958 = vrot.lane.b32.xlu1 %v5804_v6, %s8589_s1  ;;  %933 = vrot.lane.b32.xlu0 %v5804_v6, %s8590_s27 }
  0x98   : > { %5165 = vrot.lane.b32.xlu1 %v5154_v13, %s8591_s14  ;;  %5160 = vrot.lane.b32.xlu0 %v5154_v13, %s8592_s21  ;;  %s8595_s14 = smov 124  }
  0x9a   : > { %v5908_v16 = vpop.permute.xlu1 %4920  ;;  %v5910_v17 = vpop.permute.xlu0 %4910 }
  0x9b   : > { %v4913_v18 = vunpack.i.h.bf16 %v5910_v17  ;;  %v4912_v19 = vunpack.i.l.bf16 %v5910_v17  ;;  %v4923_v20 = vunpack.i.h.bf16 %v5908_v16  ;;  %v4922_v21 = vunpack.i.l.bf16 %v5908_v16 }
  0x9c   : > { %1024 = vrot.lane.b32.xlu1 %v5804_v6, %s8593_s24  ;;  %999 = vrot.lane.b32.xlu0 %v5804_v6, %s8594_s12 }
  0x9d   : > { %v444_v22 = vsel %vm438_vm1, %v4912_v19, %v4913_v18  ;;  %v485_v30 = vsel %vm479_vm2, %v4922_v21, %v4923_v20 }
  0x9e   : > { %v5925_v23 = vpop.permute.xlu1 %4925  ;;  %v5927_v24 = vpop.permute.xlu0 %4915  ;;  %v5930_v25 = vpack.c.bf16 %v444_v22, %v5756_v0 }
  0x9f   : > { %v4928_v26 = vunpack.i.h.bf16 %v5925_v23  ;;  %v4927_v27 = vunpack.i.l.bf16 %v5925_v23  ;;  %v8511_v28 = vunpack.i.l.bf16 %v5927_v24 }
  0xa0   : > { %1210 = vmatprep.subr.bf16.mxu0 %v5930_v25  ;;  %5175 = vrot.lane.b32.xlu1 %v5154_v13, %s8577_s17 }
  0xa1   : > { %5170 = vrot.lane.b32.xlu0 %v5154_v13, %s8595_s14  ;;  %v445_v29 = vsel %vm438_vm1, %v8511_v28, %v4912_v19  ;;  %v510_v31 = vsel %vm504_vm3, %v4927_v27, %v4928_v26 }
  0xa2   : > { %v5952_v32 = vpop.permute.xlu1 %4935  ;;  %v5954_v33 = vpop.permute.xlu0 %4930  ;;  %v5957_v34 = vpack.c.bf16 %v445_v29, %v5762_v2  ;;  %v5959_v35 = vpack.c.bf16 %v510_v31, %v485_v30 }
  0xa3   : > { %v8507_v36 = vunpack.i.l.bf16 %v5952_v32  ;;  %v8508_v37 = vunpack.i.l.bf16 %v5954_v33 }
  0xa4   : > { %8596 = vst [vmem:[#allocation14_spill] sm:$0xff] %v5957_v34  ;;  %632 = vrot.lane.b32.xlu1 %v5873_v9, %s8579_s26  ;;  %1211 = vmatpush1.bf16.msra.mxu0 %v5957_v34 }
  0xa5   : > { %607 = vrot.lane.b32.xlu0 %v5873_v9, %s8578_s18  ;;  %1212 = vmatprep.subr.bf16.mxu0 %v5959_v35  ;;  %v486_v38 = vsel %vm479_vm2, %v8508_v37, %v4922_v21  ;;  %v511_v39 = vsel %vm504_vm3, %v8507_v36, %v4927_v27 }
  0xa6   : > { %v5977_v40 = vpop.permute.xlu1 %4945  ;;  %v5979_v41 = vpop.permute.xlu0 %4940  ;;  %v5981_v42 = vpack.c.bf16 %v511_v39, %v486_v38 }
  0xa7   : > { %v4948_v43 = vunpack.i.h.bf16 %v5977_v40  ;;  %v4947_v44 = vunpack.i.l.bf16 %v5977_v40  ;;  %v4943_v45 = vunpack.i.h.bf16 %v5979_v41  ;;  %v4942_v46 = vunpack.i.l.bf16 %v5979_v41 }
  0xa8   : > { %8597 = vst [vmem:[#allocation15_spill] sm:$0xff] %v5981_v42  ;;  %698 = vrot.lane.b32.xlu1 %v5873_v9, %s8580_s16  ;;  %1213 = vmatpush1.bf16.msra.mxu0 %v5981_v42 }
  0xa9   : > { %673 = vrot.lane.b32.xlu0 %v5873_v9, %s8598_s13  ;;  %v5998_v47 = vsel %vm8532_vm4, %v4942_v46, %v4943_v45  ;;  %v576_v48 = vsel %vm8533_vm5, %v4947_v44, %v4948_v43 }
  0xaa   : > { %v6004_v49 = vpop.permute.xlu1 %4955  ;;  %v6006_v50 = vpop.permute.xlu0 %4950  ;;  %v580_v51 = vpack.c.bf16 %v576_v48, %v5998_v47 }
  0xab   : > { %v8505_v52 = vunpack.i.l.bf16 %v6004_v49  ;;  %v8506_v53 = vunpack.i.l.bf16 %v6006_v50 }
  0xac   : > { %764 = vrot.lane.b32.xlu1 %v5873_v9, %s8583_s20  ;;  %1214 = vmatprep.subr.bf16.mxu0 %v580_v51 }
  0xad   : > { %739 = vrot.lane.b32.xlu0 %v5873_v9, %s8581_s0  ;;  %v6023_v55 = vsel %vm8532_vm4, %v8506_v53, %v4942_v46  ;;  %v577_v56 = vsel %vm8533_vm5, %v8505_v52, %v4947_v44 }
  0xae   : > { %8599 = vst [vmem:[#allocation16_spill] sm:$0xff] %v6023_v55  ;;  %v6029_v57 = vpop.permute.xlu1 %4965  ;;  %v6031_v58 = vpop.permute.xlu0 %4960  ;;  %v579_v59 = vpack.c.bf16 %v577_v56, %v6023_v55 }
  0xaf   : > { %v8527_v60 = vunpack.i.h.bf16 %v6029_v57  ;;  %v4967_v61 = vunpack.i.l.bf16 %v6029_v57  ;;  %v8528_v62 = vunpack.i.h.bf16 %v6031_v58  ;;  %v4962_v63 = vunpack.i.l.bf16 %v6031_v58 }
  0xb0   : > { %5185 = vrot.lane.b32.xlu1 %v6015_v54, %s8586_s15  ;;  %1215 = vmatpush1.bf16.msra.mxu0 %v579_v59  ;;  %v4918_v59 = vunpack.i.h.bf16 %v5927_v24 }
  0xb1   : > { %5180 = vrot.lane.b32.xlu0 %v6015_v54, %s8582_s29  ;;  %v617_v0 = vsel %vm8542_vm6, %v4962_v63, %v8528_v62  ;;  %v642_v2 = vsel %vm8543_vm7, %v4967_v61, %v8527_v60 }
  0xb2   : > { %v6052_v3 = vpop.permute.xlu1 %4975  ;;  %v6054_v5 = vpop.permute.xlu0 %4970  ;;  %v646_v6 = vpack.c.bf16 %v642_v2, %v617_v0 }
  0xb3   : > { %8600 = vst [vmem:[#allocation17_spill] sm:$0xff] %v6054_v5  ;;  %v8504_v7 = vunpack.i.l.bf16 %v6052_v3  ;;  %v8503_v8 = vunpack.i.l.bf16 %v6054_v5 }
  0xb4   : > { %5195 = vrot.lane.b32.xlu1 %v6015_v54, %s8588_s28  ;;  %1216 = vmatprep.subr.bf16.mxu0 %v646_v6 }
  0xb5   : > { %5190 = vrot.lane.b32.xlu0 %v6015_v54, %s8585_s23  ;;  %v618_v13 = vsel %vm8542_vm6, %v8503_v8, %v4962_v63  ;;  %v643_v14 = vsel %vm8543_vm7, %v8504_v7, %v4967_v61 }
  0xb6   : > { %v6070_v19 = vpop.permute.xlu1 %4985  ;;  %v6072_v21 = vpop.permute.xlu0 %4980  ;;  %v645_v22 = vpack.c.bf16 %v643_v14, %v618_v13  ;;  %v443_v14 = vsel %vm438_vm1, %v4913_v18, %v4918_v59 }
  0xb7   : > { %v8524_v27 = vunpack.i.h.bf16 %v6070_v19  ;;  %v4987_v29 = vunpack.i.l.bf16 %v6070_v19  ;;  %v8526_v30 = vunpack.i.h.bf16 %v6072_v21  ;;  %v4982_v31 = vunpack.i.l.bf16 %v6072_v21 }
  0xb8   : > { %634 = vrot.lane.b32.xlu1 %v5876_v10, %s8579_s26  ;;  %1217 = vmatpush1.bf16.msra.mxu0 %v645_v22 }
  0xb9   : > { %609 = vrot.lane.b32.xlu0 %v5876_v10, %s8578_s18  ;;  %v683_v38 = vsel %vm677_vm8, %v4982_v31, %v8526_v30  ;;  %v708_v39 = vsel %vm702_vm9, %v4987_v29, %v8524_v27  ;;  %v8606_v27 = vunpack.i.h.bf16 %v6031_v58  ;;  %s404_s18 = sand.u32 1, %s5597_s22  }
  0xba   : > { %v6092_v44 = vpop.permute.xlu1 %4995  ;;  %v6094_v46 = vpop.permute.xlu0 %4990  ;;  %v712_v48 = vpack.c.bf16 %v708_v39, %v683_v38 }
  0xbb   : > { %8601 = vst [vmem:[#allocation18_spill] sm:$0xff] %v6092_v44  ;;  %8602 = vst [vmem:[#allocation19_spill] sm:$0xff] %v6094_v46  ;;  %v8502_v51 = vunpack.i.l.bf16 %v6092_v44  ;;  %v8501_v56 = vunpack.i.l.bf16 %v6094_v46 }
  0xbc   : > { %5205 = vrot.lane.b32.xlu1 %v6015_v54, %s8589_s1  ;;  %1218 = vmatprep.subr.bf16.mxu0 %v712_v48 }
  0xbd   : > { %5200 = vrot.lane.b32.xlu0 %v6015_v54, %s8590_s27  ;;  %v684_v61 = vsel %vm677_vm8, %v8501_v56, %v4982_v31  ;;  %v709_v63 = vsel %vm702_vm9, %v8502_v51, %v4987_v29  ;;  %v4938_v56 = vunpack.i.h.bf16 %v5952_v32 }
  0xbe   : > { %v6111_v0 = vpop.permute.xlu1 %5005  ;;  %v6113_v2 = vpop.permute.xlu0 %5000  ;;  %v711_v6 = vpack.c.bf16 %v709_v63, %v684_v61  ;;  %v6142_v61 = vpack.c.bf16 %v443_v14, %v5759_v1 }
  0xbf   : > { %v8514_v13 = vunpack.i.l.bf16 %v6113_v2  ;;  %v8521_v22 = vunpack.i.h.bf16 %v6111_v0  ;;  %v5007_v29 = vunpack.i.l.bf16 %v6111_v0  ;;  %v509_v16 = vsel %vm504_vm3, %v4928_v26, %v4938_v56 }
  0xc0   : > { %700 = vrot.lane.b32.xlu1 %v5876_v10, %s8580_s16  ;;  %1219 = vmatpush1.bf16.msra.mxu0 %v711_v6 }
  0xc1   : > { %675 = vrot.lane.b32.xlu0 %v5876_v10, %s8598_s13  ;;  %v442_v31 = vsel %vm438_vm1, %v4918_v59, %v8514_v13  ;;  %s5630_s13 = smov 58  }
  0xc2   : > { %v6130_v38 = vpop.permute.xlu1 %5015  ;;  %v6132_v39 = vpop.permute.xlu0 %5010  ;;  %v6135_v17 = vpack.c.bf16 %v442_v31, %v5769_v4  ;;  %v749_v4 = vsel %vm743_vm10, %v5007_v29, %v8521_v22  ;;  %v4933_v31 = vunpack.i.h.bf16 %v5954_v33 }
  0xc3   : > { %v8522_v18 = vunpack.i.h.bf16 %v6132_v39  ;;  %v5012_v48 = vunpack.i.l.bf16 %v6132_v39  ;;  %v8509_v59 = vunpack.i.l.bf16 %v6130_v38 }
  0xc4   : > { %5215 = vrot.lane.b32.xlu1 %v6015_v54, %s8593_s24  ;;  %1251 = vmatprep.subr.bf16.mxu1 %v6135_v17  ;;  %v484_v37 = vsel %vm479_vm2, %v4923_v20, %v4933_v31 }
  0xc5   : > { %5210 = vrot.lane.b32.xlu0 %v6015_v54, %s8594_s12  ;;  %1252 = vmatpush1.bf16.msra.mxu1 %v6142_v61  ;;  %v774_v1 = vsel %vm768_vm11, %v5012_v48, %v8522_v18  ;;  %v6224_v28 = vpack.c.bf16 %v509_v16, %v484_v37 }
  0xc6   : > { %v6159_v63 = vpop.permute.xlu1 %5025  ;;  %v6161_v6 = vpop.permute.xlu0 %5020  ;;  %v778_v14 = vpack.c.bf16 %v774_v1, %v749_v4  ;;  %v750_v4 = vsel %vm743_vm10, %v8509_v59, %v5007_v29 }
  0xc7   : > { %8603 = vst [vmem:[#allocation20_spill] sm:$0xff] %v6161_v6  ;;  %v8510_v54 = vunpack.i.l.bf16 %v6161_v6  ;;  %v8513_v51 = vunpack.i.h.bf16 %v6159_v63  ;;  %v5027_v8 = vunpack.i.l.bf16 %v6159_v63 }
  0xc8   : > { %766 = vrot.lane.b32.xlu1 %v5876_v10, %s8583_s20  ;;  %1220 = vmatprep.subr.bf16.mxu0 %v778_v14 }
  0xc9   : > { %741 = vrot.lane.b32.xlu0 %v5876_v10, %s8581_s0  ;;  %v775_v1 = vsel %vm768_vm11, %v8510_v54, %v5012_v48  ;;  %v482_v29 = vsel %vm479_vm2, %v5027_v8, %v8513_v51  ;;  %v483_v48 = vsel %vm479_vm2, %v4933_v31, %v5027_v8 }
  0xca   : > { %v6180_v7 = vpop.permute.xlu1 %5035  ;;  %v6182_v52 = vpop.permute.xlu0 %5030  ;;  %v777_v53 = vpack.c.bf16 %v775_v1, %v750_v4 }
  0xcb   : > { %v8512_v14 = vunpack.i.h.bf16 %v6182_v52  ;;  %v5032_v36 = vunpack.i.l.bf16 %v6182_v52  ;;  %v8515_v4 = vunpack.i.h.bf16 %v6180_v7  ;;  %v5037_v20 = vunpack.i.l.bf16 %v6180_v7 }
  0xcc   : > { %832 = vrot.lane.b32.xlu1 %v5876_v10, %s8586_s15  ;;  %1221 = vmatpush1.bf16.msra.mxu0 %v777_v53  ;;  %s5634_s15 = smov [#allocation4]  }
  0xcd   : > { %v507_v1 = vsel %vm504_vm3, %v5032_v36, %v8512_v14  ;;  %807 = vrot.lane.b32.xlu0 %v5876_v10, %s8582_s29  ;;  %v508_v53 = vsel %vm504_vm3, %v4938_v56, %v5032_v36  ;;  %v815_v56 = vsel %vm809_vm12, %v5037_v20, %v8515_v4  ;;  %v4953_v14 = vunpack.i.h.bf16 %v6006_v50 }
  0xce   : > { %v6212_v8 = vpop.permute.xlu1 %5045  ;;  %v6214_v23 = vpop.permute.xlu0 %5040  ;;  %v6216_v26 = vpack.c.bf16 %v508_v53, %v483_v48  ;;  %v6220_v31 = vpack.c.bf16 %v507_v1, %v482_v29  ;;  %v4958_v53 = vunpack.i.h.bf16 %v6004_v49 }
  0xcf   : > { %8604 = vst [vmem:[#allocation21_spill] sm:$0xff] %v6212_v8  ;;  %v8516_v59 = vunpack.i.h.bf16 %v6214_v23  ;;  %v5042_v54 = vunpack.i.l.bf16 %v6214_v23  ;;  %v8517_v36 = vunpack.i.l.bf16 %v6212_v8 }
  0xd0   : > { %898 = vrot.lane.b32.xlu1 %v5876_v10, %s8588_s28  ;;  %1253 = vmatprep.subr.bf16.mxu1 %v6216_v26 }
  0xd1   : > { %873 = vrot.lane.b32.xlu0 %v5876_v10, %s8585_s23  ;;  %1254 = vmatpush1.bf16.msra.mxu1 %v6224_v28  ;;  %v840_v37 = vsel %vm834_vm13, %v5042_v54, %v8516_v59 }
  0xd2   : > { %v6241_v29 = vpop.permute.xlu1 %5055  ;;  %v6243_v48 = vpop.permute.xlu0 %5050  ;;  %v844_v16 = vpack.c.bf16 %v840_v37, %v815_v56  ;;  %v816_v56 = vsel %vm809_vm12, %v8517_v36, %v5037_v20  ;;  %v6272_v20 = vsel %vm8532_vm4, %v4943_v45, %v4953_v14 }
  0xd3   : > { %8605 = vst [vmem:[#allocation22_spill] sm:$0xff] %v6243_v48  ;;  %v8518_v1 = vunpack.i.l.bf16 %v6243_v48  ;;  %v8519_v51 = vunpack.i.l.bf16 %v6241_v29 }
  0xd4   : > { %964 = vrot.lane.b32.xlu1 %v5876_v10, %s8589_s1  ;;  %1222 = vmatprep.subr.bf16.mxu0 %v844_v16  ;;  %s4462_s1 = sshll.u32 %s5721_s25, 4  ;;  %s4189_s25 = scalar_lea.sflag [#allocation5], %s404_s18 }
  0xd5   : > { %939 = vrot.lane.b32.xlu0 %v5876_v10, %s8590_s27  ;;  %v841_v37 = vsel %vm834_vm13, %v8518_v1, %v5042_v54  ;;  %v575_v54 = vsel %vm8533_vm5, %v4948_v43, %v4958_v53  ;;  %v6286_v41 = vsel %vm8532_vm4, %v4953_v14, %v8519_v51  ;;  %vm8556_vm4 = vcmp.lt.s32.totalorder %v5904_v15, 31  ;;  %s5629_s27 = smov 120  }
  0xd6   : > { %v6261_v13 = vpop.permute.xlu1 %5065  ;;  %v6263_v4 = vpop.permute.xlu0 %5060  ;;  %v843_v16 = vpack.c.bf16 %v841_v37, %v816_v56  ;;  %v581_v1 = vpack.c.bf16 %v575_v54, %v6272_v20 }
  0xd7   : > { %v8520_v59 = vunpack.i.l.bf16 %v6263_v4  ;;  %v8523_v36 = vunpack.i.h.bf16 %v6261_v13  ;;  %v5067_v56 = vunpack.i.l.bf16 %v6261_v13 }
  0xd8   : > { %1030 = vrot.lane.b32.xlu1 %v5876_v10, %s8593_s24  ;;  %1223 = vmatpush1.bf16.msra.mxu0 %v843_v16  ;;  %s5628_s24 = smov 122  }
  0xd9   : > { %1005 = vrot.lane.b32.xlu0 %v5876_v10, %s8594_s12  ;;  %v574_v40 = vsel %vm8533_vm5, %v4958_v53, %v8520_v59  ;;  %v881_v53 = vsel %vm875_vm14, %v5067_v56, %v8523_v36  ;;  %v4973_v36 = vunpack.i.h.bf16 %v6054_v5  ;;  %vm966_vm5 = vcmp.lt.s32.totalorder %v5904_v15, 30  ;;  %s405_s12 = scalar_lea.vmem [#allocation4], %s404_s18 }
  0xda   : > { %v6292_v45 = vpop.permute.xlu1 %5075  ;;  %v6294_v43 = vpop.permute.xlu0 %5070  ;;  %v582_v37 = vpack.c.bf16 %v574_v40, %v6286_v41  ;;  %v8613_v5 = vunpack.i.h.bf16 %v6132_v39 }
  0xdb   : > { %v8525_v16 = vunpack.i.h.bf16 %v6294_v43  ;;  %v5072_v14 = vunpack.i.l.bf16 %v6294_v43  ;;  %v8529_v51 = vunpack.i.l.bf16 %v6292_v45 }
  0xdc   : > { %1255 = vmatprep.subr.bf16.mxu1 %v582_v37  ;;  %v4978_v37 = vunpack.i.h.bf16 %v6052_v3 }
  0xdd   : > { %1256 = vmatpush1.bf16.msra.mxu1 %v581_v1  ;;  %v906_v40 = vsel %vm900_vm15, %v5072_v14, %v8525_v16  ;;  %v1194_v1 = vld [vmem:[%s8444_s2] sm:$0xff]  ;;  %v882_v16 = vsel %vm875_vm14, %v8529_v51, %v5067_v56  ;;  %v616_v56 = vsel %vm8542_vm6, %v8606_v27, %v4973_v36  ;;  %v8607_v51 = vunpack.i.h.bf16 %v6029_v57 }
  0xde   : > { %v6311_v59 = vpop.permute.xlu1 %5085  ;;  %v6313_v22 = vpop.permute.xlu0 %5080  ;;  %v910_v18 = vpack.c.bf16 %v906_v40, %v881_v53  ;;  %v5626_v40 = vmov 0  }
  0xdf   : > { %v8530_v54 = vunpack.i.l.bf16 %v6313_v22  ;;  %5219 = vset.pattern.permute.xlu0 %v5626_v40  ;;  %5345 = vset.pattern.permute.xlu1 %v5626_v40 }
  0xe0   : > { %1224 = vmatprep.subr.bf16.mxu0 %v910_v18  ;;  %1197 = vperm.xlu0 %5219, %v1194_v1  }
  0xe1   : > { %v907_v53 = vsel %vm900_vm15, %v8530_v54, %v5072_v14  ;;  %v641_v14 = vsel %vm8543_vm7, %v8607_v51, %v4978_v37 }
  0xe2   : > { %v6330_v30 = vpop.permute.xlu1 %5095  ;;  %v6332_v60 = vpop.permute.xlu0 %5090  ;;  %v909_v62 = vpack.c.bf16 %v907_v53, %v882_v16  ;;  %v8608_v16 = vunpack.i.l.bf16 %v6311_v59  ;;  %v647_v40 = vpack.c.bf16 %v641_v14, %v616_v56  ;;  %v4998_v14 = vunpack.i.h.bf16 %v6092_v44 }
  0xe3   : > { %v8534_v18 = vunpack.i.l.bf16 %v6332_v60  ;;  %v8535_v54 = vunpack.i.h.bf16 %v6330_v30  ;;  %v5097_v55 = vunpack.i.l.bf16 %v6330_v30 }
  0xe4   : > { %1225 = vmatpush1.bf16.msra.mxu0 %v909_v62  ;;  %v615_v1 = vsel %vm8542_vm6, %v4973_v36, %v8608_v16  ;;  %vm8554_vm6 = vcmp.lt.s32.totalorder %v5904_v15, 29 }
  0xe5   : > { %v640_v58 = vsel %vm8543_vm7, %v4978_v37, %v8534_v18  ;;  %v947_v37 = vsel %vm8556_vm4, %v5097_v55, %v8535_v54  ;;  %vm8555_vm7 = vcmp.lt.s32.totalorder %v5904_v15, 28 }
  0xe6   : > { %v6353_v62 = vpop.permute.xlu1 %5105  ;;  %v6355_v57 = vpop.permute.xlu0 %5100  ;;  %v648_v27 = vpack.c.bf16 %v640_v58, %v615_v1 }
  0xe7   : > { %v8536_v51 = vunpack.i.h.bf16 %v6355_v57  ;;  %v5102_v53 = vunpack.i.l.bf16 %v6355_v57  ;;  %v8539_v36 = vunpack.i.l.bf16 %v6353_v62 }
  0xe8   : > { %1257 = vmatprep.subr.bf16.mxu1 %v648_v27  ;;  %v4993_v27 = vunpack.i.h.bf16 %v6094_v46 }
  0xe9   : > { %1258 = vmatpush1.bf16.msra.mxu1 %v647_v40  ;;  %v972_v16 = vsel %vm966_vm5, %v5102_v53, %v8536_v51  ;;  %v948_v54 = vsel %vm8556_vm4, %v8539_v36, %v5097_v55  ;;  %v8610_v55 = vunpack.i.h.bf16 %v6070_v19 }
  0xea   : > { %v6370_v1 = vpop.permute.xlu1 %5115  ;;  %v6372_v58 = vpop.permute.xlu0 %5110  ;;  %v976_v18 = vpack.c.bf16 %v972_v16, %v947_v37 }
  0xeb   : > { %v8540_v56 = vunpack.i.l.bf16 %v6372_v58  ;;  %v707_v36 = vsel %vm702_vm9, %v8610_v55, %v4998_v14  ;;  %v8611_v46 = vunpack.i.l.bf16 %v6370_v1 }
  0xec   : > { %1226 = vmatprep.subr.bf16.mxu0 %v976_v18  ;;  %v8609_v18 = vunpack.i.h.bf16 %v6072_v21 }
  0xed   : > { %v973_v51 = vsel %vm966_vm5, %v8540_v56, %v5102_v53 }
  0xee   : > { %v6386_v37 = vpop.permute.xlu1 %5125  ;;  %v6388_v16 = vpop.permute.xlu0 %5120  ;;  %v975_v42 = vpack.c.bf16 %v973_v51, %v948_v54  ;;  %v682_v40 = vsel %vm677_vm8, %v8609_v18, %v4993_v27  ;;  %v681_v54 = vsel %vm677_vm8, %v4993_v27, %v8611_v46 }
  0xef   : > { %v8544_v34 = vunpack.i.l.bf16 %v6388_v16  ;;  %v5127_v56 = vunpack.i.l.bf16 %v6386_v37  ;;  %v713_v53 = vpack.c.bf16 %v707_v36, %v682_v40  ;;  %v5023_v40 = vunpack.i.h.bf16 %v6161_v6 }
  0xf0   : > { %1227 = vmatpush1.bf16.msra.mxu0 %v975_v42 }
  0xf1   : > { %v706_v42 = vsel %vm702_vm9, %v4998_v14, %v8544_v34  ;;  %v8612_v14 = vunpack.i.h.bf16 %v6386_v37 }
  0xf2   : > { %v6409_v21 = vpop.permute.xlu1 %5135  ;;  %v6411_v19 = vpop.permute.xlu0 %5130  ;;  %v714_v51 = vpack.c.bf16 %v706_v42, %v681_v54 }
  0xf3   : > { %v8546_v18 = vunpack.i.h.bf16 %v6411_v19  ;;  %v5132_v55 = vunpack.i.l.bf16 %v6411_v19  ;;  %v8549_v46 = vunpack.i.l.bf16 %v6409_v21  ;;  %v1013_v27 = vsel %vm8554_vm6, %v5127_v56, %v8612_v14 }
  0xf4   : > { %1259 = vmatprep.subr.bf16.mxu1 %v714_v51 }
  0xf5   : > { %1260 = vmatpush1.bf16.msra.mxu1 %v713_v53  ;;  %v1038_v54 = vsel %vm8555_vm7, %v5132_v55, %v8546_v18  ;;  %v1014_v51 = vsel %vm8554_vm6, %v8549_v46, %v5127_v56  ;;  %v5018_v18 = vunpack.i.h.bf16 %v6130_v38  ;;  %v5053_v53 = vunpack.i.h.bf16 %v6243_v48 }
  0xf6   : > { %v6426_v42 = vpop.permute.xlu1 %5145  ;;  %v6428_v34 = vpop.permute.xlu0 %5140  ;;  %v1042_v44 = vpack.c.bf16 %v1038_v54, %v1013_v27  ;;  %v773_v56 = vsel %vm768_vm11, %v8613_v5, %v5023_v40  ;;  %v5048_v46 = vunpack.i.h.bf16 %v6212_v8  ;;  %v8615_v5 = vunpack.i.h.bf16 %v6111_v0 }
  0xf7   : > { %v8550_v36 = vunpack.i.l.bf16 %v6428_v34  ;;  %v8616_v0 = vunpack.i.h.bf16 %v6214_v23  ;;  %v8617_v23 = vunpack.i.h.bf16 %v6180_v7 }
  0xf8   : > { %1228 = vmatprep.subr.bf16.mxu0 %v1042_v44 }
  0xf9   : > { %v1039_v14 = vsel %vm8555_vm7, %v8550_v36, %v5132_v55  ;;  %v8614_v55 = vunpack.i.l.bf16 %v6426_v42 }
  0xfa   : > { %v6442_v27 = vpop.permute.xlu1 %801  ;;  %v6444_v54 = vpop.permute.xlu0 %5150  ;;  %v1041_v6 = vpack.c.bf16 %v1039_v14, %v1014_v51 }
  0xfb   : > { %v8553_v44 = vunpack.i.l.bf16 %v6444_v54  ;;  %v747_v36 = vsel %vm743_vm10, %v5018_v18, %v8614_v55  ;;  %v813_v8 = vsel %vm809_vm12, %v5048_v46, %v6442_v27 }
  0xfc   : > { %1229 = vmatpush1.bf16.msra.mxu0 %v1041_v6 }
  0xfd   : > { %1230 = vmatprep.subr.bf16.mxu0 %v6142_v61  ;;  %v772_v51 = vsel %vm768_vm11, %v5023_v40, %v8553_v44  ;;  %v748_v61 = vsel %vm743_vm10, %v8615_v5, %v5018_v18  ;;  %v5083_v40 = vunpack.i.h.bf16 %v6313_v22  ;;  %v839_v18 = vsel %vm834_vm13, %v8616_v0, %v5053_v53 }
  0xfe   : > { %v6462_v6 = vpop.permute.xlu1 %867  ;;  %v6464_v39 = vpop.permute.xlu0 %826  ;;  %v780_v14 = vpack.c.bf16 %v772_v51, %v747_v36  ;;  %v779_v48 = vpack.c.bf16 %v773_v56, %v748_v61  ;;  %v5078_v51 = vunpack.i.h.bf16 %v6292_v45  ;;  %v5003_v5 = vunpack.i.h.bf16 %v6113_v2 }
  0xff   : > { %v838_v55 = vsel %vm834_vm13, %v5053_v53, %v6464_v39  ;;  %v814_v53 = vsel %vm809_vm12, %v8617_v23, %v5048_v46 }
 0x100   : > { %1231 = vmatpush1.bf16.msra.mxu0 %v5930_v25  ;;  %1261 = vmatprep.subr.bf16.mxu1 %v780_v14  ;;  %v846_v36 = vpack.c.bf16 %v838_v55, %v813_v8  ;;  %v5627_v25 = vmov 0.0   ;;  %v845_v61 = vpack.c.bf16 %v839_v18, %v814_v53  ;;  %v5113_v55 = vunpack.i.h.bf16 %v6372_v58 }
 0x101   : > { %1232 = vmatprep.subr.bf16.mxu0 %v6224_v28  ;;  %1262 = vmatpush1.bf16.msra.mxu1 %v779_v48  ;;  %v1074_v8 = vpack.c.bf16 %v5627_v25, %v6272_v20  ;;  %v879_v28 = vsel %vm875_vm14, %v5078_v51, %v6462_v6  ;;  %v8618_v20 = vunpack.i.h.bf16 %v6294_v43  ;;  %v8619_v43 = vunpack.i.h.bf16 %v6261_v13 }
 0x102   : > { %v6485_v44 = vpop.permute.xlu1 %5155  ;;  %v6487_v56 = vpop.permute.xlu0 %892  ;;  %1263 = vmatprep.subr.bf16.mxu1 %v846_v36  ;;  %v5108_v36 = vunpack.i.h.bf16 %v6353_v62 }
 0x103   : > { %v5157_v48 = vunpack.i.l.bf16 %v6485_v44  ;;  %v904_v14 = vsel %vm900_vm15, %v5083_v40, %v6487_v56  ;;  %v905_v46 = vsel %vm900_vm15, %v8618_v20, %v5083_v40  ;;  %v880_v40 = vsel %vm875_vm14, %v8619_v43, %v5078_v51  ;;  %v5542_v43 = vld [vmem:[%s5753_s19 + $0x20] sm:$0xff] }
 0x104   : > { %1233 = vmatpush1.bf16.msra.mxu0 %v5959_v35  ;;  %v912_v7 = vpack.c.bf16 %v904_v14, %v879_v28  ;;  %v1073_v35 = vpack.c.bf16 %v5627_v25, %v5998_v47  ;;  %v6528_v28 = vcombine.low %v5881_v11, %v5881_v11  ;;  %v8620_v14 = vunpack.i.l.bf16 %v6113_v2 }
 0x105   : > { %1234 = vmatprep.subr.bf16.mxu0 %v1074_v8  ;;  %1264 = vmatpush1.bf16.msra.mxu1 %v845_v61  ;;  %v440_v0 = vsel %vm438_vm1, %v5003_v5, %v5157_v48  ;;  %v5541_v8 = vld [vmem:[%s5753_s19 + $0x28] sm:$0xff]  ;;  %v911_v51 = vpack.c.bf16 %v905_v46, %v880_v40  ;;  %v8621_v20 = vunpack.i.h.bf16 %v6355_v57  ;;  %v5143_v2 = vunpack.i.h.bf16 %v6428_v34  ;;  %s5631_s19 = smov 56  }
 0x106   : > { %v6513_v18 = vpop.permute.xlu1 %958  ;;  %v6515_v23 = vpop.permute.xlu0 %933  ;;  %1265 = vmatprep.subr.bf16.mxu1 %v912_v7  ;;  %v6524_v53 = vpack.c.bf16 %v440_v0, %v5541_v8  ;;  %v441_v61 = vsel %vm438_vm1, %v8620_v14, %v5003_v5  ;;  %v8622_v46 = vunpack.i.h.bf16 %v6330_v30  ;;  %v5138_v14 = vunpack.i.h.bf16 %v6409_v21 }
 0x107   : > { %v970_v47 = vsel %vm966_vm5, %v5113_v55, %v6513_v18  ;;  %v945_v13 = vsel %vm8556_vm4, %v5108_v36, %v6515_v23  ;;  %v971_v11 = vsel %vm966_vm5, %v8621_v20, %v5113_v55  ;;  %v451_v8 = vpack.c.bf16 %v441_v61, %v5542_v43 }
 0x108   : > { %1235 = vmatpush1.bf16.msra.mxu0 %v1073_v35  ;;  %v978_v7 = vpack.c.bf16 %v970_v47, %v945_v13  ;;  %v946_v57 = vsel %vm8556_vm4, %v8622_v46, %v5108_v36  ;;  %v8623_v30 = vunpack.i.h.bf16 %v6159_v63  ;;  %v8624_v61 = vunpack.i.h.bf16 %v6182_v52 }
 0x109   : > { %1266 = vmatpush1.bf16.msra.mxu1 %v911_v51  ;;  %1292 = vmatprep.subr.bf16.mxu0 %v6524_v53  ;;  %v977_v40 = vpack.c.bf16 %v971_v11, %v946_v57  ;;  %v8625_v20 = vunpack.i.h.bf16 %v6411_v19  ;;  %v8626_v46 = vunpack.i.h.bf16 %v6386_v37  ;;  %v5063_v19 = vunpack.i.h.bf16 %v6263_v4 }
 0x10a   : > { %v6546_v5 = vpop.permute.xlu1 %5165  ;;  %v6548_v0 = vpop.permute.xlu0 %5160  ;;  %1267 = vmatprep.subr.bf16.mxu1 %v978_v7  ;;  %vm8630_vm4 = vcmp.lt.s32.totalorder %v5904_v15, 124 }
 0x10b   : > { %v8560_v35 = vunpack.i.l.bf16 %v6546_v5  ;;  %v8559_v55 = vunpack.i.l.bf16 %v6548_v0  ;;  %1243 = vmatmul.mubr.bf16.vlgmr.msra.gmra.mrb[0].mxu0 %v6528_v28  ;;  %v1037_v63 = vsel %vm8555_vm7, %v8625_v20, %v5143_v2  ;;  %v1012_v57 = vsel %vm8554_vm6, %v8626_v46, %v5138_v14 }
 0x10c   : > { %1293 = vmatpush1.bf16.msra.mxu0 %v451_v8  ;;  %4266 = vmatprep.mubr.msk.bf16.mxu0 %vm1206_vm0, %v5885_v12  ;;  %v5093_v20 = vunpack.i.h.bf16 %v6332_v60  ;;  %v5158_v46 = vunpack.i.h.bf16 %v6485_v44 }
 0x10d   : > { %1268 = vmatpush1.bf16.msra.mxu1 %v977_v40  ;;  %v481_v36 = vsel %vm479_vm2, %v8623_v30, %v8559_v55  ;;  %v506_v47 = vsel %vm504_vm3, %v8624_v61, %v8560_v35  ;;  %v1043_v40 = vpack.c.bf16 %v1037_v63, %v1012_v57 }
 0x10e   : > { %v6573_v13 = vpop.permute.xlu1 %1024  ;;  %v6575_v51 = vpop.permute.xlu0 %999  ;;  %v6577_v7 = vpack.c.bf16 %v506_v47, %v481_v36 }
 0x10f   : > { %v1036_v11 = vsel %vm8555_vm7, %v5143_v2, %v6573_v13  ;;  %v1011_v52 = vsel %vm8554_vm6, %v5138_v14, %v6575_v51  ;;  %v5058_v2 = vunpack.i.h.bf16 %v6241_v29  ;;  %v8627_v14 = vunpack.i.l.bf16 %v6263_v4 }
 0x110   : > { %1294 = vmatprep.subr.bf16.mxu0 %v6577_v7  ;;  %v1044_v43 = vpack.c.bf16 %v1036_v11, %v1011_v52  ;;  %vm8628_vm6 = vcmp.lt.s32.totalorder %v5904_v15, 96  ;;  %v5088_v11 = vunpack.i.h.bf16 %v6311_v59  ;;  %v8631_v4 = vunpack.i.l.bf16 %v6241_v29 }
 0x111   : > { %1295 = vmatpush1.bf16.msra.mxu0 %v6220_v31  ;;  %v573_v47 = vsel %vm8628_vm6, %v8627_v14, %v5063_v19  ;;  %vm8629_vm7 = vmmov %vm8628_vm6 }
 0x112   : > { %v6596_v30 = vpop.permute.xlu1 %5175  ;;  %1269 = vmatprep.subr.bf16.mxu1 %v1044_v43  ;;  %vm8632_vm6 = vmmov %vm8630_vm4 }
 0x113   : > { %v8558_v36 = vunpack.i.l.bf16 %v6596_v30  ;;  %v6600_v61 = vpop.permute.xlu0 %5170  ;;  %1270 = vmatpush1.bf16.msra.mxu1 %v1043_v40  ;;  %v548_v43 = vsel %vm8632_vm6, %v8631_v4, %v5058_v2 }
 0x114   : > { %v8557_v37 = vunpack.i.l.bf16 %v6600_v61  ;;  %1271 = vmatprep.subr.bf16.mxu1 %v451_v8  ;;  %v583_v29 = vpack.c.bf16 %v573_v47, %v548_v43  ;;  %v1076_v35 = vpack.c.bf16 %v5627_v25, %v548_v43  ;;  %v5168_v47 = vunpack.i.h.bf16 %v6546_v5 }
 0x115   : > { %v572_v63 = vsel %vm8629_vm7, %v5063_v19, %v8558_v36  ;;  %vm8633_vm7 = vcmp.lt.s32.totalorder %v5904_v15, 94 }
 0x116   : > { %v6613_v52 = vpop.permute.xlu1 %632  ;;  %v6619_v8 = vsel %vm8630_vm4, %v5058_v2, %v8557_v37  ;;  %vm8634_vm4 = vcmp.lt.s32.totalorder %v5904_v15, 95  ;;  %v8635_v2 = vunpack.i.l.bf16 %v6332_v60  ;;  %vm8636_vm6 = vmmov %vm8633_vm7  ;;  %v5123_v37 = vunpack.i.h.bf16 %v6388_v16 }
 0x117   : > { %v638_v57 = vsel %vm8633_vm7, %v5093_v20, %v6613_v52  ;;  %v6629_v19 = vpop.permute.xlu0 %607  ;;  %1272 = vmatpush1.bf16.msra.mxu1 %v6135_v17  ;;  %v584_v40 = vpack.c.bf16 %v572_v63, %v6619_v8  ;;  %v5118_v17 = vunpack.i.h.bf16 %v6370_v1  ;;  %v5163_v63 = vunpack.i.h.bf16 %v6548_v0  ;;  %vm8638_vm7 = vmmov %vm8634_vm4 }
 0x118   : > { %v613_v14 = vsel %vm8634_vm4, %v5088_v11, %v6629_v19  ;;  %1273 = vmatprep.subr.bf16.mxu1 %v6220_v31  ;;  %v639_v4 = vsel %vm8636_vm6, %v8635_v2, %v5093_v20  ;;  %v8637_v31 = vunpack.i.l.bf16 %v6311_v59  ;;  %vm8651_vm4 = vcmp.lt.s32.totalorder %v5904_v15, 96 }
 0x119   : > { %1296 = vmatprep.subr.bf16.mxu0 %v584_v40  ;;  %v650_v36 = vpack.c.bf16 %v638_v57, %v613_v14  ;;  %v8639_v40 = vunpack.i.l.bf16 %v5927_v24  ;;  %v1075_v14 = vpack.c.bf16 %v5627_v25, %v6286_v41  ;;  %v5153_v24 = vunpack.i.h.bf16 %v6444_v54  ;;  %vm8653_vm6 = vmmov %vm8651_vm4 }
 0x11a   : > { %1297 = vmatpush1.bf16.msra.mxu0 %v583_v29  ;;  %v6644_v55 = vpop.permute.xlu1 %698  ;;  %v614_v60 = vsel %vm8638_vm7, %v8637_v31, %v5088_v11  ;;  %v8640_v29 = vunpack.i.l.bf16 %v6388_v16  ;;  %v8641_v31 = vunpack.i.l.bf16 %v6370_v1  ;;  %v439_v41 = vsel %vm438_vm1, %v5157_v48, %v5158_v46 }
 0x11b   : > { %v704_v20 = vsel %vm702_vm9, %v5123_v37, %v6644_v55  ;;  %v6655_v57 = vpop.permute.xlu0 %673  ;;  %1298 = vmatprep.subr.bf16.mxu0 %v650_v36  ;;  %1274 = vmatpush1.bf16.msra.mxu1 %v6216_v26  ;;  %v446_v43 = vsel %vm438_vm1, %v5158_v46, %v8639_v40  ;;  %v649_v11 = vpack.c.bf16 %v639_v4, %v614_v60  ;;  %v5148_v26 = vunpack.i.h.bf16 %v6426_v42 }
 0x11c   : > { %v679_v59 = vsel %vm677_vm8, %v5118_v17, %v6655_v57  ;;  %1275 = vmatprep.subr.bf16.mxu1 %v1076_v35  ;;  %v705_v36 = vsel %vm702_vm9, %v8640_v29, %v5123_v37  ;;  %v680_v40 = vsel %vm677_vm8, %v8641_v31, %v5118_v17  ;;  %v6684_v35 = vpack.c.bf16 %v446_v43, %v5876_v10 }
 0x11d   : > { %v716_v2 = vpack.c.bf16 %v704_v20, %v679_v59  ;;  %v8642_v37 = vunpack.i.l.bf16 %v5954_v33  ;;  %v5178_v1 = vunpack.i.h.bf16 %v6596_v30  ;;  %v5173_v17 = vunpack.i.h.bf16 %v6600_v61 }
 0x11e   : > { %1299 = vmatpush1.bf16.msra.mxu0 %v649_v11  ;;  %v6681_v16 = vpop.permute.xlu1 %764  ;;  %v8643_v10 = vunpack.i.l.bf16 %v5952_v32  ;;  %v715_v60 = vpack.c.bf16 %v705_v36, %v680_v40  ;;  %v8644_v20 = vunpack.i.l.bf16 %v6426_v42  ;;  %v8645_v59 = vunpack.i.l.bf16 %v6444_v54 }
 0x11f   : > { %v487_v4 = vsel %vm479_vm2, %v5163_v63, %v8642_v37  ;;  %v770_v44 = vsel %vm768_vm11, %v5153_v24, %v6681_v16  ;;  %v6695_v48 = vpop.permute.xlu0 %739  ;;  %1300 = vmatprep.subr.bf16.mxu0 %v716_v2  ;;  %1276 = vmatpush1.bf16.msra.mxu1 %v1075_v14  ;;  %v6714_v14 = vpack.c.bf16 %v439_v41, %v5873_v9  ;;  %v8646_v29 = vunpack.i.l.bf16 %v6546_v5 }
 0x120   : > { %v512_v33 = vsel %vm504_vm3, %v5168_v47, %v8643_v10  ;;  %v745_v46 = vsel %vm743_vm10, %v5148_v26, %v6695_v48  ;;  %1333 = vmatprep.subr.bf16.mxu1 %v6684_v35  ;;  %v746_v43 = vsel %vm743_vm10, %v8644_v20, %v5148_v26  ;;  %v771_v32 = vsel %vm768_vm11, %v8645_v59, %v5153_v24 }
 0x121   : > { %v782_v11 = vpack.c.bf16 %v770_v44, %v745_v46  ;;  %v505_v2 = vsel %vm504_vm3, %v8646_v29, %v5168_v47  ;;  %v8647_v36 = vunpack.i.l.bf16 %v6548_v0  ;;  %v6727_v54 = vpack.c.bf16 %v512_v33, %v487_v4 }
 0x122   : > { %1301 = vmatpush1.bf16.msra.mxu0 %v715_v60  ;;  %v6724_v26 = vpop.permute.xlu1 %5185  ;;  %1284 = vmatmul.mubr.bf16.vlgmr.msra.gmra.mrb[0].mxu1 %v6528_v28  ;;  %v8648_v0 = vunpack.i.l.bf16 %v6006_v50  ;;  %vm8649_vm3 = vcmp.lt.s32.totalorder %v5904_v15, 124  ;;  %v8650_v47 = vunpack.i.l.bf16 %v6004_v49  ;;  %v781_v37 = vpack.c.bf16 %v771_v32, %v746_v43 }
 0x123   : > { %v480_v42 = vsel %vm479_vm2, %v8647_v36, %v5163_v63  ;;  %v5188_v9 = vunpack.i.h.bf16 %v6724_v26  ;;  %v5187_v24 = vunpack.i.l.bf16 %v6724_v26  ;;  %v6731_v5 = vpop.permute.xlu0 %5180  ;;  %1302 = vmatprep.subr.bf16.mxu0 %v782_v11  ;;  %1334 = vmatpush1.bf16.msra.mxu1 %v6714_v14  ;;  %v8652_v50 = vunpack.i.l.bf16 %v6596_v30  ;;  %vm8655_vm7 = vmmov %vm8649_vm3 }
 0x124   : > { %v6738_v63 = vsel %vm8649_vm3, %v5173_v17, %v8648_v0  ;;  %v578_v31 = vsel %vm8651_vm4, %v5178_v1, %v8650_v47  ;;  %v5183_v40 = vunpack.i.h.bf16 %v6731_v5  ;;  %v5182_v41 = vunpack.i.l.bf16 %v6731_v5  ;;  %1335 = vmatprep.subr.bf16.mxu1 %v6727_v54  ;;  %4267 = vmatprep.mubr.msk.bf16.mxu1 %vm1206_vm0, %v5885_v12 }
 0x125   : > { %v571_v4 = vsel %vm8653_vm6, %v8652_v50, %v5178_v1  ;;  %v837_v49 = vsel %vm834_vm13, %v6464_v39, %v5187_v24  ;;  %v6756_v44 = vpack.c.bf16 %v505_v2, %v480_v42  ;;  %v836_v10 = vsel %vm834_vm13, %v5187_v24, %v5188_v9 }
 0x126   : > { %v8654_v33 = vunpack.i.l.bf16 %v6600_v61  ;;  %v812_v30 = vsel %vm809_vm12, %v6442_v27, %v5182_v41  ;;  %1303 = vmatpush1.bf16.msra.mxu0 %v781_v37  ;;  %v6771_v1 = vpop.permute.xlu1 %5195  ;;  %v811_v39 = vsel %vm809_vm12, %v5182_v41, %v5183_v40  ;;  %v586_v46 = vpack.c.bf16 %v578_v31, %v6738_v63  ;;  %v8660_v37 = vld [vmem:[#allocation17_spill] sm:$0xff] }
 0x127   : > { %v5198_v61 = vunpack.i.h.bf16 %v6771_v1  ;;  %v5197_v60 = vunpack.i.l.bf16 %v6771_v1  ;;  %1336 = vmatpush1.bf16.msra.mxu1 %v6756_v44  ;;  %v848_v20 = vpack.c.bf16 %v836_v10, %v811_v39  ;;  %v847_v27 = vpack.c.bf16 %v837_v49, %v812_v30 }
 0x128   : > { %v6766_v12 = vsel %vm8655_vm7, %v8654_v33, %v5173_v17  ;;  %v6780_v17 = vpop.permute.xlu0 %5190  ;;  %1337 = vmatprep.subr.bf16.mxu1 %v586_v46  ;;  %vm8656_vm3 = vcmp.lt.s32.totalorder %v5904_v15, 94  ;;  %v8657_v24 = vunpack.i.l.bf16 %v6052_v3  ;;  %vm8659_vm6 = vcmp.lt.s32.totalorder %v5904_v15, 95 }
 0x129   : > { %v5193_v43 = vunpack.i.h.bf16 %v6780_v17  ;;  %v5192_v59 = vunpack.i.l.bf16 %v6780_v17  ;;  %v903_v32 = vsel %vm900_vm15, %v6487_v56, %v5197_v60  ;;  %1304 = vmatprep.subr.bf16.mxu0 %v848_v20  ;;  %v585_v11 = vpack.c.bf16 %v571_v4, %v6766_v12  ;;  %vm8658_vm4 = vmmov %vm8656_vm3 }
 0x12a   : > { %v902_v29 = vsel %vm900_vm15, %v5197_v60, %v5198_v61  ;;  %1305 = vmatpush1.bf16.msra.mxu0 %v847_v27  ;;  %v635_v36 = vpop.permute.xlu1 %634  ;;  %v8661_v50 = vunpack.i.l.bf16 %v8660_v37  ;;  %vm8662_vm7 = vmmov %vm8659_vm6  ;;  %v8680_v5 = vunpack.i.l.bf16 %v6313_v22 }
 0x12b   : > { %v878_v2 = vsel %vm875_vm14, %v6462_v6, %v5192_v59  ;;  %v877_v42 = vsel %vm875_vm14, %v5192_v59, %v5193_v43  ;;  %v637_v56 = vsel %vm8656_vm3, %v6613_v52, %v635_v36  ;;  %v644_v0 = vsel %vm8658_vm4, %v635_v36, %v8657_v24  ;;  %1338 = vmatpush1.bf16.msra.mxu1 %v585_v11  ;;  %v8665_v11 = vld [vmem:[#allocation18_spill] sm:$0xff] }
 0x12c   : > { %v610_v47 = vpop.permute.xlu0 %609  ;;  %v914_v31 = vpack.c.bf16 %v902_v29, %v877_v42  ;;  %v913_v6 = vpack.c.bf16 %v903_v32, %v878_v2  ;;  %vm8663_vm3 = vcmp.lt.s32.totalorder %v5904_v15, 31  ;;  %v8666_v29 = vunpack.i.l.bf16 %v8665_v11 }
 0x12d   : > { %v612_v41 = vsel %vm8659_vm6, %v6629_v19, %v610_v47  ;;  %v619_v4 = vsel %vm8662_vm7, %v610_v47, %v8661_v50  ;;  %vm8664_vm4 = vmmov %vm8663_vm3  ;;  %vm8671_vm6 = vcmp.lt.s32.totalorder %v5904_v15, 29 }
 0x12e   : > { %v651_v49 = vpack.c.bf16 %v637_v56, %v612_v41  ;;  %1306 = vmatprep.subr.bf16.mxu0 %v914_v31  ;;  %v652_v52 = vpack.c.bf16 %v644_v0, %v619_v4  ;;  %v6814_v3 = vpop.permute.xlu1 %5205  ;;  %v8667_v56 = vld [vmem:[#allocation19_spill] sm:$0xff]  ;;  %vm8672_vm7 = vmmov %vm8671_vm6 }
 0x12f   : > { %1307 = vmatpush1.bf16.msra.mxu0 %v913_v6  ;;  %v5208_v10 = vunpack.i.h.bf16 %v6814_v3  ;;  %v5207_v33 = vunpack.i.l.bf16 %v6814_v3  ;;  %v8668_v24 = vunpack.i.l.bf16 %v8667_v56 }
 0x130   : > { %v6818_v30 = vpop.permute.xlu0 %5200  ;;  %1339 = vmatprep.subr.bf16.mxu1 %v652_v52 }
 0x131   : > { %v5203_v19 = vunpack.i.h.bf16 %v6818_v30  ;;  %v5202_v39 = vunpack.i.l.bf16 %v6818_v30  ;;  %1340 = vmatpush1.bf16.msra.mxu1 %v651_v49  ;;  %v969_v46 = vsel %vm966_vm5, %v6513_v18, %v5207_v33  ;;  %v968_v60 = vsel %vm966_vm5, %v5207_v33, %v5208_v10 }
 0x132   : > { %v701_v27 = vpop.permute.xlu1 %700  ;;  %v8687_v30 = vunpack.i.l.bf16 %v6428_v34  ;;  %v8692_v34 = vld [vmem:[#allocation14_spill] sm:$0xff] }
 0x133   : > { %v944_v20 = vsel %vm8663_vm3, %v6515_v23, %v5202_v39  ;;  %v943_v59 = vsel %vm8664_vm4, %v5202_v39, %v5203_v19  ;;  %v703_v18 = vsel %vm702_vm9, %v6644_v55, %v701_v27  ;;  %v710_v2 = vsel %vm702_vm9, %v701_v27, %v8666_v29 }
 0x134   : > { %v979_v32 = vpack.c.bf16 %v969_v46, %v944_v20  ;;  %v676_v36 = vpop.permute.xlu0 %675  ;;  %v980_v42 = vpack.c.bf16 %v968_v60, %v943_v59  ;;  %v8673_v60 = vld [vmem:[#allocation20_spill] sm:$0xff] }
 0x135   : > { %v678_v23 = vsel %vm677_vm8, %v6655_v57, %v676_v36  ;;  %v685_v0 = vsel %vm677_vm8, %v676_v36, %v8668_v24  ;;  %vm8669_vm8 = vcmp.lt.s32.totalorder %v5904_v15, 28  ;;  %v8674_v20 = vunpack.i.l.bf16 %v8673_v60  ;;  %v8678_v24 = vld [vmem:[#allocation21_spill] sm:$0xff]  ;;  %v8694_v60 = vld [vmem:[#allocation16_spill] sm:$0xff] }
 0x136   : > { %v717_v47 = vpack.c.bf16 %v703_v18, %v678_v23  ;;  %v718_v31 = vpack.c.bf16 %v710_v2, %v685_v0  ;;  %1308 = vmatprep.subr.bf16.mxu0 %v980_v42  ;;  %v6850_v55 = vpop.permute.xlu1 %5215  ;;  %vm8670_vm9 = vmmov %vm8669_vm8  ;;  %v8675_v18 = vunpack.i.l.bf16 %v6130_v38  ;;  %v8676_v42 = vld [vmem:[#allocation22_spill] sm:$0xff]  ;;  %v8679_v0 = vunpack.i.l.bf16 %v8678_v24 }
 0x137   : > { %1309 = vmatpush1.bf16.msra.mxu0 %v979_v32  ;;  %v5218_v6 = vunpack.i.h.bf16 %v6850_v55  ;;  %v5217_v41 = vunpack.i.l.bf16 %v6850_v55  ;;  %v8677_v23 = vunpack.i.l.bf16 %v8676_v42 }
 0x138   : > { %v6854_v37 = vpop.permute.xlu0 %5210  ;;  %1341 = vmatprep.subr.bf16.mxu1 %v718_v31 }
 0x139   : > { %v5213_v57 = vunpack.i.h.bf16 %v6854_v37  ;;  %v5212_v50 = vunpack.i.l.bf16 %v6854_v37  ;;  %1342 = vmatpush1.bf16.msra.mxu1 %v717_v47  ;;  %v1035_v4 = vsel %vm8669_vm8, %v6573_v13, %v5217_v41  ;;  %v1034_v49 = vsel %vm8670_vm9, %v5217_v41, %v5218_v6  ;;  %v8693_v37 = vld [vmem:[#allocation15_spill] sm:$0xff] }
 0x13a   : > { %v767_v33 = vpop.permute.xlu1 %766 }
 0x13b   : > { %v1010_v52 = vsel %vm8671_vm6, %v6575_v51, %v5212_v50  ;;  %v1009_v39 = vsel %vm8672_vm7, %v5212_v50, %v5213_v57  ;;  %v769_v13 = vsel %vm768_vm11, %v6681_v16, %v767_v33  ;;  %v776_v27 = vsel %vm768_vm11, %v767_v33, %v8674_v20  ;;  %vm8683_vm11 = vmmov %vm8663_vm3 }
 0x13c   : > { %v1045_v46 = vpack.c.bf16 %v1035_v4, %v1010_v52  ;;  %v742_v59 = vpop.permute.xlu0 %741  ;;  %v1046_v32 = vpack.c.bf16 %v1034_v49, %v1009_v39  ;;  %v8681_v50 = vunpack.i.l.bf16 %v6292_v45  ;;  %v1078_v4 = vpack.c.bf16 %v5627_v25, %v6766_v12 }
 0x13d   : > { %v744_v51 = vsel %vm743_vm10, %v6695_v48, %v742_v59  ;;  %v751_v11 = vsel %vm743_vm10, %v742_v59, %v8675_v18  ;;  %v1077_v52 = vpack.c.bf16 %v5627_v25, %v6619_v8  ;;  %v8684_v12 = vunpack.i.l.bf16 %v6353_v62 }
 0x13e   : > { %v783_v29 = vpack.c.bf16 %v769_v13, %v744_v51  ;;  %v784_v2 = vpack.c.bf16 %v776_v27, %v751_v11  ;;  %1310 = vmatprep.subr.bf16.mxu0 %v1046_v32  ;;  %v833_v16 = vpop.permute.xlu1 %832 }
 0x13f   : > { %1311 = vmatpush1.bf16.msra.mxu0 %v1045_v46  ;;  %v835_v36 = vsel %vm834_vm13, %v5188_v9, %v833_v16  ;;  %v842_v48 = vsel %vm834_vm13, %v833_v16, %v8677_v23  ;;  %vm8685_vm13 = vmmov %vm8663_vm3  ;;  %v8690_v46 = vunpack.i.l.bf16 %v6409_v21  ;;  %v1079_v21 = vpack.c.bf16 %v5627_v25, %v6738_v63 }
 0x140   : > { %v808_v56 = vpop.permute.xlu0 %807  ;;  %1312 = vmatprep.subr.bf16.mxu0 %v6714_v14  ;;  %1343 = vmatprep.subr.bf16.mxu1 %v784_v2  ;;  %vm8689_vm3 = vmmov %vm8671_vm6 }
 0x141   : > { %v810_v38 = vsel %vm809_vm12, %v5183_v40, %v808_v56  ;;  %v817_v26 = vsel %vm809_vm12, %v808_v56, %v8679_v0  ;;  %1344 = vmatpush1.bf16.msra.mxu1 %v783_v29  ;;  %vm8691_vm4 = vmmov %vm8689_vm3 }
 0x142   : > { %v849_v9 = vpack.c.bf16 %v835_v36, %v810_v38  ;;  %v850_v47 = vpack.c.bf16 %v842_v48, %v817_v26  ;;  %v899_v31 = vpop.permute.xlu1 %898 }
 0x143   : > { %1313 = vmatpush1.bf16.msra.mxu0 %v6524_v53  ;;  %v901_v14 = vsel %vm900_vm15, %v5198_v61, %v899_v31  ;;  %v908_v40 = vsel %vm900_vm15, %v899_v31, %v8680_v5 }
 0x144   : > { %v874_v41 = vpop.permute.xlu0 %873  ;;  %1314 = vmatprep.subr.bf16.mxu0 %v6756_v44  ;;  %1345 = vmatprep.subr.bf16.mxu1 %v850_v47 }
 0x145   : > { %v876_v53 = vsel %vm875_vm14, %v5193_v43, %v874_v41  ;;  %v883_v1 = vsel %vm875_vm14, %v874_v41, %v8681_v50  ;;  %1346 = vmatpush1.bf16.msra.mxu1 %v849_v9  ;;  %v8682_v43 = vunpack.i.l.bf16 %v6372_v58 }
 0x146   : > { %v915_v61 = vpack.c.bf16 %v901_v14, %v876_v53  ;;  %v916_v22 = vpack.c.bf16 %v908_v40, %v883_v1  ;;  %v965_v44 = vpop.permute.xlu1 %964 }
 0x147   : > { %1315 = vmatpush1.bf16.msra.mxu0 %v6577_v7  ;;  %v967_v17 = vsel %vm966_vm5, %v5208_v10, %v965_v44  ;;  %v974_v45 = vsel %vm966_vm5, %v965_v44, %v8682_v43  ;;  %vm8686_vm5 = vmmov %vm8669_vm8 }
 0x148   : > { %v940_v49 = vpop.permute.xlu0 %939  ;;  %1316 = vmatprep.subr.bf16.mxu0 %v1078_v4  ;;  %1347 = vmatprep.subr.bf16.mxu1 %v916_v22  ;;  %vm8688_vm15 = vmmov %vm8686_vm5 }
 0x149   : > { %v942_v7 = vsel %vm8683_vm11, %v5203_v19, %v940_v49  ;;  %v949_v3 = vsel %vm8685_vm13, %v940_v49, %v8684_v12  ;;  %1348 = vmatpush1.bf16.msra.mxu1 %v915_v61 }
 0x14a   : > { %v981_v58 = vpack.c.bf16 %v967_v17, %v942_v7  ;;  %v982_v10 = vpack.c.bf16 %v974_v45, %v949_v3  ;;  %v1031_v33 = vpop.permute.xlu1 %1030 }
 0x14b   : > { %1317 = vmatpush1.bf16.msra.mxu0 %v1077_v52  ;;  %v1033_v8 = vsel %vm8686_vm5, %v5218_v6, %v1031_v33  ;;  %v1040_v19 = vsel %vm8688_vm15, %v1031_v33, %v8687_v30  ;;  %vm1526_vm15 = vcmp.lt.s32.totalorder %v5904_v15, 122 }
 0x14c   : > { %v1006_v39 = vpop.permute.xlu0 %1005  ;;  %1349 = vmatprep.subr.bf16.mxu1 %v982_v10 }
 0x14d   : > { %v1008_v62 = vsel %vm8689_vm3, %v5213_v57, %v1006_v39  ;;  %v1015_v55 = vsel %vm8691_vm4, %v1006_v39, %v8690_v46  ;;  %1350 = vmatpush1.bf16.msra.mxu1 %v981_v58  ;;  %v1080_v57 = vpack.c.bf16 %v5627_v25, %v8694_v60  ;;  %vm8703_vm3 = vcmp.lt.s32.totalorder %v5904_v15, 124 }
 0x14e   : > { %v1047_v13 = vpack.c.bf16 %v1033_v8, %v1008_v62  ;;  %v1048_v6 = vpack.c.bf16 %v1040_v19, %v1015_v55  ;;  %1325 = vmatmul.mubr.bf16.vlgmr.msra.gmra.mrb[4].mxu0 %v6528_v28  ;;  %vm1567_vm4 = vcmp.lt.s32.totalorder %v5904_v15, 120 }
 0x150   : > { %1351 = vmatprep.subr.bf16.mxu1 %v1048_v6 }
 0x151   : > { %1352 = vmatpush1.bf16.msra.mxu1 %v1047_v13 }
 0x152   : > { %1353 = vmatprep.subr.bf16.mxu1 %v8692_v34 }
 0x155   : > { %1354 = vmatpush1.bf16.msra.mxu1 %v6684_v35 }
 0x156   : > { %1355 = vmatprep.subr.bf16.mxu1 %v8693_v37 }
 0x159   : > { %1356 = vmatpush1.bf16.msra.mxu1 %v6727_v54 }
 0x15a   : > { %1357 = vmatprep.subr.bf16.mxu1 %v1080_v57 }
 0x15d   : > { %1358 = vmatpush1.bf16.msra.mxu1 %v1079_v21 }
 0x15f   : > { %v1198_v20 = vpop.permute.xlu0 %1197 }
 0x160   : > { %1366 = vmatmul.mubr.bf16.vlgmr.msra.gmra.mrb[4].mxu1 %v6528_v28 }
 0x1de   : > { %v1244_v27 = vpop.f32.mrb[0].mxu0 }
 0x1df   : > { %v1246_v59 = vpop.f32.mrb[1].mxu0  ;;  %v1245_v32 = vadd.f32 %v1244_v27, %v1198_v20 }
 0x1e0   : > { %v1248_v51 = vpop.f32.mrb[2].mxu0  ;;  %v1247_v11 = vadd.f32 %v1246_v59, %v1198_v20 }
 0x1e1   : > { %v1249_v35 = vpop.f32.mrb[3].mxu0  ;;  %v1374_v18 = vmax.f32 %v1245_v32, 0.0 }
 0x1e2   : > { %v1375_v36 = vmax.f32 %v1247_v11, 0.0 }
 0x1e3   : > { %1382 = vrot.lane.b32.xlu0 %v1374_v18, %s8587_s30 }
 0x1f5   : > { %v1285_v29 = vpop.f32.mrb[0].mxu1 }
 0x1f6   : > { %v1286_v2 = vadd.f32 %v1285_v29, %v1198_v20  ;;  %v1287_v54 = vpop.f32.mrb[1].mxu1 }
 0x1f7   : > { %v1289_v16 = vpop.f32.mrb[2].mxu1  ;;  %v1288_v28 = vadd.f32 %v1287_v54, %v1198_v20 }
 0x1f8   : > { %v1376_v42 = vmax.f32 %v1286_v2, 0.0  ;;  %v1290_v63 = vpop.f32.mrb[3].mxu1 }
 0x1f9   : > { %v1377_v0 = vmax.f32 %v1288_v28, 0.0 }
 0x1fa   : > { %v5220_v23 = vpack.i.bf16 %v1376_v42, %v1375_v36 }
 0x1fc   : > { %5221 = vrot.lane.b32.xlu1 %v5220_v23, %s8587_s30 }
 0x221   : > { %v1326_v48 = vpop.f32.mrb[4].mxu0 }
 0x222   : > { %v1327_v56 = vadd.f32 %v1326_v48, %v1198_v20  ;;  %v1328_v38 = vpop.f32.mrb[5].mxu0 }
 0x223   : > { %v1330_v24 = vpop.f32.mrb[6].mxu0  ;;  %v1329_v31 = vadd.f32 %v1328_v38, %v1198_v20 }
 0x224   : > { %v1378_v26 = vmax.f32 %v1327_v56, 0.0  ;;  %v1331_v9 = vpop.f32.mrb[7].mxu0 }
 0x225   : > { %v1379_v50 = vmax.f32 %v1329_v31, 0.0 }
 0x226   : > { %v5225_v47 = vpack.i.bf16 %v1378_v26, %v1377_v0 }
 0x228   : > { %5226 = vrot.lane.b32.xlu1 %v5225_v47, %s8587_s30 }
 0x233   : > { %v1367_v14 = vpop.f32.mrb[4].mxu1 }
 0x234   : > { %v1368_v5 = vadd.f32 %v1367_v14, %v1198_v20  ;;  %v1369_v40 = vpop.f32.mrb[5].mxu1 }
 0x235   : > { %v1370_v41 = vadd.f32 %v1369_v40, %v1198_v20  ;;  %v1371_v53 = vpop.f32.mrb[6].mxu1 }
 0x236   : > { %v1380_v1 = vmax.f32 %v1368_v5, 0.0  ;;  %v1372_v61 = vpop.f32.mrb[7].mxu1 }
 0x237   : > { %v1381_v22 = vmax.f32 %v1370_v41, 0.0 }
 0x238   : > { %v5230_v4 = vpack.i.bf16 %v1380_v1, %v1379_v50 }
 0x239   : > { %1396 = vrot.lane.b32.xlu0 %v1381_v22, %s8587_s30 }
 0x23a   : > { %5231 = vrot.lane.b32.xlu1 %v5230_v4, %s8587_s30 }
 0x255   : > { %v1383_v45 = vpop.permute.xlu0 %1382 }
 0x26e   : > { %v5222_v44 = vpop.permute.xlu1 %5221 }
 0x26f   : > { %v5224_v17 = vunpack.i.h.bf16 %v5222_v44  ;;  %v5223_v43 = vunpack.i.l.bf16 %v5222_v44 }
 0x271   : > { %v1403_v52 = vsel %vm438_vm1, %v5223_v43, %v5224_v17  ;;  %v1404_v7 = vsel %vm438_vm1, %v1383_v45, %v5223_v43 }
 0x272   : > { %v1407_v33 = vmax.f32 %v1375_v36, %v1403_v52  ;;  %v1406_v30 = vmax.f32 %v1374_v18, %v1404_v7 }
 0x29a   : > { %v5227_v49 = vpop.permute.xlu1 %5226 }
 0x29b   : > { %v5229_v12 = vunpack.i.h.bf16 %v5227_v49  ;;  %v5228_v3 = vunpack.i.l.bf16 %v5227_v49 }
 0x29d   : > { %v1401_v58 = vsel %vm438_vm1, %v5228_v3, %v5229_v12  ;;  %v1402_v10 = vsel %vm438_vm1, %v5224_v17, %v5228_v3  ;;  %v1925_v17 = vld [vmem:[%s8446_s4 + $0x8] sm:$0xff] }
 0x29e   : > { %v1408_v8 = vmax.f32 %v1376_v42, %v1402_v10  ;;  %v1409_v19 = vmax.f32 %v1377_v0, %v1401_v58 }
 0x2a0   : > { %v5235_v39 = vpack.i.bf16 %v1408_v8, %v1407_v33  ;;  %v5240_v62 = vpack.i.bf16 %v1406_v30, %v1409_v19 }
 0x2a2   : > { %5236 = vrot.lane.b32.xlu1 %v5235_v39, %s8577_s17  ;;  %5241 = vrot.lane.b32.xlu0 %v5240_v62, %s8577_s17 }
 0x2ab   : > { %v1397_v46 = vpop.permute.xlu0 %1396 }
 0x2ac   : > { %v5232_v55 = vpop.permute.xlu1 %5231  ;;  %v1405_v13 = vsel %vm438_vm1, %v1397_v46, %v1383_v45 }
 0x2ad   : > { %v5234_v6 = vunpack.i.h.bf16 %v5232_v55  ;;  %v5233_v34 = vunpack.i.l.bf16 %v5232_v55  ;;  %v6991_v21 = vmax.f32 %v1381_v22, %v1405_v13  ;;  %v7087_v22 = vld [vmem:[%s8445_s3 + $0x4] ss:$8 sps:$4 sm:$0xff]  }
 0x2ae   : > { %4270 = vmatprep.mubr.msk.bf16.mxu0 %vm1206_vm0, %v7087_v22  ;;  %4271 = vmatprep.mubr.msk.bf16.mxu1 %vm1206_vm0, %v7087_v22 }
 0x2af   : > { %v1398_v37 = vsel %vm438_vm1, %v5234_v6, %v1397_v46  ;;  %v1399_v60 = vsel %vm438_vm1, %v5233_v34, %v5234_v6  ;;  %v1400_v57 = vsel %vm438_vm1, %v5229_v12, %v5233_v34  ;;  %vm8695_vm1 = vcmp.lt.s32.totalorder %v5904_v15, 96 }
 0x2b0   : > { %v1410_v20 = vmax.f32 %v1378_v26, %v1400_v57  ;;  %v1411_v27 = vmax.f32 %v1379_v50, %v1399_v60  ;;  %v6993_v59 = vmax.f32 %v1380_v1, %v1398_v37  ;;  %vm8696_vm8 = vmmov %vm8695_vm1  ;;  %v1924_v37 = vld [vmem:[%s8446_s4] sm:$0xff] }
 0x2b1   : > { %vm8697_vm9 = vmmov %vm8695_vm1 }
 0x2b2   : > { %v5245_v32 = vpack.i.bf16 %v1411_v27, %v1410_v20  ;;  %v5250_v51 = vpack.i.bf16 %v6991_v21, %v6993_v59  ;;  %vm8698_vm6 = vmmov %vm8695_vm1 }
 0x2b3   : > { %vm8699_vm7 = vmmov %vm8695_vm1 }
 0x2b4   : > { %5246 = vrot.lane.b32.xlu1 %v5245_v32, %s8577_s17  ;;  %5251 = vrot.lane.b32.xlu0 %v5250_v51, %s8577_s17  ;;  %vm8700_vm11 = vmmov %vm8695_vm1 }
 0x2b5   : > { %vm8701_vm13 = vmmov %vm8695_vm1 }
 0x2b6   : > { %vm8702_vm5 = vmmov %vm8695_vm1 }
 0x314   : > { %v5237_v35 = vpop.permute.xlu1 %5236  ;;  %v6999_v18 = vpop.permute.xlu0 %5241 }
 0x315   : > { %v5239_v11 = vunpack.i.h.bf16 %v5237_v35  ;;  %v5238_v29 = vunpack.i.l.bf16 %v5237_v35  ;;  %v5244_v2 = vunpack.i.h.bf16 %v6999_v18  ;;  %v5243_v54 = vunpack.i.l.bf16 %v6999_v18 }
 0x317   : > { %v1435_v16 = vsel %vm8695_vm1, %v5238_v29, %v5239_v11  ;;  %v1436_v36 = vsel %vm8696_vm8, %v5244_v2, %v5238_v29  ;;  %v1434_v42 = vsel %vm8697_vm9, %v5239_v11, %v5243_v54  ;;  %vm8704_vm1 = vmmov %vm8703_vm3  ;;  %vm1696_vm8 = vcmp.lt.s32.totalorder %v5904_v15, 58 }
 0x318   : > { %v7011_v63 = vmax.f32 %v1407_v33, %v1435_v16  ;;  %v7013_v23 = vmax.f32 %v1406_v30, %v1436_v36  ;;  %v7015_v28 = vmax.f32 %v1408_v8, %v1434_v42  ;;  %vm1721_vm9 = vcmp.lt.s32.totalorder %v5904_v15, 56  ;;  %v5495_v15 = vld [vmem:[%s8448_s6] sm:$0xff]  }
 0x31a   : > { %1616 = vrot.lane.b32.xlu1 %v7013_v23, %s8582_s29  ;;  %1576 = vrot.lane.b32.xlu0 %v7013_v23, %s8581_s0  ;;  %v5265_v48 = vpack.i.bf16 %v7015_v28, %v7011_v63 }
 0x31e   : > { %5266 = vrot.lane.b32.xlu0 %v5265_v48, %s5628_s24  ;;  %5256 = vrot.lane.b32.xlu1 %v5265_v48, %s8592_s21 }
 0x322   : > { %5276 = vrot.lane.b32.xlu0 %v5265_v48, %s8581_s0  ;;  %5261 = vrot.lane.b32.xlu1 %v5265_v48, %s8595_s14 }
 0x326   : > { %v5247_v56 = vpop.permute.xlu1 %5246  ;;  %5286 = vrot.lane.b32.xlu0 %v5265_v48, %s8585_s23  ;;  %5271 = vrot.lane.b32.xlu1 %v5265_v48, %s5629_s27  ;;  %v5252_v5 = vpop.permute.xlu0 %5251 }
 0x327   : > { %v5248_v38 = vunpack.i.l.bf16 %v5247_v56  ;;  %v5249_v9 = vunpack.i.h.bf16 %v5247_v56  ;;  %v5253_v40 = vunpack.i.l.bf16 %v5252_v5  ;;  %v5254_v50 = vunpack.i.h.bf16 %v5252_v5 }
 0x329   : > { %v1433_v24 = vsel %vm8698_vm6, %v5243_v54, %v5248_v38  ;;  %v1432_v47 = vsel %vm8699_vm7, %v5248_v38, %v5249_v9  ;;  %v1431_v41 = vsel %vm8700_vm11, %v5249_v9, %v5253_v40  ;;  %v1430_v1 = vsel %vm8701_vm13, %v5253_v40, %v5254_v50  ;;  %vm8705_vm6 = vmmov %vm8704_vm1 }
 0x32a   : > { %v7031_v0 = vmax.f32 %v1409_v19, %v1433_v24  ;;  %5281 = vrot.lane.b32.xlu1 %v5265_v48, %s8582_s29  ;;  %v7048_v31 = vmax.f32 %v1410_v20, %v1432_v47  ;;  %v7069_v53 = vmax.f32 %v1411_v27, %v1431_v41  ;;  %v7082_v61 = vmax.f32 %v6993_v59, %v1430_v1  ;;  %vm8706_vm7 = vmmov %vm8704_vm1 }
 0x32b   : > { %v1437_v4 = vsel %vm8702_vm5, %v5254_v50, %v5244_v2  ;;  %vm8707_vm11 = vmmov %vm8704_vm1 }
 0x32c   : > { %v5295_v26 = vpack.i.bf16 %v7031_v0, %v7013_v23  ;;  %v5320_v14 = vpack.i.bf16 %v7048_v31, %v7031_v0  ;;  %v7126_v44 = vmax.f32 %v6991_v21, %v1437_v4  ;;  %vm8708_vm13 = vmmov %vm8704_vm1 }
 0x32d   : > { %vm8709_vm5 = vmmov %vm8704_vm1 }
 0x32e   : > { %5296 = vrot.lane.b32.xlu1 %v5295_v26, %s8595_s14  ;;  %5291 = vrot.lane.b32.xlu0 %v5295_v26, %s8592_s21 }
 0x332   : > { %5306 = vrot.lane.b32.xlu1 %v5265_v48, %s5630_s13  ;;  %5301 = vrot.lane.b32.xlu0 %v5295_v26, %s5628_s24 }
 0x336   : > { %5316 = vrot.lane.b32.xlu1 %v5295_v26, %s5629_s27  ;;  %1640 = vrot.lane.b32.xlu0 %v7013_v23, %s8585_s23 }
 0x33a   : > { %1680 = vrot.lane.b32.xlu1 %v7013_v23, %s5630_s13  ;;  %5311 = vrot.lane.b32.xlu0 %v5265_v48, %s5631_s19 }
 0x33e   : > { %1454 = vrot.lane.b32.xlu1 %v7048_v31, %s8592_s21  ;;  %1705 = vrot.lane.b32.xlu0 %v7013_v23, %s5631_s19 }
 0x342   : > { %1518 = vrot.lane.b32.xlu1 %v7048_v31, %s5628_s24  ;;  %1494 = vrot.lane.b32.xlu0 %v7048_v31, %s8595_s14 }
 0x346   : > { %5321 = vrot.lane.b32.xlu1 %v5320_v14, %s8581_s0  ;;  %1559 = vrot.lane.b32.xlu0 %v7048_v31, %s5629_s27 }
 0x34a   : > { %5331 = vrot.lane.b32.xlu1 %v5320_v14, %s8585_s23  ;;  %5326 = vrot.lane.b32.xlu0 %v5320_v14, %s8582_s29 }
 0x34e   : > { %5341 = vrot.lane.b32.xlu1 %v5320_v14, %s5631_s19  ;;  %5336 = vrot.lane.b32.xlu0 %v5320_v14, %s5630_s13 }
 0x352   : > { %1496 = vrot.lane.b32.xlu1 %v7069_v53, %s8595_s14  ;;  %1456 = vrot.lane.b32.xlu0 %v7069_v53, %s8592_s21 }
 0x356   : > { %1561 = vrot.lane.b32.xlu1 %v7069_v53, %s5629_s27  ;;  %1520 = vrot.lane.b32.xlu0 %v7069_v53, %s5628_s24 }
 0x35a   : > { %1458 = vrot.lane.b32.xlu1 %v7082_v61, %s8592_s21  ;;  %1586 = vrot.lane.b32.xlu0 %v7069_v53, %s8581_s0 }
 0x35e   : > { %1650 = vrot.lane.b32.xlu1 %v7069_v53, %s8585_s23  ;;  %1626 = vrot.lane.b32.xlu0 %v7069_v53, %s8582_s29 }
 0x362   : > { %1522 = vrot.lane.b32.xlu1 %v7082_v61, %s5628_s24  ;;  %1498 = vrot.lane.b32.xlu0 %v7082_v61, %s8595_s14 }
 0x366   : > { %1715 = vrot.lane.b32.xlu1 %v7069_v53, %s5631_s19  ;;  %1690 = vrot.lane.b32.xlu0 %v7069_v53, %s5630_s13 }
 0x36a   : > { %1588 = vrot.lane.b32.xlu1 %v7082_v61, %s8581_s0  ;;  %1563 = vrot.lane.b32.xlu0 %v7082_v61, %s5629_s27 }
 0x36e   : > { %1652 = vrot.lane.b32.xlu1 %v7082_v61, %s8585_s23  ;;  %1628 = vrot.lane.b32.xlu0 %v7082_v61, %s8582_s29 }
 0x372   : > { %1717 = vrot.lane.b32.xlu1 %v7082_v61, %s5631_s19  ;;  %1692 = vrot.lane.b32.xlu0 %v7082_v61, %s5630_s13 }
 0x376   : > { %1500 = vrot.lane.b32.xlu1 %v7126_v44, %s8595_s14  ;;  %1460 = vrot.lane.b32.xlu0 %v7126_v44, %s8592_s21 }
 0x37a   : > { %1565 = vrot.lane.b32.xlu1 %v7126_v44, %s5629_s27  ;;  %1524 = vrot.lane.b32.xlu0 %v7126_v44, %s5628_s24  ;;  %s4201_s24 = sshll.u32 %s405_s12, 4  ;;  %s8402_s24 = int_to_ptr.vmem [resolvable:$true] %s4201_s24 }
 0x37b   : > { %s5543_s26 = scalar_lea.vmem %s8402_s24, 16 }
 0x37c   : > { %p5544_p11 = scmp.ne.s32.totalorder %s8402_s24, %s5543_s26 }
 0x37e   : > { %1630 = vrot.lane.b32.xlu1 %v7126_v44, %s8582_s29  ;;  %1590 = vrot.lane.b32.xlu0 %v7126_v44, %s8581_s0  ;;  %p5545_p12 = pnand %p5544_p11, %p5738_p5 }
 0x380   : > { %p5546_p13 = pneg %p5545_p12 }
 0x382   : > { %1694 = vrot.lane.b32.xlu1 %v7126_v44, %s5630_s13  ;;  %1654 = vrot.lane.b32.xlu0 %v7126_v44, %s8585_s23 }
 0x386   : > { %1719 = vrot.lane.b32.xlu0 %v7126_v44, %s5631_s19  ;;  %1928 = vperm.xlu1 %5345, %v1924_v37   ;;  %s8715_s19 = sld [smem:[#allocation25_spill]] }
 0x38a   : > { %1933 = vperm.xlu0 %5219, %v1925_v17  }
 0x38c   : > { %v7149_v43 = vpop.permute.xlu1 %1616  ;;  %v7151_v45 = vpop.permute.xlu0 %1576  ;;  %s8400_s20 = scalar_lea.hbm %s8715_s19, %s4462_s1 }
 0x390   : > { %v7153_v49 = vpop.permute.xlu0 %5266  ;;  %v7155_v52 = vpop.permute.xlu1 %5256 }
 0x391   : > { %v5259_v7 = vunpack.i.h.bf16 %v7155_v52  ;;  %v5258_v12 = vunpack.i.l.bf16 %v7155_v52  ;;  %v5269_v46 = vunpack.i.h.bf16 %v7153_v49  ;;  %v5268_v55 = vunpack.i.l.bf16 %v7153_v49 }
 0x393   : > { %v1467_v3 = vsel %vm479_vm2, %v5258_v12, %v5259_v7  ;;  %v1532_v11 = vsel %vm1526_vm15, %v5268_v55, %v5269_v46 }
 0x394   : > { %v7163_v58 = vpop.permute.xlu1 %5261  ;;  %v7166_v10 = vpack.c.bf16 %v1467_v3, %v7011_v63  ;;  %v7168_v33 = vpop.permute.xlu0 %5276 }
 0x395   : > { %v5264_v39 = vunpack.i.h.bf16 %v7163_v58  ;;  %v5263_v62 = vunpack.i.l.bf16 %v7163_v58  ;;  %v5279_v59 = vunpack.i.h.bf16 %v7168_v33  ;;  %v5278_v32 = vunpack.i.l.bf16 %v7168_v33 }
 0x396   : > { %1948 = vmatprep.subr.bf16.mxu0 %v7166_v10 }
 0x397   : > { %v1507_v21 = vsel %vm8703_vm3, %v5263_v62, %v5264_v39  ;;  %v1597_v26 = vsel %vm743_vm10, %v5278_v32, %v5279_v59  ;;  %v1598_v5 = vsel %vm743_vm10, %v7151_v45, %v5278_v32  ;;  %vm8711_vm3 = vmmov %vm8704_vm1 }
 0x398   : > { %v7171_v8 = vpop.permute.xlu1 %5271  ;;  %v7173_v30 = vpop.permute.xlu0 %5286  ;;  %v7216_v2 = vpack.c.bf16 %v1532_v11, %v1507_v21 }
 0x399   : > { %v5274_v60 = vunpack.i.h.bf16 %v7171_v8  ;;  %v5273_v57 = vunpack.i.l.bf16 %v7171_v8  ;;  %v5288_v48 = vunpack.i.l.bf16 %v7173_v30 }
 0x39b   : > { %v7225_v36 = vsel %vm1567_vm4, %v5273_v57, %v5274_v60 }
 0x39c   : > { %v7175_v19 = vpop.permute.xlu1 %5281  ;;  %v7250_v47 = vpack.c.bf16 %v1597_v26, %v7225_v36 }
 0x39d   : > { %v5284_v54 = vunpack.i.h.bf16 %v7175_v19  ;;  %v5283_v16 = vunpack.i.l.bf16 %v7175_v19 }
 0x39f   : > { %v1637_v14 = vsel %vm809_vm12, %v5283_v16, %v5284_v54  ;;  %v1638_v21 = vsel %vm809_vm12, %v7149_v43, %v5283_v16 }
 0x3a0   : > { %v7181_v13 = vpop.permute.xlu1 %5296  ;;  %v7183_v6 = vpop.permute.xlu0 %5291 }
 0x3a1   : > { %v5293_v34 = vunpack.i.l.bf16 %v7183_v6  ;;  %v8563_v20 = vunpack.i.l.bf16 %v7181_v13  ;;  %v5294_v1 = vunpack.i.h.bf16 %v7183_v6 }
 0x3a3   : > { %v1468_v27 = vsel %vm479_vm2, %v5293_v34, %v5258_v12  ;;  %v1508_v42 = vsel %vm8704_vm1, %v8563_v20, %v5263_v62  ;;  %v1466_v11 = vsel %vm479_vm2, %v5259_v7, %v5294_v1  ;;  %v5299_v7 = vunpack.i.h.bf16 %v7181_v13 }
 0x3a4   : > { %v7205_v51 = vpack.c.bf16 %v1468_v27, %v7013_v23  ;;  %v7207_v35 = vpop.permute.xlu1 %5306  ;;  %v7209_v18 = vpop.permute.xlu0 %5301  ;;  %v5289_v23 = vunpack.i.h.bf16 %v7173_v30  ;;  %vm4186_vm1 = vcmask 73728  }
 0x3a5   : > { %v8562_v29 = vunpack.i.l.bf16 %v7209_v18  ;;  %v5309_v40 = vunpack.i.h.bf16 %v7207_v35  ;;  %v5308_v41 = vunpack.i.l.bf16 %v7207_v35  ;;  %v1506_v49 = vsel %vm8706_vm7, %v5264_v39, %v5299_v7 }
 0x3a6   : > { %1949 = vmatpush1.bf16.msra.mxu0 %v7205_v51  ;;  %v1661_v3 = vsel %vm875_vm14, %v5288_v48, %v5289_v23 }
 0x3a7   : > { %v1533_v63 = vsel %vm1526_vm15, %v8562_v29, %v5268_v55  ;;  %1950 = vmatprep.subr.bf16.mxu0 %v7216_v2  ;;  %v1702_v27 = vsel %vm1696_vm8, %v5308_v41, %v5309_v40 }
 0x3a8   : > { %v7238_v56 = vpack.c.bf16 %v1533_v63, %v1508_v42  ;;  %v7240_v38 = vpop.permute.xlu1 %5316  ;;  %v7242_v24 = vpop.permute.xlu0 %1640  ;;  %v5304_v42 = vunpack.i.h.bf16 %v7209_v18 }
 0x3a9   : > { %v8561_v9 = vunpack.i.l.bf16 %v7240_v38  ;;  %v1662_v62 = vsel %vm875_vm14, %v7242_v24, %v5288_v48 }
 0x3aa   : > { %1951 = vmatpush1.bf16.msra.mxu0 %v7238_v56  ;;  %v7308_v16 = vpack.c.bf16 %v1662_v62, %v1638_v21 }
 0x3ab   : > { %v7267_v50 = vsel %vm1567_vm4, %v8561_v9, %v5273_v57  ;;  %1952 = vmatprep.subr.bf16.mxu0 %v7250_v47  ;;  %v7288_v57 = vpack.c.bf16 %v1661_v3, %v1637_v14  ;;  %v7328_v3 = vpack.c.bf16 %v1466_v11, %v7015_v28 }
 0x3ac   : > { %v7272_v4 = vpack.c.bf16 %v1598_v5, %v7267_v50  ;;  %v7274_v17 = vpop.permute.xlu1 %1680  ;;  %v7276_v12 = vpop.permute.xlu0 %5311 }
 0x3ad   : > { %v5314_v55 = vunpack.i.h.bf16 %v7276_v12  ;;  %v5313_v37 = vunpack.i.l.bf16 %v7276_v12  ;;  %v1703_v62 = vsel %vm1696_vm8, %v7274_v17, %v5308_v41 }
 0x3ae   : > { %1953 = vmatpush1.bf16.msra.mxu0 %v7272_v4 }
 0x3af   : > { %1954 = vmatprep.subr.bf16.mxu0 %v7288_v57  ;;  %v1727_v32 = vsel %vm1721_vm9, %v5313_v37, %v5314_v55 }
 0x3b0   : > { %v7310_v63 = vpop.permute.xlu1 %1454  ;;  %v7312_v48 = vpop.permute.xlu0 %1705  ;;  %v7314_v26 = vpack.c.bf16 %v1727_v32, %v1702_v27  ;;  %v5319_v32 = vunpack.i.h.bf16 %v7240_v38 }
 0x3b1   : > { %v1465_v14 = vsel %vm479_vm2, %v5294_v1, %v7310_v63  ;;  %v1728_v52 = vsel %vm1721_vm9, %v7312_v48, %v5313_v37  ;;  %v1531_v1 = vsel %vm1526_vm15, %v5269_v46, %v5304_v42 }
 0x3b2   : > { %v7324_v5 = vpack.c.bf16 %v1465_v14, %v7031_v0  ;;  %1955 = vmatpush1.bf16.msra.mxu0 %v7308_v16  ;;  %v7338_v37 = vpack.c.bf16 %v1728_v52, %v1703_v62  ;;  %v7359_v27 = vpack.c.bf16 %v1531_v1, %v1506_v49 }
 0x3b3   : > { %1956 = vmatprep.subr.bf16.mxu0 %v7314_v26 }
 0x3b4   : > { %v7340_v0 = vpop.permute.xlu1 %1518  ;;  %v7342_v21 = vpop.permute.xlu0 %1494  ;;  %1991 = vmatprep.subr.bf16.mxu1 %v7324_v5 }
 0x3b5   : > { %v1530_v28 = vsel %vm1526_vm15, %v5304_v42, %v7340_v0  ;;  %v1505_v41 = vsel %vm8705_vm6, %v5299_v7, %v7342_v21  ;;  %1992 = vmatpush1.bf16.msra.mxu1 %v7328_v3  ;;  %v7386_v7 = vsel %vm1567_vm4, %v5274_v60, %v5319_v32 }
 0x3b6   : > { %v7356_v46 = vpack.c.bf16 %v1530_v28, %v1505_v41  ;;  %1957 = vmatpush1.bf16.msra.mxu0 %v7338_v37 }
 0x3b7   : > { %1958 = vmatprep.subr.bf16.mxu0 %v7328_v3 }
 0x3b8   : > { %v7363_v11 = vpop.permute.xlu1 %5321  ;;  %v7365_v42 = vpop.permute.xlu0 %1559  ;;  %1993 = vmatprep.subr.bf16.mxu1 %v7356_v46 }
 0x3b9   : > { %v5324_v58 = vunpack.i.h.bf16 %v7363_v11  ;;  %v5323_v39 = vunpack.i.l.bf16 %v7363_v11  ;;  %1994 = vmatpush1.bf16.msra.mxu1 %v7359_v27  ;;  %v7379_v52 = vsel %vm1567_vm4, %v5319_v32, %v7365_v42 }
 0x3ba   : > { %1959 = vmatpush1.bf16.msra.mxu0 %v7166_v10 }
 0x3bb   : > { %v1595_v14 = vsel %vm743_vm10, %v5323_v39, %v5324_v58  ;;  %1960 = vmatprep.subr.bf16.mxu0 %v7359_v27  ;;  %v1596_v62 = vsel %vm743_vm10, %v5279_v59, %v5323_v39 }
 0x3bc   : > { %v7393_v1 = vpack.c.bf16 %v1595_v14, %v7379_v52  ;;  %v7395_v28 = vpop.permute.xlu1 %5331  ;;  %v7397_v41 = vpop.permute.xlu0 %5326  ;;  %v1602_v49 = vpack.c.bf16 %v1596_v62, %v7386_v7 }
 0x3bd   : > { %v5334_v8 = vunpack.i.h.bf16 %v7395_v28  ;;  %v5333_v9 = vunpack.i.l.bf16 %v7395_v28  ;;  %v5329_v60 = vunpack.i.h.bf16 %v7397_v41  ;;  %v5328_v33 = vunpack.i.l.bf16 %v7397_v41 }
 0x3be   : > { %1961 = vmatpush1.bf16.msra.mxu0 %v7216_v2  ;;  %1995 = vmatprep.subr.bf16.mxu1 %v7393_v1 }
 0x3bf   : > { %1962 = vmatprep.subr.bf16.mxu0 %v1602_v49  ;;  %1996 = vmatpush1.bf16.msra.mxu1 %v1602_v49  ;;  %v1635_v59 = vsel %vm809_vm12, %v5328_v33, %v5329_v60  ;;  %v1659_v32 = vsel %vm875_vm14, %v5333_v9, %v5334_v8  ;;  %v1636_v39 = vsel %vm809_vm12, %v5284_v54, %v5328_v33 }
 0x3c0   : > { %v7414_v14 = vpop.permute.xlu1 %5341  ;;  %v7416_v62 = vpop.permute.xlu0 %5336  ;;  %v7418_v28 = vpack.c.bf16 %v1659_v32, %v1635_v59  ;;  %v1660_v41 = vsel %vm875_vm14, %v5289_v23, %v5333_v9 }
 0x3c1   : > { %v5344_v49 = vunpack.i.h.bf16 %v7414_v14  ;;  %v5343_v29 = vunpack.i.l.bf16 %v7414_v14  ;;  %v5339_v19 = vunpack.i.h.bf16 %v7416_v62  ;;  %v5338_v20 = vunpack.i.l.bf16 %v7416_v62 }
 0x3c2   : > { %1963 = vmatpush1.bf16.msra.mxu0 %v7250_v47  ;;  %1997 = vmatprep.subr.bf16.mxu1 %v7418_v28  ;;  %v1666_v54 = vpack.c.bf16 %v1660_v41, %v1636_v39 }
 0x3c3   : > { %v1700_v30 = vsel %vm1696_vm8, %v5338_v20, %v5339_v19  ;;  %v1725_v23 = vsel %vm1721_vm9, %v5343_v29, %v5344_v49  ;;  %v1701_v9 = vsel %vm1696_vm8, %v5309_v40, %v5338_v20  ;;  %v1726_v47 = vsel %vm1721_vm9, %v5314_v55, %v5343_v29 }
 0x3c4   : > { %1964 = vmatprep.subr.bf16.mxu0 %v1666_v54  ;;  %1998 = vmatpush1.bf16.msra.mxu1 %v1666_v54  ;;  %v1497_v33 = vpop.permute.xlu1 %1496  ;;  %v1457_v59 = vpop.permute.xlu0 %1456  ;;  %v7446_v32 = vpack.c.bf16 %v1725_v23, %v1700_v30  ;;  %v1732_v39 = vpack.c.bf16 %v1726_v47, %v1701_v9 }
 0x3c5   : > { %v1464_v41 = vsel %vm479_vm2, %v7310_v63, %v1457_v59  ;;  %v1504_v40 = vsel %vm8707_vm11, %v7342_v21, %v1497_v33 }
 0x3c6   : > { %v7452_v35 = vpack.c.bf16 %v1464_v41, %v7048_v31  ;;  %1965 = vmatpush1.bf16.msra.mxu0 %v7288_v57  ;;  %1999 = vmatprep.subr.bf16.mxu1 %v7446_v32 }
 0x3c7   : > { %1966 = vmatprep.subr.bf16.mxu0 %v1732_v39 }
 0x3c8   : > { %2000 = vmatpush1.bf16.msra.mxu1 %v1732_v39  ;;  %v1562_v20 = vpop.permute.xlu1 %1561  ;;  %v1521_v29 = vpop.permute.xlu0 %1520 }
 0x3c9   : > { %v1529_v12 = vsel %vm1526_vm15, %v7340_v0, %v1521_v29  ;;  %2001 = vmatprep.subr.bf16.mxu1 %v7452_v35  ;;  %v7473_v63 = vsel %vm1567_vm4, %v7365_v42, %v1562_v20  ;;  %v1803_v42 = vpack.c.bf16 %v5627_v25, %v7379_v52 }
 0x3ca   : > { %v7463_v31 = vpack.c.bf16 %v1529_v12, %v1504_v40  ;;  %1967 = vmatpush1.bf16.msra.mxu0 %v7314_v26 }
 0x3cb   : > { %1968 = vmatprep.subr.bf16.mxu0 %v7324_v5 }
 0x3cc   : > { %2002 = vmatpush1.bf16.msra.mxu1 %v7324_v5  ;;  %v7468_v55 = vpop.permute.xlu1 %1458  ;;  %v1587_v57 = vpop.permute.xlu0 %1586 }
 0x3cd   : > { %v1594_v0 = vsel %vm743_vm10, %v5324_v58, %v1587_v57  ;;  %2003 = vmatprep.subr.bf16.mxu1 %v7463_v31 }
 0x3ce   : > { %v1604_v26 = vpack.c.bf16 %v1594_v0, %v7473_v63  ;;  %1969 = vmatpush1.bf16.msra.mxu0 %v7328_v3  ;;  %v1463_v3 = vsel %vm479_vm2, %v1457_v59, %v7468_v55 }
 0x3cf   : > { %1970 = vmatprep.subr.bf16.mxu0 %v7356_v46  ;;  %v7500_v30 = vpack.c.bf16 %v1463_v3, %v7069_v53 }
 0x3d0   : > { %2004 = vmatpush1.bf16.msra.mxu1 %v7356_v46  ;;  %v1651_v5 = vpop.permute.xlu1 %1650  ;;  %v1627_v21 = vpop.permute.xlu0 %1626  ;;  %v1802_v46 = vpack.c.bf16 %v5627_v25, %v7386_v7 }
 0x3d1   : > { %v1658_v11 = vsel %vm875_vm14, %v5334_v8, %v1651_v5  ;;  %v1634_v58 = vsel %vm809_vm12, %v5329_v60, %v1627_v21  ;;  %2005 = vmatprep.subr.bf16.mxu1 %v1604_v26  ;;  %v7505_v60 = vld [vmem:[%s8445_s3] ss:$8 sps:$4 sm:$0xff]  }
 0x3d2   : > { %v1668_v54 = vpack.c.bf16 %v1658_v11, %v1634_v58  ;;  %1971 = vmatpush1.bf16.msra.mxu0 %v7359_v27 }
 0x3d3   : > { %1972 = vmatprep.subr.bf16.mxu0 %v1803_v42 }
 0x3d4   : > { %2006 = vmatpush1.bf16.msra.mxu1 %v7393_v1  ;;  %v7497_v52 = vpop.permute.xlu1 %1522  ;;  %v1499_v8 = vpop.permute.xlu0 %1498 }
 0x3d5   : > { %2007 = vmatprep.subr.bf16.mxu1 %v1668_v54  ;;  %v1528_v27 = vsel %vm1526_vm15, %v1521_v29, %v7497_v52  ;;  %v1503_v7 = vsel %vm8708_vm13, %v1497_v33, %v1499_v8 }
 0x3d6   : > { %1973 = vmatpush1.bf16.msra.mxu0 %v1802_v46  ;;  %v7514_v23 = vpack.c.bf16 %v1528_v27, %v1503_v7 }
 0x3d7   : > { %2034 = vmatprep.subr.bf16.mxu0 %v7500_v30 }
 0x3d8   : > { %2008 = vmatpush1.bf16.msra.mxu1 %v7418_v28  ;;  %v1716_v53 = vpop.permute.xlu1 %1715  ;;  %v1691_v1 = vpop.permute.xlu0 %1690 }
 0x3d9   : > { %v1724_v9 = vsel %vm1721_vm9, %v5344_v49, %v1716_v53  ;;  %v1699_v47 = vsel %vm1696_vm8, %v5339_v19, %v1691_v1  ;;  %1981 = vmatmul.mubr.bf16.vlgmr.msra.gmra.mrb[8].mxu0 %v7505_v60 }
 0x3da   : > { %v1734_v33 = vpack.c.bf16 %v1724_v9, %v1699_v47  ;;  %2035 = vmatpush1.bf16.msra.mxu0 %v7452_v35  ;;  %4272 = vmatprep.mubr.msk.bf16.mxu0 %vm1206_vm0, %v7087_v22 }
 0x3db   : > { %2036 = vmatprep.subr.bf16.mxu0 %v7514_v23 }
 0x3dc   : > { %v1589_v28 = vpop.permute.xlu1 %1588  ;;  %v1564_v14 = vpop.permute.xlu0 %1563  ;;  %2009 = vmatprep.subr.bf16.mxu1 %v1734_v33 }
 0x3dd   : > { %v1593_v49 = vsel %vm743_vm10, %v1587_v57, %v1589_v28  ;;  %v1569_v62 = vsel %vm1567_vm4, %v1562_v20, %v1564_v14  ;;  %2010 = vmatpush1.bf16.msra.mxu1 %v7446_v32 }
 0x3de   : > { %v7534_v19 = vpack.c.bf16 %v1593_v49, %v1569_v62  ;;  %2011 = vmatprep.subr.bf16.mxu1 %v7500_v30  ;;  %2037 = vmatpush1.bf16.msra.mxu0 %v7463_v31  ;;  %v1805_v32 = vpack.c.bf16 %v5627_v25, %v1569_v62 }
 0x3e0   : > { %v1653_v59 = vpop.permute.xlu1 %1652  ;;  %v1629_v39 = vpop.permute.xlu0 %1628  ;;  %2038 = vmatprep.subr.bf16.mxu0 %v7534_v19 }
 0x3e1   : > { %v1657_v41 = vsel %vm875_vm14, %v1651_v5, %v1653_v59  ;;  %v1633_v29 = vsel %vm809_vm12, %v1627_v21, %v1629_v39  ;;  %2012 = vmatpush1.bf16.msra.mxu1 %v7452_v35 }
 0x3e2   : > { %v7544_v20 = vpack.c.bf16 %v1657_v41, %v1633_v29  ;;  %2013 = vmatprep.subr.bf16.mxu1 %v7514_v23  ;;  %2039 = vmatpush1.bf16.msra.mxu0 %v1604_v26  ;;  %v1804_v26 = vpack.c.bf16 %v5627_v25, %v7473_v63 }
 0x3e4   : > { %v7548_v40 = vpop.permute.xlu1 %1717  ;;  %v1693_v12 = vpop.permute.xlu0 %1692  ;;  %2040 = vmatprep.subr.bf16.mxu0 %v7544_v20 }
 0x3e5   : > { %v1723_v57 = vsel %vm1721_vm9, %v1716_v53, %v7548_v40  ;;  %v1698_v0 = vsel %vm1696_vm8, %v1691_v1, %v1693_v12  ;;  %2014 = vmatpush1.bf16.msra.mxu1 %v7463_v31 }
 0x3e6   : > { %v7557_v35 = vpack.c.bf16 %v1723_v57, %v1698_v0  ;;  %2015 = vmatprep.subr.bf16.mxu1 %v1805_v32  ;;  %2041 = vmatpush1.bf16.msra.mxu0 %v1668_v54 }
 0x3e8   : > { %v1501_v5 = vpop.permute.xlu1 %1500  ;;  %v1461_v21 = vpop.permute.xlu0 %1460  ;;  %2042 = vmatprep.subr.bf16.mxu0 %v7557_v35 }
 0x3e9   : > { %v1462_v42 = vsel %vm479_vm2, %v7468_v55, %v1461_v21  ;;  %v1469_v31 = vsel %vm479_vm2, %v1461_v21, %v5293_v34  ;;  %2016 = vmatpush1.bf16.msra.mxu1 %v1804_v26  ;;  %v1502_v54 = vsel %vm8709_vm5, %v1499_v8, %v1501_v5  ;;  %v8710_v55 = vunpack.i.l.bf16 %v7181_v13 }
 0x3ea   : > { %v1476_v11 = vpack.c.bf16 %v1462_v42, %v7082_v61  ;;  %v1477_v58 = vpack.c.bf16 %v1469_v31, %v7126_v44  ;;  %2043 = vmatpush1.bf16.msra.mxu0 %v1734_v33  ;;  %v8712_v44 = vunpack.i.l.bf16 %v7209_v18  ;;  %v8713_v18 = vunpack.i.l.bf16 %v7240_v38 }
 0x3eb   : > { %v1509_v6 = vsel %vm8711_vm3, %v1501_v5, %v8710_v55 }
 0x3ec   : > { %v1566_v63 = vpop.permute.xlu1 %1565  ;;  %v1525_v3 = vpop.permute.xlu0 %1524  ;;  %2024 = vmatmul.mubr.bf16.vlgmr.msra.gmra.mrb[8].mxu1 %v7505_v60  ;;  %2044 = vmatprep.subr.bf16.mxu0 %v1476_v11 }
 0x3ed   : > { %v1527_v61 = vsel %vm1526_vm15, %v7497_v52, %v1525_v3  ;;  %v1534_v34 = vsel %vm1526_vm15, %v1525_v3, %v8712_v44  ;;  %2077 = vmatprep.subr.bf16.mxu1 %v1477_v58  ;;  %4273 = vmatprep.mubr.msk.bf16.mxu1 %vm1206_vm0, %v7087_v22  ;;  %v1568_v52 = vsel %vm1567_vm4, %v1564_v14, %v1566_v63  ;;  %vm2969_vm0 = vcmask 1043456  }
 0x3ee   : > { %v1541_v46 = vpack.c.bf16 %v1527_v61, %v1502_v54  ;;  %v1542_v27 = vpack.c.bf16 %v1534_v34, %v1509_v6  ;;  %2078 = vmatpush1.bf16.msra.mxu1 %v1476_v11  ;;  %2045 = vmatpush1.bf16.msra.mxu0 %v7500_v30  ;;  %v1575_v7 = vsel %vm1567_vm4, %v1566_v63, %v8713_v18  ;;  %vm4142_vm15 = vcmask 1041408  }
 0x3ef   : > { %vm4138_vm4 = vcmask 687104  }
 0x3f0   : > { %v1631_v13 = vpop.permute.xlu1 %1630  ;;  %v1591_v8 = vpop.permute.xlu0 %1590  ;;  %2046 = vmatprep.subr.bf16.mxu0 %v1541_v46  ;;  %2079 = vmatprep.subr.bf16.mxu1 %v1542_v27 }
 0x3f1   : > { %v1592_v53 = vsel %vm743_vm10, %v1589_v28, %v1591_v8  ;;  %v1599_v30 = vsel %vm743_vm10, %v1591_v8, %v7151_v45  ;;  %v1632_v38 = vsel %vm809_vm12, %v1629_v39, %v1631_v13  ;;  %v1639_v47 = vsel %vm809_vm12, %v1631_v13, %v7149_v43 }
 0x3f2   : > { %v1606_v22 = vpack.c.bf16 %v1592_v53, %v1568_v52  ;;  %v1607_v1 = vpack.c.bf16 %v1599_v30, %v1575_v7  ;;  %2080 = vmatpush1.bf16.msra.mxu1 %v1541_v46  ;;  %2047 = vmatpush1.bf16.msra.mxu0 %v7514_v23  ;;  %vm2965_vm12 = vcmask 203776  }
 0x3f4   : > { %v1655_v9 = vpop.permute.xlu0 %1654  ;;  %2048 = vmatprep.subr.bf16.mxu0 %v1606_v22  ;;  %2081 = vmatprep.subr.bf16.mxu1 %v1607_v1  ;;  %v1695_v28 = vpop.permute.xlu1 %1694 }
 0x3f5   : > { %v1656_v33 = vsel %vm875_vm14, %v1653_v59, %v1655_v9  ;;  %v1663_v45 = vsel %vm875_vm14, %v1655_v9, %v7242_v24  ;;  %v1697_v62 = vsel %vm1696_vm8, %v1693_v12, %v1695_v28  ;;  %v1704_v43 = vsel %vm1696_vm8, %v1695_v28, %v7274_v17 }
 0x3f6   : > { %v1670_v14 = vpack.c.bf16 %v1656_v33, %v1632_v38  ;;  %v1671_v23 = vpack.c.bf16 %v1663_v45, %v1639_v47  ;;  %2082 = vmatpush1.bf16.msra.mxu1 %v1606_v22  ;;  %2049 = vmatpush1.bf16.msra.mxu0 %v7534_v19  ;;  %v1807_v17 = vpack.c.bf16 %v5627_v25, %v1575_v7  ;;  %vm4044_vm14 = vcmask 982016  }
 0x3f8   : > { %v1720_v49 = vpop.permute.xlu0 %1719  ;;  %2050 = vmatprep.subr.bf16.mxu0 %v1670_v14  ;;  %2083 = vmatprep.subr.bf16.mxu1 %v1671_v23 }
 0x3f9   : > { %v1722_v24 = vsel %vm1721_vm9, %v7548_v40, %v1720_v49  ;;  %v1729_v59 = vsel %vm1721_vm9, %v1720_v49, %v7312_v48  ;;  %v1806_v48 = vpack.c.bf16 %v5627_v25, %v1568_v52 }
 0x3fa   : > { %v1736_v39 = vpack.c.bf16 %v1722_v24, %v1697_v62  ;;  %v1737_v19 = vpack.c.bf16 %v1729_v59, %v1704_v43  ;;  %2084 = vmatpush1.bf16.msra.mxu1 %v1670_v14  ;;  %2051 = vmatpush1.bf16.msra.mxu0 %v7544_v20 }
 0x3fc   : > { %2052 = vmatprep.subr.bf16.mxu0 %v1736_v39  ;;  %2085 = vmatprep.subr.bf16.mxu1 %v1737_v19 }
 0x3fe   : > { %2086 = vmatpush1.bf16.msra.mxu1 %v1736_v39  ;;  %2053 = vmatpush1.bf16.msra.mxu0 %v7557_v35 }
 0x3ff   : > { %2087 = vmatprep.subr.bf16.mxu1 %v7205_v51  ;;  %2054 = vmatprep.subr.bf16.mxu0 %v1477_v58 }
 0x402   : > { %2088 = vmatpush1.bf16.msra.mxu1 %v1477_v58  ;;  %2055 = vmatpush1.bf16.msra.mxu0 %v1476_v11 }
 0x403   : > { %2089 = vmatprep.subr.bf16.mxu1 %v7238_v56  ;;  %2056 = vmatprep.subr.bf16.mxu0 %v1542_v27 }
 0x406   : > { %2090 = vmatpush1.bf16.msra.mxu1 %v1542_v27  ;;  %2057 = vmatpush1.bf16.msra.mxu0 %v1541_v46 }
 0x407   : > { %2091 = vmatprep.subr.bf16.mxu1 %v7272_v4  ;;  %2058 = vmatprep.subr.bf16.mxu0 %v1807_v17  ;;  %v1809_v4 = vpack.c.bf16 %v5627_v25, %v7225_v36  ;;  %v5432_v17 = vld [vmem:[%s8447_s5] sm:$0xff]  }
 0x40a   : > { %2092 = vmatpush1.bf16.msra.mxu1 %v1607_v1  ;;  %2059 = vmatpush1.bf16.msra.mxu0 %v1806_v48  ;;  %v5433_v48 = vld [vmem:[%s8447_s5 + $0x48] sm:$0xff]  }
 0x40b   : > { %2093 = vmatprep.subr.bf16.mxu1 %v7308_v16  ;;  %v1808_v16 = vpack.c.bf16 %v5627_v25, %v7267_v50 }
 0x40d   : > { %2067 = vmatmul.mubr.bf16.vlgmr.msra.gmra.mrb[12].mxu0 %v7505_v60 }
 0x40e   : > { %2094 = vmatpush1.bf16.msra.mxu1 %v1671_v23 }
 0x40f   : > { %2095 = vmatprep.subr.bf16.mxu1 %v7338_v37  ;;  %v1929_v37 = vpop.permute.xlu1 %1928 }
 0x412   : > { %2096 = vmatpush1.bf16.msra.mxu1 %v1737_v19  ;;  %v5431_v19 = vld [vmem:[%s8447_s5 + $0x40] sm:$0xff]  }
 0x413   : > { %2097 = vmatprep.subr.bf16.mxu1 %v7166_v10 }
 0x416   : > { %2098 = vmatpush1.bf16.msra.mxu1 %v7205_v51  ;;  %v1934_v51 = vpop.permute.xlu0 %1933 }
 0x417   : > { %2099 = vmatprep.subr.bf16.mxu1 %v7216_v2 }
 0x41a   : > { %2100 = vmatpush1.bf16.msra.mxu1 %v7238_v56 }
 0x41b   : > { %2101 = vmatprep.subr.bf16.mxu1 %v1809_v4 }
 0x41e   : > { %2102 = vmatpush1.bf16.msra.mxu1 %v1808_v16  ;;  %v5434_v16 = vld [vmem:[%s8447_s5 + $0x8] sm:$0xff]  }
 0x41f   : > { %4466 = vmatprep.subr.bf16.mxu1 %v5431_v19 }
 0x421   : > { %2110 = vmatmul.mubr.bf16.vlgmr.msra.gmra.mrb[12].mxu1 %v7505_v60 }
 0x422   : > { %4467 = vmatpush3.bf16.msra.mxu1 %v5432_v17 }
 0x423   : > { %4468 = vmatprep.subr.bf16.mxu1 %v5433_v48 }
 0x426   : > { %4469 = vmatpush3.bf16.msra.mxu1 %v5434_v16 }
 0x4ac   : > { %v1982_v41 = vpop.f32.mrb[8].mxu0 }
 0x4ad   : > { %v1984_v29 = vpop.f32.mrb[9].mxu0  ;;  %v7656_v35 = vadd.f32 %v1982_v41, %v1929_v37  ;;  %v5436_v41 = vld [vmem:[%s8447_s5 + $0x10] sm:$0xff]  }
 0x4ae   : > { %v1986_v10 = vpop.f32.mrb[10].mxu0  ;;  %v7641_v20 = vadd.f32 %v1984_v29, %v1929_v37  ;;  %v5437_v29 = vld [vmem:[%s8447_s5 + $0x58] sm:$0xff]  }
 0x4af   : > { %v1988_v2 = vpop.f32.mrb[11].mxu0  ;;  %v7658_v26 = vadd.f32 %v1986_v10, %v1934_v51  ;;  %v2120_v3 = vmax.f32 %v7656_v35, 0.0  ;;  %v5438_v10 = vld [vmem:[%s8447_s5 + $0x18] sm:$0xff]   ;;  %v5461_v35 = vld [vmem:[%s8447_s5 + $0x148] sm:$0xff]  }
 0x4b0   : > { %v7643_v32 = vadd.f32 %v1988_v2, %v1934_v51  ;;  %v2121_v36 = vmax.f32 %v7641_v20, 0.0  ;;  %v5440_v2 = vld [vmem:[%s8447_s5 + $0x20] sm:$0xff]  }
 0x4b1   : > { %v2128_v54 = vmax.f32 %v7658_v26, 0.0  ;;  %v5459_v26 = vld [vmem:[%s8447_s5 + $0x100] sm:$0xff]  }
 0x4b2   : > { %v2129_v56 = vmax.f32 %v7643_v32, 0.0 }
 0x4b3   : > { %v5361_v61 = vpack.i.bf16 %v2128_v54, %v2120_v3 }
 0x4b4   : > { %v5346_v50 = vpack.i.bf16 %v2129_v56, %v2121_v36 }
 0x4b6   : > { %5347 = vrot.lane.b32.xlu1 %v5346_v50, %s8592_s21  ;;  %v5441_v50 = vld [vmem:[%s8447_s5 + $0x68] sm:$0xff]  }
 0x4bf   : > { %v2025_v60 = vpop.f32.mrb[8].mxu1 }
 0x4c0   : > { %v7652_v40 = vadd.f32 %v2025_v60, %v1929_v37  ;;  %v2027_v12 = vpop.f32.mrb[9].mxu1  ;;  %v5442_v60 = vld [vmem:[%s8447_s5 + $0x28] sm:$0xff]  }
 0x4c1   : > { %v7654_v57 = vadd.f32 %v2027_v12, %v1929_v37  ;;  %v2029_v0 = vpop.f32.mrb[10].mxu1 }
 0x4c2   : > { %v7660_v5 = vadd.f32 %v2029_v0, %v1934_v51  ;;  %v2031_v21 = vpop.f32.mrb[11].mxu1  ;;  %v2122_v31 = vmax.f32 %v7652_v40, 0.0  ;;  %v5443_v0 = vld [vmem:[%s8447_s5 + $0x70] sm:$0xff]  }
 0x4c3   : > { %v7662_v42 = vadd.f32 %v2031_v21, %v1934_v51  ;;  %v2123_v58 = vmax.f32 %v7654_v57, 0.0  ;;  %v5444_v21 = vld [vmem:[%s8447_s5 + $0x30] sm:$0xff]  }
 0x4c4   : > { %v2130_v11 = vmax.f32 %v7660_v5, 0.0 }
 0x4c5   : > { %v2131_v63 = vmax.f32 %v7662_v42, 0.0  ;;  %v5473_v42 = vld [vmem:[%s8447_s5 + $0x160] sm:$0xff]  }
 0x4c6   : > { %v5351_v55 = vpack.i.bf16 %v2130_v11, %v2122_v31 }
 0x4c7   : > { %v5356_v6 = vpack.i.bf16 %v2131_v63, %v2123_v58 }
 0x4c8   : > { %5352 = vrot.lane.b32.xlu0 %v5351_v55, %s8592_s21 }
 0x4c9   : > { %5357 = vrot.lane.b32.xlu1 %v5356_v6, %s8592_s21 }
 0x4cc   : > { %5362 = vrot.lane.b32.xlu0 %v5361_v61, %s8592_s21 }
 0x4e0   : > { %v2068_v44 = vpop.f32.mrb[12].mxu0 }
 0x4e1   : > { %v7685_v34 = vadd.f32 %v2068_v44, %v1929_v37  ;;  %v2070_v46 = vpop.f32.mrb[13].mxu0 }
 0x4e2   : > { %v7687_v27 = vadd.f32 %v2070_v46, %v1929_v37  ;;  %v2072_v13 = vpop.f32.mrb[14].mxu0 }
 0x4e3   : > { %v7689_v8 = vadd.f32 %v2072_v13, %v1934_v51  ;;  %v2074_v52 = vpop.f32.mrb[15].mxu0  ;;  %v2124_v7 = vmax.f32 %v7685_v34, 0.0  ;;  %v5477_v34 = vld [vmem:[%s8447_s5 + $0x168] sm:$0xff]  }
 0x4e4   : > { %v7691_v18 = vadd.f32 %v2074_v52, %v1934_v51  ;;  %v2125_v30 = vmax.f32 %v7687_v27, 0.0  ;;  %v5445_v52 = vld [vmem:[%s8447_s5 + $0x78] sm:$0xff]  }
 0x4e5   : > { %v2132_v53 = vmax.f32 %v7689_v8, 0.0 }
 0x4e6   : > { %v2133_v22 = vmax.f32 %v7691_v18, 0.0 }
 0x4e7   : > { %v5366_v1 = vpack.i.bf16 %v2132_v53, %v2124_v7 }
 0x4e8   : > { %v5371_v9 = vpack.i.bf16 %v2133_v22, %v2125_v30 }
 0x4e9   : > { %5367 = vrot.lane.b32.xlu1 %v5366_v1, %s8592_s21 }
 0x4ea   : > { %5372 = vrot.lane.b32.xlu0 %v5371_v9, %s8592_s21 }
 0x4f4   : > { %v2111_v38 = vpop.f32.mrb[12].mxu1 }
 0x4f5   : > { %v7707_v47 = vadd.f32 %v2111_v38, %v1929_v37  ;;  %v2113_v33 = vpop.f32.mrb[13].mxu1  ;;  %v5446_v38 = vld [vmem:[%s8447_s5 + $0x38] sm:$0xff]  }
 0x4f6   : > { %v7709_v45 = vadd.f32 %v2113_v33, %v1929_v37  ;;  %v2115_v28 = vpop.f32.mrb[14].mxu1  ;;  %v5435_v37 = vld [vmem:[%s8447_s5 + $0x50] sm:$0xff]  }
 0x4f7   : > { %v7711_v14 = vadd.f32 %v2115_v28, %v1934_v51  ;;  %v2117_v23 = vpop.f32.mrb[15].mxu1  ;;  %v2126_v62 = vmax.f32 %v7707_v47, 0.0  ;;  %4470 = vmatprep.subr.bf16.mxu1 %v5435_v37 }
 0x4f8   : > { %v7713_v49 = vadd.f32 %v2117_v23, %v1934_v51  ;;  %v2127_v24 = vmax.f32 %v7709_v45, 0.0  ;;  %4471 = vmatpush3.bf16.msra.mxu1 %v5436_v41  ;;  %v5439_v51 = vld [vmem:[%s8447_s5 + $0x60] sm:$0xff]  }
 0x4f9   : > { %v2134_v43 = vmax.f32 %v7711_v14, 0.0  ;;  %4472 = vmatprep.subr.bf16.mxu1 %v5437_v29  ;;  %v5447_v23 = vld [vmem:[%s8447_s5 + $0xc0] sm:$0xff]  }
 0x4fa   : > { %v2135_v59 = vmax.f32 %v7713_v49, 0.0  ;;  %v5457_v29 = vld [vmem:[%s8447_s5 + $0x140] sm:$0xff]  }
 0x4fb   : > { %v5376_v39 = vpack.i.bf16 %v2134_v43, %v2126_v62  ;;  %4510 = vmatprep.subr.bf16.mxu0 %v5457_v29 }
 0x4fc   : > { %v5381_v4 = vpack.i.bf16 %v2135_v59, %v2127_v24  ;;  %4473 = vmatpush3.bf16.msra.mxu1 %v5438_v10  ;;  %4511 = vmatpush3.bf16.msra.mxu0 %v5459_v26  ;;  %v5467_v10 = vld [vmem:[%s8447_s5 + $0x110] sm:$0xff]  }
 0x4fd   : > { %5377 = vrot.lane.b32.xlu1 %v5376_v39, %s8592_s21  ;;  %4474 = vmatprep.subr.bf16.mxu1 %v5439_v51 }
 0x4fe   : > { %5382 = vrot.lane.b32.xlu0 %v5381_v4, %s8592_s21  ;;  %4512 = vmatprep.subr.bf16.mxu0 %v5461_v35 }
 0x500   : > { %4475 = vmatpush3.bf16.msra.mxu1 %v5440_v2 }
 0x501   : > { %4476 = vmatprep.subr.bf16.mxu1 %v5441_v50 }
 0x504   : > { %4477 = vmatpush3.bf16.msra.mxu1 %v5442_v60 }
 0x505   : > { %4478 = vmatprep.subr.bf16.mxu1 %v5443_v0 }
 0x508   : > { %4479 = vmatpush3.bf16.msra.mxu1 %v5444_v21  ;;  %v5469_v21 = vld [vmem:[%s8447_s5 + $0x158] sm:$0xff]  }
 0x509   : > { %4480 = vmatprep.subr.bf16.mxu1 %v5445_v52 }
 0x50c   : > { %4481 = vmatpush3.bf16.msra.mxu1 %v5446_v38  ;;  %v5485_v38 = vld [vmem:[%s8447_s5 + $0x178] sm:$0xff]  }
 0x50d   : > { %4488 = vmatprep.subr.bf16.mxu1 %v5447_v23 }
 0x528   : > { %v5348_v12 = vpop.permute.xlu1 %5347 }
 0x529   : > { %v5350_v6 = vunpack.i.h.bf16 %v5348_v12  ;;  %v5349_v61 = vunpack.i.l.bf16 %v5348_v12 }
 0x53a   : > { %v5353_v55 = vpop.permute.xlu0 %5352 }
 0x53b   : > { %v5355_v44 = vunpack.i.h.bf16 %v5353_v55  ;;  %v5354_v46 = vunpack.i.l.bf16 %v5353_v55  ;;  %v5358_v13 = vpop.permute.xlu1 %5357 }
 0x53c   : > { %v5360_v1 = vunpack.i.h.bf16 %v5358_v13  ;;  %v5359_v9 = vunpack.i.l.bf16 %v5358_v13 }
 0x53d   : > { %v2178_v33 = vsel %vm479_vm2, %v5349_v61, %v5354_v46  ;;  %v2179_v28 = vsel %vm479_vm2, %v5350_v6, %v5355_v44 }
 0x53e   : > { %v7786_v39 = vmax.f32 %v2121_v36, %v2178_v33  ;;  %v7790_v19 = vmax.f32 %v2129_v56, %v2179_v28  ;;  %v2177_v17 = vsel %vm479_vm2, %v5355_v44, %v5360_v1  ;;  %v2176_v48 = vsel %vm479_vm2, %v5354_v46, %v5359_v9  ;;  %v7796_v4 = vpop.permute.xlu0 %5362  ;;  %v5486_v28 = vld [vmem:[%s8447_s5 + $0x138] sm:$0xff]  }
 0x53f   : > { %v7800_v16 = vmax.f32 %v2130_v11, %v2177_v17  ;;  %v7804_v20 = vmax.f32 %v2122_v31, %v2176_v48  ;;  %v5365_v32 = vunpack.i.h.bf16 %v7796_v4  ;;  %v5364_v36 = vunpack.i.l.bf16 %v7796_v4 }
 0x540   : > { %v5386_v56 = vpack.i.bf16 %v7790_v19, %v7786_v39 }
 0x541   : > { %v2181_v37 = vsel %vm479_vm2, %v5365_v32, %v5350_v6  ;;  %v2180_v40 = vsel %vm479_vm2, %v5364_v36, %v5349_v61  ;;  %v5391_v5 = vpack.i.bf16 %v7800_v16, %v7804_v20  ;;  %v5470_v61 = vld [vmem:[%s8447_s5 + $0x118] sm:$0xff]  }
 0x542   : > { %v7822_v31 = vmax.f32 %v2128_v54, %v2181_v37  ;;  %v7826_v11 = vmax.f32 %v2120_v3, %v2180_v40  ;;  %5387 = vrot.lane.b32.xlu1 %v5386_v56, %s8581_s0  ;;  %v5463_v3 = vld [vmem:[%s8447_s5 + $0x108] sm:$0xff]   ;;  %v5465_v54 = vld [vmem:[%s8447_s5 + $0x150] sm:$0xff]  }
 0x543   : > { %5392 = vrot.lane.b32.xlu0 %v5391_v5, %s8581_s0  ;;  %4513 = vmatpush3.bf16.msra.mxu0 %v5463_v3 }
 0x544   : > { %v5396_v41 = vpack.i.bf16 %v7822_v31, %v7826_v11  ;;  %4514 = vmatprep.subr.bf16.mxu0 %v5465_v54 }
 0x546   : > { %5397 = vrot.lane.b32.xlu1 %v5396_v41, %s8581_s0 }
 0x547   : > { %4515 = vmatpush3.bf16.msra.mxu0 %v5467_v10 }
 0x548   : > { %4516 = vmatprep.subr.bf16.mxu0 %v5469_v21 }
 0x54b   : > { %4517 = vmatpush3.bf16.msra.mxu0 %v5470_v61  ;;  %v5449_v61 = vld [vmem:[%s8447_s5 + $0xc8] sm:$0xff]  }
 0x54c   : > { %4518 = vmatprep.subr.bf16.mxu0 %v5473_v42  ;;  %v5454_v42 = vld [vmem:[%s8447_s5 + $0x98] sm:$0xff]  }
 0x55b   : > { %v5368_v51 = vpop.permute.xlu1 %5367 }
 0x55c   : > { %v5370_v2 = vunpack.i.h.bf16 %v5368_v51  ;;  %v5369_v50 = vunpack.i.l.bf16 %v5368_v51  ;;  %v5373_v60 = vpop.permute.xlu0 %5372 }
 0x55d   : > { %v5375_v12 = vunpack.i.h.bf16 %v5373_v60  ;;  %v5374_v0 = vunpack.i.l.bf16 %v5373_v60 }
 0x55e   : > { %v2174_v55 = vsel %vm479_vm2, %v5359_v9, %v5369_v50  ;;  %v2175_v6 = vsel %vm479_vm2, %v5360_v1, %v5370_v2  ;;  %v5482_v9 = vld [vmem:[%s8447_s5 + $0x130] sm:$0xff]  }
 0x55f   : > { %v7863_v44 = vmax.f32 %v2123_v58, %v2174_v55  ;;  %v7867_v46 = vmax.f32 %v2131_v63, %v2175_v6  ;;  %v2173_v13 = vsel %vm479_vm2, %v5370_v2, %v5375_v12  ;;  %v2172_v52 = vsel %vm479_vm2, %v5369_v50, %v5374_v0  ;;  %v5474_v58 = vld [vmem:[%s8447_s5 + $0x120] sm:$0xff]  }
 0x560   : > { %v7875_v1 = vmax.f32 %v2132_v53, %v2173_v13  ;;  %v7879_v57 = vmax.f32 %v2124_v7, %v2172_v52  ;;  %4519 = vmatpush3.bf16.msra.mxu0 %v5474_v58  ;;  %v5478_v7 = vld [vmem:[%s8447_s5 + $0x128] sm:$0xff]   ;;  %v5481_v53 = vld [vmem:[%s8447_s5 + $0x170] sm:$0xff]   ;;  %v5453_v52 = vld [vmem:[%s8447_s5 + $0xd8] sm:$0xff]  }
 0x561   : > { %v5401_v63 = vpack.i.bf16 %v7867_v46, %v7863_v44  ;;  %4520 = vmatprep.subr.bf16.mxu0 %v5477_v34  ;;  %v5450_v13 = vld [vmem:[%s8447_s5 + $0x88] sm:$0xff]   ;;  %v5455_v58 = vld [vmem:[%s8447_s5 + $0xe0] sm:$0xff]  }
 0x562   : > { %v5406_v8 = vpack.i.bf16 %v7875_v1, %v7879_v57  ;;  %v5460_v34 = vld [vmem:[%s8447_s5 + $0xa8] sm:$0xff]  }
 0x563   : > { %5402 = vrot.lane.b32.xlu0 %v5401_v63, %s8581_s0  ;;  %v5456_v63 = vld [vmem:[%s8447_s5 + $0xa0] sm:$0xff]  }
 0x564   : > { %5407 = vrot.lane.b32.xlu1 %v5406_v8, %s8581_s0  ;;  %4521 = vmatpush3.bf16.msra.mxu0 %v5478_v7  ;;  %v5458_v8 = vld [vmem:[%s8447_s5 + $0xe8] sm:$0xff]   ;;  %v5462_v7 = vld [vmem:[%s8447_s5 + $0xf0] sm:$0xff]  }
 0x565   : > { %4522 = vmatprep.subr.bf16.mxu0 %v5481_v53  ;;  %v5464_v53 = vld [vmem:[%s8447_s5 + $0xb0] sm:$0xff]  }
 0x568   : > { %4523 = vmatpush3.bf16.msra.mxu0 %v5482_v9 }
 0x569   : > { %4524 = vmatprep.subr.bf16.mxu0 %v5485_v38  ;;  %v5466_v38 = vld [vmem:[%s8447_s5 + $0xf8] sm:$0xff]  }
 0x56c   : > { %4525 = vmatpush3.bf16.msra.mxu0 %v5486_v28 }
 0x56d   : > { %4618 = vmatprep.subr.bf16.mxu0 %v5627_v25 }
 0x56f   : > { %v5378_v33 = vpop.permute.xlu1 %5377 }
 0x570   : > { %v5380_v23 = vunpack.i.h.bf16 %v5378_v33  ;;  %v5379_v17 = vunpack.i.l.bf16 %v5378_v33  ;;  %v5383_v48 = vpop.permute.xlu0 %5382 }
 0x571   : > { %v5385_v56 = vunpack.i.h.bf16 %v5383_v48  ;;  %v5384_v37 = vunpack.i.l.bf16 %v5383_v48 }
 0x572   : > { %v2170_v40 = vsel %vm479_vm2, %v5374_v0, %v5379_v17  ;;  %v2171_v5 = vsel %vm479_vm2, %v5375_v12, %v5380_v23 }
 0x573   : > { %v7918_v41 = vmax.f32 %v2125_v30, %v2170_v40  ;;  %v7922_v29 = vmax.f32 %v2133_v22, %v2171_v5  ;;  %v2169_v26 = vsel %vm479_vm2, %v5380_v23, %v5385_v56  ;;  %v2168_v35 = vsel %vm479_vm2, %v5379_v17, %v5384_v37  ;;  %v5468_v40 = vld [vmem:[%s8447_s5 + $0xb8] sm:$0xff]  }
 0x574   : > { %v7930_v3 = vmax.f32 %v2134_v43, %v2169_v26  ;;  %v2182_v27 = vsel %vm479_vm2, %v5384_v37, %v5364_v36  ;;  %v2183_v18 = vsel %vm479_vm2, %v5385_v56, %v5365_v32  ;;  %v7942_v30 = vmax.f32 %v2126_v62, %v2168_v35 }
 0x575   : > { %v7946_v22 = vmax.f32 %v2127_v24, %v2182_v27  ;;  %v7950_v14 = vmax.f32 %v2135_v59, %v2183_v18  ;;  %v5411_v43 = vpack.i.bf16 %v7922_v29, %v7918_v41  ;;  %v5471_v18 = vld [vmem:[%s8447_s5 + $0x1c0] sm:$0xff]   ;;  %vm2970_vm2 = vcmask 1044480  }
 0x576   : > { %v5416_v4 = vpack.i.bf16 %v7930_v3, %v7942_v30 }
 0x577   : > { %5412 = vrot.lane.b32.xlu0 %v5411_v43, %s8581_s0  ;;  %v5421_v47 = vpack.i.bf16 %v7950_v14, %v7946_v22 }
 0x578   : > { %5417 = vrot.lane.b32.xlu1 %v5416_v4, %s8581_s0 }
 0x57b   : > { %5422 = vrot.lane.b32.xlu0 %v5421_v47, %s8581_s0  ;;  %s5547_s0 = sshll.u32 %s5634_s15, 4  ;;  %s5548_s0 = int_to_ptr.vmem [resolvable:$false] %s5547_s0 }
 0x57c   : > { %s5549_s16 = scalar_lea.vmem %s5548_s0, 32  ;;  %p5550_p0 = scmp.lt.s32.totalorder %s8402_s24, %s5548_s0 }
 0x57d   : > { %p5551_p1 = scmp.lt.s32.totalorder %s5549_s16, %s5543_s26 }
 0x57f   : > { %p5552_p2 = por %p5551_p1, %p5550_p0 }
 0x581   : > { %p5553_p3 = pnand %p5552_p2, %p5546_p13 }
 0x5b4   : > { %v5388_v45 = vpop.permute.xlu1 %5387 }
 0x5b5   : > { %v5390_v62 = vunpack.i.h.bf16 %v5388_v45  ;;  %v5389_v49 = vunpack.i.l.bf16 %v5388_v45  ;;  %v5393_v24 = vpop.permute.xlu0 %5392  ;;  %v5475_v45 = vld [vmem:[%s8447_s5 + $0x1c8] sm:$0xff]  }
 0x5b6   : > { %v5395_v59 = vunpack.i.h.bf16 %v5393_v24  ;;  %v5394_v32 = vunpack.i.l.bf16 %v5393_v24 }
 0x5b8   : > { %v2243_v36 = vsel %vm743_vm10, %v5390_v62, %v5395_v59  ;;  %v2242_v54 = vsel %vm743_vm10, %v5389_v49, %v5394_v32  ;;  %v7965_v10 = vpop.permute.xlu1 %5397 }
 0x5b9   : > { %v5400_v51 = vunpack.i.h.bf16 %v7965_v10  ;;  %v5399_v2 = vunpack.i.l.bf16 %v7965_v10  ;;  %v2249_v50 = vmax.f32 %v7786_v39, %v2242_v54  ;;  %v2257_v60 = vmax.f32 %v7790_v19, %v2243_v36  ;;  %v5448_v39 = vld [vmem:[%s8447_s5 + $0x80] sm:$0xff]  }
 0x5bb   : > { %v2245_v12 = vsel %vm743_vm10, %v5400_v51, %v5390_v62  ;;  %v2244_v0 = vsel %vm743_vm10, %v5399_v2, %v5389_v49  ;;  %v2265_v21 = vpack.c.bf16 %v2257_v60, %v2249_v50  ;;  %v5480_v62 = vld [vmem:[%s8447_s5 + $0x190] sm:$0xff]   ;;  %v5483_v49 = vld [vmem:[%s8447_s5 + $0x1d8] sm:$0xff]   ;;  %v5487_v50 = vld [vmem:[%s8447_s5 + $0x1e0] sm:$0xff]  }
 0x5bc   : > { %v2256_v55 = vmax.f32 %v7822_v31, %v2245_v12  ;;  %v2248_v6 = vmax.f32 %v7826_v11, %v2244_v0  ;;  %v5451_v31 = vld [vmem:[%s8447_s5 + $0xd0] sm:$0xff]  }
 0x5bd   : > { %2816 = vmatprep.mubr.bf16.mxu1 %v2265_v21  ;;  %v5452_v11 = vld [vmem:[%s8447_s5 + $0x90] sm:$0xff]  }
 0x5be   : > { %v2264_v19 = vpack.c.bf16 %v2256_v55, %v2248_v6 }
 0x5c0   : > { %2817 = vmatmul.mubr.bf16.vlgmr.msra.gmra.mrb[16].mxu1 %v2264_v19 }
 0x5c1   : > { %4489 = vmatpush3.bf16.msra.mxu1 %v5448_v39 }
 0x5c2   : > { %4490 = vmatprep.subr.bf16.mxu1 %v5449_v61 }
 0x5c5   : > { %4491 = vmatpush3.bf16.msra.mxu1 %v5450_v13  ;;  %v5488_v13 = vld [vmem:[%s8447_s5 + $0x1a0] sm:$0xff]  }
 0x5c6   : > { %4492 = vmatprep.subr.bf16.mxu1 %v5451_v31 }
 0x5c9   : > { %4493 = vmatpush3.bf16.msra.mxu1 %v5452_v11 }
 0x5ca   : > { %4494 = vmatprep.subr.bf16.mxu1 %v5453_v52 }
 0x5cd   : > { %4495 = vmatpush3.bf16.msra.mxu1 %v5454_v42 }
 0x5ce   : > { %4496 = vmatprep.subr.bf16.mxu1 %v5455_v58 }
 0x5d1   : > { %4497 = vmatpush3.bf16.msra.mxu1 %v5456_v63 }
 0x5d2   : > { %4498 = vmatprep.subr.bf16.mxu1 %v5458_v8 }
 0x5d5   : > { %4499 = vmatpush3.bf16.msra.mxu1 %v5460_v34  ;;  %v5403_v9 = vpop.permute.xlu0 %5402 }
 0x5d6   : > { %4500 = vmatprep.subr.bf16.mxu1 %v5462_v7  ;;  %v5405_v33 = vunpack.i.h.bf16 %v5403_v9  ;;  %v5404_v28 = vunpack.i.l.bf16 %v5403_v9  ;;  %v5408_v23 = vpop.permute.xlu1 %5407 }
 0x5d7   : > { %v5410_v17 = vunpack.i.h.bf16 %v5408_v23  ;;  %v5409_v48 = vunpack.i.l.bf16 %v5408_v23 }
 0x5d8   : > { %v2240_v56 = vsel %vm743_vm10, %v5394_v32, %v5404_v28  ;;  %v2241_v37 = vsel %vm743_vm10, %v5395_v59, %v5405_v33  ;;  %v5484_v59 = vld [vmem:[%s8447_s5 + $0x198] sm:$0xff]  }
 0x5d9   : > { %4501 = vmatpush3.bf16.msra.mxu1 %v5464_v53  ;;  %v2250_v5 = vmax.f32 %v7804_v20, %v2240_v56  ;;  %v2258_v26 = vmax.f32 %v7800_v16, %v2241_v37  ;;  %v2239_v35 = vsel %vm743_vm10, %v5405_v33, %v5410_v17  ;;  %v2238_v27 = vsel %vm743_vm10, %v5404_v28, %v5409_v48  ;;  %v5472_v16 = vld [vmem:[%s8447_s5 + $0x180] sm:$0xff]   ;;  %v5494_v53 = vld [vmem:[%s8447_s5 + $0x1b8] sm:$0xff]   ;;  %v5496_v28 = vld [vmem:[%s8448_s6 + $0x8] sm:$0x1f]  }
 0x5da   : > { %4502 = vmatprep.subr.bf16.mxu1 %v5466_v38  ;;  %v2251_v43 = vmax.f32 %v7863_v44, %v2238_v27  ;;  %v2259_v4 = vmax.f32 %v7867_v46, %v2239_v35  ;;  %v5476_v44 = vld [vmem:[%s8447_s5 + $0x188] sm:$0xff]   ;;  %v5479_v46 = vld [vmem:[%s8447_s5 + $0x1d0] sm:$0xff]  }
 0x5db   : > { %v2266_v20 = vpack.c.bf16 %v2258_v26, %v2250_v5 }
 0x5dc   : > { %v2267_v47 = vpack.c.bf16 %v2259_v4, %v2251_v43 }
 0x5dd   : > { %4503 = vmatpush3.bf16.msra.mxu1 %v5468_v40 }
 0x5de   : > { %4532 = vmatprep.subr.bf16.mxu1 %v5471_v18  ;;  %2857 = vmatprep.mubr.bf16.mxu1 %v2267_v47 }
 0x5e0   : > { %2858 = vmatmul.mubr.bf16.vlgmr.msra.gmra.mrb[20].mxu1 %v2266_v20 }
 0x5e1   : > { %4533 = vmatpush3.bf16.msra.mxu1 %v5472_v16 }
 0x5e2   : > { %4534 = vmatprep.subr.bf16.mxu1 %v5475_v45 }
 0x5e5   : > { %4535 = vmatpush3.bf16.msra.mxu1 %v5476_v44 }
 0x5e6   : > { %4536 = vmatprep.subr.bf16.mxu1 %v5479_v46 }
 0x5e9   : > { %v5413_v24 = vpop.permute.xlu0 %5412  ;;  %4537 = vmatpush3.bf16.msra.mxu1 %v5480_v62 }
 0x5ea   : > { %v5415_v32 = vunpack.i.h.bf16 %v5413_v24  ;;  %v5414_v36 = vunpack.i.l.bf16 %v5413_v24  ;;  %v5418_v54 = vpop.permute.xlu1 %5417  ;;  %4538 = vmatprep.subr.bf16.mxu1 %v5483_v49 }
 0x5eb   : > { %v5420_v60 = vunpack.i.h.bf16 %v5418_v54  ;;  %v5419_v12 = vunpack.i.l.bf16 %v5418_v54 }
 0x5ec   : > { %v2236_v0 = vsel %vm743_vm10, %v5409_v48, %v5414_v36  ;;  %v2237_v21 = vsel %vm743_vm10, %v5410_v17, %v5415_v32 }
 0x5ed   : > { %v2252_v55 = vmax.f32 %v7879_v57, %v2236_v0  ;;  %v2260_v6 = vmax.f32 %v7875_v1, %v2237_v21  ;;  %v2235_v39 = vsel %vm743_vm10, %v5415_v32, %v5420_v60  ;;  %v2234_v19 = vsel %vm743_vm10, %v5414_v36, %v5419_v12  ;;  %v5423_v61 = vpop.permute.xlu0 %5422  ;;  %4539 = vmatpush3.bf16.msra.mxu1 %v5484_v59  ;;  %v5489_v1 = vld [vmem:[%s8447_s5 + $0x1e8] sm:$0xff]  }
 0x5ee   : > { %v5425_v31 = vunpack.i.h.bf16 %v5423_v61  ;;  %v5424_v11 = vunpack.i.l.bf16 %v5423_v61  ;;  %4540 = vmatprep.subr.bf16.mxu1 %v5487_v50  ;;  %v2253_v52 = vmax.f32 %v7918_v41, %v2234_v19  ;;  %v2261_v57 = vmax.f32 %v7922_v29, %v2235_v39  ;;  %v5490_v41 = vld [vmem:[%s8447_s5 + $0x1a8] sm:$0xff]  }
 0x5ef   : > { %v2268_v8 = vpack.c.bf16 %v2260_v6, %v2252_v55  ;;  %v5497_v55 = vld [vmem:[%s8448_s6 + $0x10] sm:$0xff]   ;;  %v5498_v6 = vld [vmem:[%s8448_s6 + $0x18] sm:$0x1f]  }
 0x5f0   : > { %v2246_v42 = vsel %vm743_vm10, %v5424_v11, %v5399_v2  ;;  %v2247_v58 = vsel %vm743_vm10, %v5425_v31, %v5400_v51  ;;  %v2269_v63 = vpack.c.bf16 %v2261_v57, %v2253_v52  ;;  %v5491_v2 = vld [vmem:[%s8447_s5 + $0x1f0] sm:$0xff]   ;;  %v2233_v7 = vsel %vm743_vm10, %v5420_v60, %v5425_v31  ;;  %v5500_v31 = vld [vmem:[%s8448_s6 + $0x28] sm:$0x1f]  }
 0x5f1   : > { %4541 = vmatpush3.bf16.msra.mxu1 %v5488_v13  ;;  %v2255_v29 = vmax.f32 %v7946_v22, %v2246_v42  ;;  %v2263_v34 = vmax.f32 %v7950_v14, %v2247_v58  ;;  %v5492_v51 = vld [vmem:[%s8447_s5 + $0x1b0] sm:$0xff]   ;;  %v5493_v22 = vld [vmem:[%s8447_s5 + $0x1f8] sm:$0xff]   ;;  %v2232_v14 = vsel %vm743_vm10, %v5419_v12, %v5424_v11  ;;  %v2262_v38 = vmax.f32 %v7930_v3, %v2233_v7  ;;  %v5499_v13 = vld [vmem:[%s8448_s6 + $0x20] sm:$0xff]  }
 0x5f2   : > { %4542 = vmatprep.subr.bf16.mxu1 %v5489_v1  ;;  %2898 = vmatprep.mubr.bf16.mxu0 %v2269_v63  ;;  %v2254_v9 = vmax.f32 %v7942_v30, %v2232_v14  ;;  %v5632_v30 = vmov 65535   ;;  %vm5633_vm10 = vmmov 0   ;;  %v5501_v57 = vld [vmem:[%s8448_s6 + $0x30] sm:$0xff]   ;;  %v5502_v1 = vld [vmem:[%s8448_s6 + $0x38] sm:$0x1f]   ;;  %v5503_v63 = vld [vmem:[%s8448_s6 + $0x40] sm:$0xff]  }
 0x5f3   : > { %2899 = vmatmul.mubr.bf16.vlgmr.msra.gmra.mrb[16].mxu0 %v2268_v8  ;;  %v2271_v10 = vpack.c.bf16 %v2263_v34, %v2255_v29  ;;  %v2971_v3 = vsel %vm2969_vm0, 4294967295, %v5632_v30  ;;  %v5505_v34 = vld [vmem:[%s8448_s6 + $0x50] sm:$0xff]   ;;  %v5528_v14 = vld [vmem:[%s8450_s8 + $0x8] sm:$0xff]   ;;  %v5507_v7 = vld [vmem:[%s8448_s6 + $0x60] sm:$0xff]  }
 0x5f4   : > { %v2270_v33 = vpack.c.bf16 %v2262_v38, %v2254_v9  ;;  %4619 = vmatpush3.bf16.msra.mxu0 %v5495_v15  ;;  %v8123_v23 = vsel %vm2970_vm2, %v2971_v3, 0  ;;  %4622 = vmatprep.mubr.msk.bf16.mxu0 %vm5633_vm10, %v5627_v25  ;;  %v5529_v38 = vld [vmem:[%s8450_s8 + $0x10] sm:$0xff]   ;;  %v5530_v15 = vld [vmem:[%s8450_s8 + $0x18] sm:$0xff]  }
 0x5f5   : > { %4543 = vmatpush3.bf16.msra.mxu1 %v5490_v41  ;;  %2939 = vmatprep.mubr.bf16.mxu1 %v2271_v10  ;;  %v2974_v17 = vand.u32 %v5496_v28, %v8123_v23  ;;  %v3039_v61 = vand.u32 %v5498_v6, %v8123_v23  ;;  %v3104_v52 = vand.u32 %v5500_v31, %v8123_v23  ;;  %v5504_v41 = vld [vmem:[%s8448_s6 + $0x48] sm:$0x1f]   ;;  %v5531_v28 = vld [vmem:[%s8450_s8 + $0x20] sm:$0xff]   ;;  %v5509_v30 = vld [vmem:[%s8448_s6 + $0x70] sm:$0xff]  }
 0x5f6   : > { %4544 = vmatprep.subr.bf16.mxu1 %v5491_v2  ;;  %4620 = vmatprep.subr.bf16.mxu0 %v5627_v25  ;;  %v3168_v58 = vand.u32 %v5502_v1, %v8123_v23  ;;  %v3232_v8 = vand.u32 %v5504_v41, %v8123_v23  ;;  %v5506_v2 = vld [vmem:[%s8448_s6 + $0x58] sm:$0x1f]   ;;  %v5525_v6 = vld [vmem:[%s8448_s6 + $0xf0] sm:$0xff]  }
 0x5f7   : > { %v5510_v3 = vld [vmem:[%s8448_s6 + $0x78] sm:$0x1f]   ;;  %v5533_v31 = vld [vmem:[%s8450_s8 + $0x30] sm:$0xff]  }
 0x5f8   : > { %4621 = vmatpush3.bf16.msra.mxu0 %v2974_v17 }
 0x5f9   : > { %4545 = vmatpush3.bf16.msra.mxu1 %v5492_v51  ;;  %4626 = vmatprep.subr.bf16.mxu0 %v5627_v25  ;;  %v3296_v51 = vand.u32 %v5506_v2, %v8123_v23  ;;  %v5537_v2 = vld [vmem:[%s8452_s10 + $0x10] sm:$0xff]  }
 0x5fa   : > { %4546 = vmatprep.subr.bf16.mxu1 %v5493_v22  ;;  %v5527_v22 = vld [vmem:[%s8450_s8] sm:$0xff]  }
 0x5fd   : > { %4547 = vmatpush3.bf16.msra.mxu1 %v5494_v53  ;;  %v5508_v53 = vld [vmem:[%s8448_s6 + $0x68] sm:$0x1f]  }
 0x5fe   : > { %4746 = vmatprep.subr.bf16.mxu1 %v5627_v25 }
 0x600   : > { %2940 = vmatmul.mubr.bf16.vlgmr.msra.gmra.mrb[24].mxu1 %v2270_v33  ;;  %v3360_v33 = vand.u32 %v5508_v53, %v8123_v23 }
 0x601   : > { %4762 = vmatprep.mubr.msk.bf16.mxu1 %vm5633_vm10, %v5627_v25  ;;  %4747 = vmatpush3.bf16.msra.mxu1 %v5527_v22  ;;  %v5540_v22 = vld [vmem:[%s8452_s10 + $0x28] ss:$0 sps:$4 sm:$0x33]  }
 0x602   : > { %4748 = vmatprep.subr.bf16.mxu1 %v5627_v25 }
 0x605   : > { %4749 = vmatpush3.bf16.msra.mxu1 %v5528_v14  ;;  %v4144_v14 = vsel %vm4142_vm15, %v5540_v22, 0 }
 0x606   : > { %4750 = vmatprep.subr.bf16.mxu1 %v5627_v25 }
 0x609   : > { %4751 = vmatpush3.bf16.msra.mxu1 %v5529_v38 }
 0x60a   : > { %4752 = vmatprep.subr.bf16.mxu1 %v5627_v25 }
 0x60d   : > { %4753 = vmatpush3.bf16.msra.mxu1 %v5530_v15 }
 0x60e   : > { %4754 = vmatprep.subr.bf16.mxu1 %v5627_v25 }
 0x611   : > { %4755 = vmatpush3.bf16.msra.mxu1 %v5531_v28 }
 0x612   : > { %4756 = vmatprep.subr.bf16.mxu1 %v5627_v25 }
 0x693   : > { %v4482_v48 = vpop.f32.mrb[16].mxu1 }
 0x694   : > { %v4483_v56 = vpop.f32.mrb[17].mxu1 }
 0x695   : > { %v4484_v37 = vadd.f32 %v4483_v56, %v4482_v48  ;;  %v4485_v40 = vpop.f32.mrb[18].mxu1  ;;  %v5532_v48 = vld [vmem:[%s8450_s8 + $0x28] sm:$0xff]   ;;  %v3424_v56 = vand.u32 %v5510_v3, %v8123_v23 }
 0x696   : > { %v4486_v5 = vpop.f32.mrb[19].mxu1  ;;  %4757 = vmatpush3.bf16.msra.mxu1 %v5532_v48 }
 0x697   : > { %v4487_v26 = vadd.f32 %v4486_v5, %v4485_v40  ;;  %4758 = vmatprep.subr.bf16.mxu1 %v5627_v25  ;;  %v5512_v40 = vld [vmem:[%s8448_s6 + $0x88] sm:$0x1f]  }
 0x69a   : > { %4759 = vmatpush3.bf16.msra.mxu1 %v5533_v31 }
 0x69b   : > { %4760 = vmatprep.subr.bf16.mxu1 %v5627_v25 }
 0x6b3   : > { %v4504_v35 = vpop.f32.mrb[20].mxu1 }
 0x6b4   : > { %v4505_v27 = vpop.f32.mrb[21].mxu1 }
 0x6b5   : > { %v4506_v18 = vadd.f32 %v4505_v27, %v4504_v35  ;;  %v4507_v43 = vpop.f32.mrb[22].mxu1  ;;  %v5513_v35 = vld [vmem:[%s8448_s6 + $0x90] sm:$0xff]   ;;  %v5514_v27 = vld [vmem:[%s8448_s6 + $0x98] sm:$0x1f]  }
 0x6b6   : > { %v4508_v4 = vpop.f32.mrb[23].mxu1 }
 0x6b7   : > { %v2860_v47 = vadd.f32 %v4506_v18, %v4484_v37  ;;  %v4509_v16 = vadd.f32 %v4508_v4, %v4507_v43  ;;  %v5511_v37 = vld [vmem:[%s8448_s6 + $0x80] sm:$0xff]   ;;  %v3553_v43 = vand.u32 %v5514_v27, %v8123_v23 }
 0x6b8   : > { %v5515_v4 = vld [vmem:[%s8448_s6 + $0xa0] sm:$0xff]  }
 0x6b9   : > { %v2863_v20 = vadd.f32 %v4509_v16, %v4487_v26  ;;  %v3488_v26 = vand.u32 %v5512_v40, %v8123_v23 }
 0x6c6   : > { %v4526_v45 = vpop.f32.mrb[16].mxu0 }
 0x6c7   : > { %v4527_v44 = vpop.f32.mrb[17].mxu0 }
 0x6c8   : > { %v4528_v46 = vadd.f32 %v4527_v44, %v4526_v45  ;;  %v4529_v62 = vpop.f32.mrb[18].mxu0  ;;  %v5517_v45 = vld [vmem:[%s8448_s6 + $0xb0] sm:$0xff]   ;;  %v5518_v44 = vld [vmem:[%s8448_s6 + $0xb8] sm:$0x1f]  }
 0x6c9   : > { %v4530_v49 = vpop.f32.mrb[19].mxu0 }
 0x6ca   : > { %v2901_v24 = vadd.f32 %v4528_v46, %v2860_v47  ;;  %v4531_v59 = vadd.f32 %v4530_v49, %v4529_v62  ;;  %v5516_v47 = vld [vmem:[%s8448_s6 + $0xa8] sm:$0x1f]   ;;  %v3682_v62 = vand.u32 %v5518_v44, %v8123_v23  ;;  %v5519_v49 = vld [vmem:[%s8448_s6 + $0xc0] sm:$0xff]  }
 0x6cc   : > { %v2904_v32 = vadd.f32 %v4531_v59, %v2863_v20  ;;  %v3618_v20 = vand.u32 %v5516_v47, %v8123_v23 }
 0x6d3   : > { %v4548_v36 = vpop.f32.mrb[24].mxu1 }
 0x6d4   : > { %v4549_v54 = vpop.f32.mrb[25].mxu1 }
 0x6d5   : > { %v4550_v50 = vadd.f32 %v4549_v54, %v4548_v36  ;;  %v4551_v60 = vpop.f32.mrb[26].mxu1  ;;  %v5521_v36 = vld [vmem:[%s8448_s6 + $0xd0] sm:$0xff]   ;;  %v5522_v54 = vld [vmem:[%s8448_s6 + $0xd8] sm:$0x1f]  }
 0x6d6   : > { %v4552_v12 = vpop.f32.mrb[27].mxu1 }
 0x6d7   : > { %v2942_v0 = vadd.f32 %v4550_v50, %v2901_v24  ;;  %v4553_v21 = vadd.f32 %v4552_v12, %v4551_v60  ;;  %v5520_v24 = vld [vmem:[%s8448_s6 + $0xc8] sm:$0x1f]   ;;  %v3810_v60 = vand.u32 %v5522_v54, %v8123_v23  ;;  %v5523_v12 = vld [vmem:[%s8448_s6 + $0xe0] sm:$0xff]  }
 0x6d9   : > { %v8137_v39 = vpack.c.bf16 %v2942_v0, %v2942_v0  ;;  %v8139_v19 = vadd.f32 %v4553_v21, %v2904_v32  ;;  %v3746_v32 = vand.u32 %v5520_v24, %v8123_v23  ;;  %v5524_v0 = vld [vmem:[%s8448_s6 + $0xe8] sm:$0x1f]  }
 0x6db   : > { %4623 = vmatmul.mubr.msk.bf16.vlgmr.msra.gmra.mrb[20].mxu0 %vm2965_vm12, %v8137_v39  ;;  %v8155_v11 = vshrl.u32 %v8137_v39, 16  ;;  %v3088_v42 = vrot.slane %v8137_v39, 1  ;;  %v3216_v10 = vrot.slane %v8137_v39, 2  ;;  %v3344_v17 = vrot.slane %v8137_v39, 3  ;;  %v5526_v39 = vld [vmem:[%s8448_s6 + $0xf8] sm:$0x1f]  }
 0x6dc   : > { %4627 = vmatpush3.bf16.msra.mxu0 %v5497_v55  ;;  %4630 = vmatprep.mubr.msk.bf16.mxu0 %vm5633_vm10, %v5627_v25  ;;  %v3467_v18 = vpack.c.bf16 %v8139_v19, %v8139_v19  ;;  %v3874_v55 = vand.u32 %v5524_v0, %v8123_v23 }
 0x6dd   : > { %4628 = vmatprep.subr.bf16.mxu0 %v5627_v25  ;;  %v3152_v29 = vrot.slane %v8155_v11, 1  ;;  %v3280_v9 = vrot.slane %v8155_v11, 2  ;;  %v3408_v5 = vrot.slane %v8155_v11, 3 }
 0x6de   : > { %v3536_v16 = vshrl.u32 %v3467_v18, 16  ;;  %v3602_v46 = vrot.slane %v3467_v18, 1  ;;  %v3730_v50 = vrot.slane %v3467_v18, 2  ;;  %v3858_v19 = vrot.slane %v3467_v18, 3 }
 0x6e0   : > { %4629 = vmatpush3.bf16.msra.mxu0 %v3039_v61  ;;  %v3666_v59 = vrot.slane %v3536_v16, 1  ;;  %v3794_v21 = vrot.slane %v3536_v16, 2  ;;  %v3938_v61 = vand.u32 %v5526_v39, %v8123_v23  ;;  %v5534_v23 = vld [vmem:[%s8450_s8 + $0x38] ss:$0 sps:$4 sm:$0xff]  }
 0x6e1   : > { %4634 = vmatprep.subr.bf16.mxu0 %v5627_v25 }
 0x6e7   : > { %4631 = vmatmul.mubr.msk.bf16.vlgmr.msra.gmra.mrb[20].mxu0 %vm2965_vm12, %v8155_v11  ;;  %v4049_v11 = vsel %vm2969_vm0, %v5534_v23, 0 }
 0x6e8   : > { %4635 = vmatpush3.bf16.msra.mxu0 %v5499_v13  ;;  %4638 = vmatprep.mubr.msk.bf16.mxu0 %vm5633_vm10, %v5627_v25  ;;  %v3922_v13 = vrot.slane %v3536_v16, 3 }
 0x6e9   : > { %4636 = vmatprep.subr.bf16.mxu0 %v5627_v25  ;;  %4761 = vmatpush3.bf16.msra.mxu1 %v4049_v11 }
 0x6ea   : > { %4766 = vmatprep.subr.bf16.mxu1 %v5627_v25 }
 0x6ec   : > { %4637 = vmatpush3.bf16.msra.mxu0 %v3104_v52  ;;  %v2948_v52 = vld [vmem:[%s8449_s7] sm:$0x1] }
 0x6ed   : > { %4642 = vmatprep.subr.bf16.mxu0 %v5627_v25 }
 0x6f3   : > { %4639 = vmatmul.mubr.msk.bf16.vlgmr.msra.gmra.mrb[20].mxu0 %vm2965_vm12, %v3088_v42 }
 0x6f4   : > { %4643 = vmatpush3.bf16.msra.mxu0 %v5501_v57  ;;  %4646 = vmatprep.mubr.msk.bf16.mxu0 %vm5633_vm10, %v5627_v25 }
 0x6f5   : > { %4644 = vmatprep.subr.bf16.mxu0 %v5627_v25 }
 0x6f8   : > { %4645 = vmatpush3.bf16.msra.mxu0 %v3168_v58 }
 0x6f9   : > { %4650 = vmatprep.subr.bf16.mxu0 %v5627_v25 }
 0x6ff   : > { %4647 = vmatmul.mubr.msk.bf16.vlgmr.msra.gmra.mrb[20].mxu0 %vm2965_vm12, %v3152_v29  ;;  %v5535_v29 = vld [vmem:[%s8452_s10] sm:$0xff]  }
 0x700   : > { %4651 = vmatpush3.bf16.msra.mxu0 %v5503_v63  ;;  %4654 = vmatprep.mubr.msk.bf16.mxu0 %vm5633_vm10, %v5627_v25 }
 0x701   : > { %4652 = vmatprep.subr.bf16.mxu0 %v5627_v25 }
 0x704   : > { %4653 = vmatpush3.bf16.msra.mxu0 %v3232_v8 }
 0x705   : > { %4658 = vmatprep.subr.bf16.mxu0 %v5627_v25 }
 0x70b   : > { %4655 = vmatmul.mubr.msk.bf16.vlgmr.msra.gmra.mrb[20].mxu0 %vm2965_vm12, %v3216_v10  ;;  %v5538_v10 = vld [vmem:[%s8452_s10 + $0x18] sm:$0xff]  }
 0x70c   : > { %4659 = vmatpush3.bf16.msra.mxu0 %v5505_v34  ;;  %4662 = vmatprep.mubr.msk.bf16.mxu0 %vm5633_vm10, %v5627_v25  ;;  %v5536_v34 = vld [vmem:[%s8452_s10 + $0x8] sm:$0xff]  }
 0x70d   : > { %4660 = vmatprep.subr.bf16.mxu0 %v5627_v25 }
 0x710   : > { %4661 = vmatpush3.bf16.msra.mxu0 %v3296_v51  ;;  %v5539_v51 = vld [vmem:[%s8452_s10 + $0x20] sm:$0xff]  }
 0x711   : > { %4666 = vmatprep.subr.bf16.mxu0 %v5627_v25 }
 0x717   : > { %4663 = vmatmul.mubr.msk.bf16.vlgmr.msra.gmra.mrb[20].mxu0 %vm2965_vm12, %v3280_v9 }
 0x718   : > { %4667 = vmatpush3.bf16.msra.mxu0 %v5507_v7  ;;  %4670 = vmatprep.mubr.msk.bf16.mxu0 %vm5633_vm10, %v5627_v25  ;;  %v3998_v7 = vld [vmem:[%s8451_s9] sm:$0x1] }
 0x719   : > { %4668 = vmatprep.subr.bf16.mxu0 %v5627_v25 }
 0x71c   : > { %4669 = vmatpush3.bf16.msra.mxu0 %v3360_v33 }
 0x71d   : > { %4674 = vmatprep.subr.bf16.mxu0 %v5627_v25 }
 0x723   : > { %4671 = vmatmul.mubr.msk.bf16.vlgmr.msra.gmra.mrb[20].mxu0 %vm2965_vm12, %v3344_v17 }
 0x724   : > { %4675 = vmatpush3.bf16.msra.mxu0 %v5509_v30  ;;  %4678 = vmatprep.mubr.msk.bf16.mxu0 %vm5633_vm10, %v5627_v25  ;;  %v4104_v30 = vld [vmem:[%s8453_s11] sm:$0x1] }
 0x725   : > { %4676 = vmatprep.subr.bf16.mxu0 %v5627_v25 }
 0x728   : > { %4677 = vmatpush3.bf16.msra.mxu0 %v3424_v56 }
 0x729   : > { %4682 = vmatprep.subr.bf16.mxu0 %v5627_v25 }
 0x72f   : > { %4679 = vmatmul.mubr.msk.bf16.vlgmr.msra.gmra.mrb[20].mxu0 %vm2965_vm12, %v3408_v5 }
 0x730   : > { %4683 = vmatpush3.bf16.msra.mxu0 %v5511_v37  ;;  %4686 = vmatprep.mubr.msk.bf16.mxu0 %vm5633_vm10, %v5627_v25 }
 0x731   : > { %4684 = vmatprep.subr.bf16.mxu0 %v5627_v25 }
 0x734   : > { %4685 = vmatpush3.bf16.msra.mxu0 %v3488_v26 }
 0x735   : > { %4690 = vmatprep.subr.bf16.mxu0 %v5627_v25 }
 0x73b   : > { %4687 = vmatmul.mubr.msk.bf16.vlgmr.msra.gmra.mrb[20].mxu0 %vm2965_vm12, %v3467_v18 }
 0x73c   : > { %4691 = vmatpush3.bf16.msra.mxu0 %v5513_v35  ;;  %4694 = vmatprep.mubr.msk.bf16.mxu0 %vm5633_vm10, %v5627_v25 }
 0x73d   : > { %4692 = vmatprep.subr.bf16.mxu0 %v5627_v25 }
 0x740   : > { %4693 = vmatpush3.bf16.msra.mxu0 %v3553_v43 }
 0x741   : > { %4698 = vmatprep.subr.bf16.mxu0 %v5627_v25 }
 0x747   : > { %4695 = vmatmul.mubr.msk.bf16.vlgmr.msra.gmra.mrb[20].mxu0 %vm2965_vm12, %v3536_v16 }
 0x748   : > { %4699 = vmatpush3.bf16.msra.mxu0 %v5515_v4  ;;  %4702 = vmatprep.mubr.msk.bf16.mxu0 %vm5633_vm10, %v5627_v25 }
 0x749   : > { %4700 = vmatprep.subr.bf16.mxu0 %v5627_v25 }
 0x74c   : > { %4701 = vmatpush3.bf16.msra.mxu0 %v3618_v20 }
 0x74d   : > { %4706 = vmatprep.subr.bf16.mxu0 %v5627_v25 }
 0x753   : > { %4703 = vmatmul.mubr.msk.bf16.vlgmr.msra.gmra.mrb[20].mxu0 %vm2965_vm12, %v3602_v46 }
 0x754   : > { %4707 = vmatpush3.bf16.msra.mxu0 %v5517_v45  ;;  %4710 = vmatprep.mubr.msk.bf16.mxu0 %vm5633_vm10, %v5627_v25 }
 0x755   : > { %4708 = vmatprep.subr.bf16.mxu0 %v5627_v25 }
 0x758   : > { %4709 = vmatpush3.bf16.msra.mxu0 %v3682_v62 }
 0x759   : > { %4714 = vmatprep.subr.bf16.mxu0 %v5627_v25 }
 0x75f   : > { %4711 = vmatmul.mubr.msk.bf16.vlgmr.msra.gmra.mrb[20].mxu0 %vm2965_vm12, %v3666_v59 }
 0x760   : > { %4715 = vmatpush3.bf16.msra.mxu0 %v5519_v49  ;;  %4718 = vmatprep.mubr.msk.bf16.mxu0 %vm5633_vm10, %v5627_v25 }
 0x761   : > { %4716 = vmatprep.subr.bf16.mxu0 %v5627_v25 }
 0x764   : > { %4717 = vmatpush3.bf16.msra.mxu0 %v3746_v32 }
 0x765   : > { %4722 = vmatprep.subr.bf16.mxu0 %v5627_v25 }
 0x76b   : > { %4719 = vmatmul.mubr.msk.bf16.vlgmr.msra.gmra.mrb[20].mxu0 %vm2965_vm12, %v3730_v50 }
 0x76c   : > { %4723 = vmatpush3.bf16.msra.mxu0 %v5521_v36  ;;  %4726 = vmatprep.mubr.msk.bf16.mxu0 %vm5633_vm10, %v5627_v25 }
 0x76d   : > { %4724 = vmatprep.subr.bf16.mxu0 %v5627_v25 }
 0x770   : > { %4725 = vmatpush3.bf16.msra.mxu0 %v3810_v60 }
 0x771   : > { %4730 = vmatprep.subr.bf16.mxu0 %v5627_v25 }
 0x777   : > { %4727 = vmatmul.mubr.msk.bf16.vlgmr.msra.gmra.mrb[20].mxu0 %vm2965_vm12, %v3794_v21 }
 0x778   : > { %4731 = vmatpush3.bf16.msra.mxu0 %v5523_v12  ;;  %4734 = vmatprep.mubr.msk.bf16.mxu0 %vm5633_vm10, %v5627_v25 }
 0x779   : > { %4732 = vmatprep.subr.bf16.mxu0 %v5627_v25 }
 0x77c   : > { %4733 = vmatpush3.bf16.msra.mxu0 %v3874_v55 }
 0x77d   : > { %4738 = vmatprep.subr.bf16.mxu0 %v5627_v25 }
 0x783   : > { %4735 = vmatmul.mubr.msk.bf16.vlgmr.msra.gmra.mrb[20].mxu0 %vm2965_vm12, %v3858_v19 }
 0x784   : > { %4739 = vmatpush3.bf16.msra.mxu0 %v5525_v6  ;;  %4742 = vmatprep.mubr.msk.bf16.mxu0 %vm5633_vm10, %v5627_v25 }
 0x785   : > { %4740 = vmatprep.subr.bf16.mxu0 %v5627_v25 }
 0x788   : > { %4741 = vmatpush3.bf16.msra.mxu0 %v3938_v61 }
 0x78f   : > { %4743 = vmatmul.mubr.msk.bf16.vlgmr.msra.gmra.mrb[20].mxu0 %vm2965_vm12, %v3922_v13 }
 0x862   : > { %v3974_v57 = vpop.f32.mrb[20].mxu0 }
 0x863   : > { %v4782_v1 = vadd.f32 %v3974_v57, %v2948_v52  ;;  %v4744_v42 = vpop.f32.mrb[21].mxu0 }
 0x864   : > { %v3977_v58 = vpop.f32.mrb[22].mxu0 }
 0x865   : > { %v3981_v63 = vmax.f32 %v4782_v1, 0.0  ;;  %v4745_v41 = vpop.f32.mrb[23].mxu0 }
 0x867   : > { %v3982_v8 = vpack.c.bf16 %v3981_v63, %v3981_v63 }
 0x869   : > { %4763 = vmatmul.mubr.msk.bf16.vlgmr.msra.gmra.mrb[28].mxu1 %vm4044_vm14, %v3982_v8 }
 0x86a   : > { %4767 = vmatpush3.bf16.msra.mxu1 %v5535_v29  ;;  %4778 = vmatprep.mubr.msk.bf16.mxu1 %vm5633_vm10, %v5627_v25 }
 0x86b   : > { %4768 = vmatprep.subr.bf16.mxu1 %v5627_v25 }
 0x86e   : > { %4769 = vmatpush3.bf16.msra.mxu1 %v5536_v34 }
 0x86f   : > { %4770 = vmatprep.subr.bf16.mxu1 %v5627_v25 }
 0x872   : > { %4771 = vmatpush3.bf16.msra.mxu1 %v5537_v2 }
 0x873   : > { %4772 = vmatprep.subr.bf16.mxu1 %v5627_v25 }
 0x876   : > { %4773 = vmatpush3.bf16.msra.mxu1 %v5538_v10 }
 0x877   : > { %4774 = vmatprep.subr.bf16.mxu1 %v5627_v25 }
 0x87a   : > { %4775 = vmatpush3.bf16.msra.mxu1 %v5539_v51 }
 0x87b   : > { %4776 = vmatprep.subr.bf16.mxu1 %v5627_v25 }
 0x87e   : > { %4777 = vmatpush3.bf16.msra.mxu1 %v4144_v14 }
 0x93c   : > { %v4085_v53 = vpop.f32.mrb[28].mxu1 }
 0x93d   : > { %v4086_v9 = vadd.f32 %v4085_v53, %v3998_v7  ;;  %v4764_v38 = vpop.f32.mrb[29].mxu1 }
 0x93e   : > { %v4088_v33 = vpop.f32.mrb[30].mxu1 }
 0x93f   : > { %v4091_v15 = vmax.f32 %v4086_v9, 0.0  ;;  %v4765_v28 = vpop.f32.mrb[31].mxu1 }
 0x941   : > { %v4092_v25 = vpack.c.bf16 %v4091_v15, %v4091_v15 }
 0x943   : > { %4779 = vmatmul.mubr.msk.bf16.vlgmr.msra.gmra.mrb[32].mxu1 %vm4138_vm4, %v4092_v25 }
 0xa16   : > { %v4180_v3 = vpop.f32.mrb[32].mxu1 }
 0xa17   : > { %v4181_v17 = vadd.f32 %v4180_v3, %v4104_v30  ;;  %v4780_v48 = vpop.f32.mrb[33].mxu1 }
 0xa18   : > { %v4183_v56 = vpop.f32.mrb[34].mxu1 }
 0xa19   : > { %v4781_v37 = vpop.f32.mrb[35].mxu1  ;;  %4187 = vst.msk [vmem:[%s405_s12] sm:$0x1] %vm4186_vm1, %v4181_v17 }
 0xa1a   : > { %5556 = shalt.err (!%p5553_p3)
}
 0xa1b   : > { %s5557_s23 = scalar_lea.hbm %s8400_s20, 16  ;;  %s5561_s17 = scalar_lea.hbm %s8715_s19, 32 }
 0xa1c   : > { %p5558_p4 = scmp.ne.s32.totalorder %s8400_s20, %s5557_s23  ;;  %p5562_p9 = scmp.lt.u32.totalorder %s8400_s20, %s8715_s19 }
 0xa1d   : > { %p5563_p10 = scmp.lt.u32.totalorder %s5561_s17, %s5557_s23  ;;  %p5565_p12 = scmp.lt.u32.totalorder %s5557_s23, %s8400_s20 }
 0xa1e   : > { %p5559_p7 = pnand %p5558_p4, %p5738_p5 }
 0xa1f   : > { %p5564_p11 = por %p5563_p10, %p5562_p9 }
 0xa20   : > { %p5560_p8 = pneg %p5559_p7 }
 0xa21   : > { %p5566_p13 = por %p5565_p12, %p5564_p11 }
 0xa23   : > { %p5567_p0 = pnand %p5566_p13, %p5560_p8 }
 0xa25   : > { %5570 = shalt.err (!%p5567_p0)
}
 0xa26   : > { %4843 = dma.vmem_to_hbm [thread:$0]  (%p5738_p5), %s8402_s24, 16, %s8400_s20, %s4189_s25  }
 0xa27 PF: > { %s8716_s28 = sld [smem:[#allocation9_spill]]  ;;  %s8717_s1 = sld [smem:[#allocation7_spill]] }
 0xa2d   : > { %p4849_p1 = scmp.ge.s32.totalorder %s8716_s28, 2  ;;  %s4213_s27 = sand.u32 1, %s8717_s1  }
 0xa2e   : > { %s4214_s13 = scalar_lea.sflag [#allocation5], %s4213_s27 }
 0xa2f   : > { %p4846_p2 = pnand %p4849_p1, %p5742_p6 }
 0xa31   : > { %5588 = dma.done.wait (!%p4846_p2), %s4214_s13, 16  }
 0xa32   : > { %5590 = vsyncadd (!%p4846_p2), %s4214_s13, 4294967280  ;;  %s8719_s24 = sld [smem:[#allocation10_spill]]  ;;  %s8720_s26 = sld [smem:[#allocation8_spill]] }
 0xa33   : > { %s8721_s23 = sld [smem:[#allocation11_spill]]  ;;  %s8722_s21 = smov %s5597_s22 }
 0xa38   : > { %p22_p3 = scmp.ge.s32.totalorder %s8719_s24, 4   ;;  %s8723_s22 = smov %s8720_s26 }
 0xa3a   :  { %24 = sbr.rel (!%p22_p3) target bundleno = 7 (0x7), region = 118 }
 0xa41   :  { %4218 = vsyncpa [#allocation5], 1 }
 0xa42   :  { %4220 = vsyncpa [#allocation5 + $0x1], 1 }

</bundles_post_ra>
